<compile_context>
chip_gen: v5e
topology: v5e:2x2
jax: 0.10.0
libtpu: 0.0.40
codegen_flags: <defaults>
</compile_context>

<pallas_src>
import functools
import math

import jax
import jax.numpy as jnp
import numpy as np
from jax.experimental import pallas as pl
from jax.experimental.pallas import tpu as pltpu

LANES = 128   # padded channel count -> lane-dense MXU operands and stores
EPS = 1e-5


# ----------------------------------------------------------------------------
# in-kernel helpers
# ----------------------------------------------------------------------------
def _moment_sums(y):
    """[sum(y), sum(y*y)] over rows, packed into ONE 8-row ones-LHS MXU matmul.

    Returns (8, 2*C) f32; all 8 rows are identical copies of the column sums
    (the 8-row LHS keeps the MXU sublanes busy instead of a 1-row op)."""
    m = y.shape[0]
    yy = jnp.concatenate([y, y * y], axis=-1).astype(jnp.bfloat16)
    ones = jnp.full((8, m), 1.0, dtype=jnp.bfloat16)
    return jnp.dot(ones, yy, preferred_element_type=jnp.float32)


# ----------------------------------------------------------------------------
# pass 1: conv1 (one fused big-K dot) + shortcut branch + BN1 partial sums
# ----------------------------------------------------------------------------
def pass1_kernel(*refs, stride, P, Hph, Ho, Wo, Cp, tile_n, use_1x1conv):
    if use_1x1conv:
        ph_ref, w1_ref, w3_ref, b3_ref, y1_ref, sc_ref, st1_ref = refs
    else:
        ph_ref, w1_ref, y1_ref, sc_ref, st1_ref = refs
    M_t = tile_n * Ho * Wo

    # 9 shifted taps of the phase-decomposed, zero-padded input; each is a
    # lane-dense (M_t, 128) bf16 slab, so the concat is lane-aligned.
    taps = []
    for di in range(3):
        pi, qi = di % stride, di // stride
        for dj in range(3):
            pj, qj = dj % stride, dj // stride
            row0 = (pi * P + pj) * Hph + qi          # phase block, then offset
            slab = ph_ref[:, row0:row0 + Ho, qj:qj + Wo, :]
            taps.append(slab.reshape(M_t, Cp))
    xcol = jnp.concatenate(taps, axis=-1)            # (M_t, 9*Cp) bf16 im2col
    y1 = jnp.dot(xcol, w1_ref[...], preferred_element_type=jnp.float32)

    st1_ref[...] = _moment_sums(y1).reshape(1, 8, 2 * Cp)   # per-tile partials
    y1_ref[...] = y1.astype(jnp.bfloat16).reshape(tile_n, Ho, Wo, Cp)

    center = taps[4]                                 # X[:, ::s, ::s, :] (di=dj=1)
    if use_1x1conv:                                  # projection shortcut
        sc = jnp.dot(center, w3_ref[...],
                     preferred_element_type=jnp.float32) + b3_ref[...]
        sc_ref[...] = sc.astype(jnp.bfloat16).reshape(tile_n, Ho, Wo, Cp)
    else:                                            # identity: no MXU work
        sc_ref[...] = center.reshape(tile_n, Ho, Wo, Cp)


# ----------------------------------------------------------------------------
# pass 2: bn1-normalize + relu + conv2 (one fused dot) + BN2 partial sums
# ----------------------------------------------------------------------------
def pass2_kernel(y1_ref, scale1_ref, shift1_ref, w2_ref, y2_ref, st2_ref,
                 ypad_ref, *, Ho, Wo, Cp, tile_n):
    M_t = tile_n * Ho * Wo

    # bn1 (scale/shift folded on the host from the global sums) + relu, in f32.
    a = jnp.maximum(
        y1_ref[...].reshape(M_t, Cp).astype(jnp.float32) * scale1_ref[...]
        + shift1_ref[...], 0.0)

    # Stage relu(bn1(.)) into the zero-bordered scratch for conv2's pad=1.
    # Only the 1-pixel border is zeroed (interior fully overwritten); it is
    # re-zeroed every step because with a "parallel" grid axis a core's first
    # step is not necessarily program_id == 0.
    zrow = jnp.zeros((tile_n, 1, Wo + 2, Cp), jnp.bfloat16)
    zcol = jnp.zeros((tile_n, Ho + 2, 1, Cp), jnp.bfloat16)
    ypad_ref[:, 0:1, :, :] = zrow
    ypad_ref[:, Ho + 1:Ho + 2, :, :] = zrow
    ypad_ref[:, :, 0:1, :] = zcol
    ypad_ref[:, :, Wo + 1:Wo + 2, :] = zcol
    ypad_ref[:, 1:Ho + 1, 1:Wo + 1, :] = (
        a.astype(jnp.bfloat16).reshape(tile_n, Ho, Wo, Cp))

    # conv2 (3x3, stride 1): lane-aligned in-VMEM im2col -> ONE MXU matmul.
    taps = [ypad_ref[:, di:di + Ho, dj:dj + Wo, :].reshape(M_t, Cp)
            for di in range(3) for dj in range(3)]
    y2col = jnp.concatenate(taps, axis=-1)           # (M_t, 9*Cp) bf16
    y2 = jnp.dot(y2col, w2_ref[...], preferred_element_type=jnp.float32)

    st2_ref[...] = _moment_sums(y2).reshape(1, 8, 2 * Cp)
    y2_ref[...] = y2.astype(jnp.bfloat16).reshape(tile_n, Ho, Wo, Cp)


# ----------------------------------------------------------------------------
# pass 3: bn2-normalize + residual add + relu
# ----------------------------------------------------------------------------
def pass3_kernel(y2_ref, sc_ref, scale2_ref, shift2_ref, out_ref,
                 *, Ho, Wo, Cp, tile_n):
    M_t = tile_n * Ho * Wo
    y2 = y2_ref[...].reshape(M_t, Cp).astype(jnp.float32)
    sc = sc_ref[...].reshape(M_t, Cp).astype(jnp.float32)
    out = jnp.maximum(y2 * scale2_ref[...] + shift2_ref[...] + sc, 0.0)
    out_ref[...] = out.astype(out_ref.dtype).reshape(tile_n, Ho, Wo, Cp)


# ----------------------------------------------------------------------------
# host-side layout prep
# ----------------------------------------------------------------------------
def _phase_decompose(x_cp, stride):
    """Zero-pad (conv pad=1) and split into stride-s spatial phases so every
    3x3/stride-s conv tap becomes a unit-stride *static* window in the kernel.

    Input : (N, H, W, Cp) channel-padded activations.
    Output: (N, P*P*Hph, Wph, Cp) with P = min(stride, 3); phase p occupies
            rows [p*Hph, (p+1)*Hph).  Total bytes ~= input bytes (no 9x
            im2col blowup in HBM)."""
    N, H, W, Cp = x_cp.shape
    s = stride
    Ho, Wo = (H - 1) // s + 1, (W - 1) // s + 1
    P = min(s, 3)
    # A tap (di, dj) with di = s*qi + pi needs phase (pi, pj) at offset (qi, qj);
    # qi, qj <= 2 // s, so each phase needs Ho + (2 // s) rows.  (Parenthesised
    # on purpose: it is Ho + (2//s), not (Ho + 2) // s.)
    Hph, Wph = Ho + (2 // s), Wo + (2 // s)
    # Pad slightly past H+2 when s does not divide evenly; the extra zero rows
    # only fill phase slots no real tap ever reads.
    Hp = max(H + 2, s * (Hph - 1) + P)
    Wp = max(W + 2, s * (Wph - 1) + P)
    xp = jnp.pad(x_cp, ((0, 0), (1, Hp - H - 1), (1, Wp - W - 1), (0, 0)))
    phases = jnp.stack(
        [xp[:, pi::s, pj::s, :][:, :Hph, :Wph, :]
         for pi in range(P) for pj in range(P)], axis=1)   # (N, P*P, Hph, Wph, Cp)
    return phases.reshape(N, P * P * Hph, Wph, Cp), Ho, Wo, P, Hph, Wph


def _pick_tile_n(N, Ho, Wo, Cp, vmem_limit):
    """Largest batch tile whose rough pass-2 VMEM footprint fits in ~half the
    scoped VMEM limit (pipeline buffers + pad scratch + in-kernel temps)."""
    def footprint(tn):
        m = tn * Ho * Wo
        return (2 * 2 * (m * Cp * 2)                   # y1/y2 blocks, double-buffered
                + tn * (Ho + 2) * (Wo + 2) * Cp * 2    # ypad scratch (bf16)
                + m * 9 * Cp * 2                       # in-VMEM im2col (bf16)
                + 2 * m * Cp * 4)                      # f32 accumulator / relu temp
    best = 1
    for cand in range(1, N + 1):
        if N % cand == 0 and footprint(cand) <= vmem_limit // 2:
            best = cand
    return best


# ----------------------------------------------------------------------------
# parameters + forward
# ----------------------------------------------------------------------------
def init_residual_params(key, input_channels, num_channels, use_1x1conv):
    """Parameters mirroring fresh nn.Module defaults (BN: gamma=1, beta=0)."""
    ks = jax.random.split(key, 6)

    def conv_init(kw, kb, kh, kwd, cin, cout):
        bound = 1.0 / math.sqrt(cin * kh * kwd)
        w = jax.random.uniform(kw, (kh, kwd, cin, cout), jnp.float32, -bound, bound)
        b = jax.random.uniform(kb, (1, cout), jnp.float32, -bound, bound)
        return w, b

    w1, b1 = conv_init(ks[0], ks[1], 3, 3, input_channels, num_channels)
    w2, b2 = conv_init(ks[2], ks[3], 3, 3, num_channels, num_channels)
    ones = jnp.ones((1, num_channels), jnp.float32)
    zeros = jnp.zeros((1, num_channels), jnp.float32)
    params = dict(w1=w1, b1=b1, g1=ones, be1=zeros,
                  w2=w2, b2=b2, g2=ones, be2=zeros,
                  use_1x1conv=use_1x1conv)
    if use_1x1conv:
        w3_hw, b3 = conv_init(ks[4], ks[5], 1, 1, input_channels, num_channels)
        params["w3"] = w3_hw.reshape(input_channels, num_channels)
        params["b3"] = b3
    return params


def residual_forward(x_nchw, params, *, strides=1, tile_n=None,
                     out_dtype=jnp.bfloat16):
    """Pallas forward of the Residual block. Returns NCHW activations
    (bf16 by default; pass out_dtype=jnp.float32 if the consumer needs f32)."""
    N, Cin, H, W = x_nchw.shape
    Cout = params["w1"].shape[-1]
    Cp = LANES
    assert Cin <= Cp and Cout <= Cp
    use_1x1conv = params["use_1x1conv"]
    if not use_1x1conv:
        assert strides == 1 and Cin == Cout, "identity shortcut needs matching shapes"

    # -------- host-side layout prep: NHWC, channels padded to 128 lanes, bf16,
    #          phase-decomposed for the stride-s conv1 (bytes ~= input). --------
    x_nhwc = jnp.transpose(x_nchw, (0, 2, 3, 1)).astype(jnp.float32)
    x_cp = jnp.pad(x_nhwc, ((0, 0), (0, 0), (0, 0), (0, Cp - Cin)))
    phases, Ho, Wo, P, Hph, Wph = _phase_decompose(x_cp, strides)
    phases = phases.astype(jnp.bfloat16)
    M_total = N * Ho * Wo

    # VMEM budget per generation (v7x: 64 MiB/TC vs 128 MiB on v5e/v6e).
    try:
        vmem_cap = pltpu.get_tpu_info().vmem_capacity_bytes
    except Exception:   # not on TPU / API unavailable -> conservative default
        vmem_cap = 64 * 1024 * 1024
    vmem_limit = min(int(0.75 * vmem_cap), 100 * 1024 * 1024)

    if tile_n is None:
        tile_n = _pick_tile_n(N, Ho, Wo, Cp, vmem_limit)
    assert N % tile_n == 0
    T = N // tile_n                                    # grid steps

    # conv weights as lane-aligned (9*Cp, Cp) im2col matrices.  conv biases
    # b1/b2 are NOT used: a per-channel constant added before training-mode
    # BatchNorm cancels exactly in (y - mean(y)).
    def im2col_w(w_hwio, cin):
        w9 = w_hwio.reshape(9, cin, Cout)
        wcol = jnp.zeros((9, Cp, Cp), jnp.float32).at[:, :cin, :Cout].set(w9)
        return wcol.reshape(9 * Cp, Cp).astype(jnp.bfloat16)

    w1col = im2col_w(params["w1"], Cin)
    w2col = im2col_w(params["w2"], Cout)

    def padc(a, value=0.0):          # pad last (channel) dim to Cp lanes
        return jnp.pad(a, [(0, 0)] * (a.ndim - 1) + [(0, Cp - a.shape[-1])],
                       constant_values=value)

    cparams = pltpu.CompilerParams(
        dimension_semantics=("parallel",),   # every tile independent -> megacore
        vmem_limit_bytes=vmem_limit)

    def full_spec(shape):
        nd = len(shape)
        return pl.BlockSpec(shape, lambda i, nd=nd: (0,) * nd)

    tile_spec = pl.BlockSpec((tile_n, Ho, Wo, Cp), lambda i: (i, 0, 0, 0))
    stat_spec = pl.BlockSpec((1, 8, 2 * Cp), lambda i: (i, 0, 0))
    act = functools.partial(jax.ShapeDtypeStruct, (N, Ho, Wo, Cp))

    # -------- pass 1: conv1 + shortcut branch + BN1 partial sums --------
    p1_args = [phases, w1col]
    p1_specs = [pl.BlockSpec((tile_n, P * P * Hph, Wph, Cp),
                             lambda i: (i, 0, 0, 0)),
                full_spec(w1col.shape)]
    if use_1x1conv:
        w3 = (jnp.zeros((Cp, Cp), jnp.float32)
              .at[:Cin, :Cout].set(params["w3"]).astype(jnp.bfloat16))
        b3 = padc(params["b3"])
        p1_args += [w3, b3]
        p1_specs += [full_spec(w3.shape), full_spec(b3.shape)]

    y1, sc, st1 = pl.pallas_call(
        functools.partial(pass1_kernel, stride=strides, P=P, Hph=Hph,
                          Ho=Ho, Wo=Wo, Cp=Cp, tile_n=tile_n,
                          use_1x1conv=use_1x1conv),
        grid=(T,),
        in_specs=p1_specs,
        out_specs=[tile_spec, tile_spec, stat_spec],
        out_shape=[act(jnp.bfloat16),                        # Y1 = conv1(X) (pre-BN)
                   act(jnp.bfloat16),                        # shortcut branch
                   jax.ShapeDtypeStruct((T, 8, 2 * Cp), jnp.float32)],
        compiler_params=cparams,
    )(*p1_args)

    # Fold the global batch statistics into per-channel scale/shift (a few
    # 128-lane XLA ops between the kernels).
    g1, be1 = padc(params["g1"], 1.0), padc(params["be1"])
    g2, be2 = padc(params["g2"], 1.0), padc(params["be2"])

    def bn_fold(partials, gamma, beta):
        sums = jnp.sum(partials[:, 0, :], axis=0)                 # (2*Cp,)
        mu = sums[:Cp] / M_total
        var = jnp.maximum(sums[Cp:] / M_total - mu * mu, 0.0)     # biased variance
        scale = gamma.reshape(Cp) * jax.lax.rsqrt(var + EPS)
        shift = beta.reshape(Cp) - mu * scale
        return scale.reshape(1, Cp), shift.reshape(1, Cp)

    scale1, shift1 = bn_fold(st1, g1, be1)

    # -------- pass 2: bn1-normalize + relu + conv2 + BN2 partial sums --------
    y2, st2 = pl.pallas_call(
        functools.partial(pass2_kernel, Ho=Ho, Wo=Wo, Cp=Cp, tile_n=tile_n),
        grid=(T,),
        in_specs=[tile_spec, full_spec((1, Cp)), full_spec((1, Cp)),
                  full_spec(w2col.shape)],
        out_specs=[tile_spec, stat_spec],
        out_shape=[act(jnp.bfloat16),                        # Y2 = conv2(.) (pre-BN)
                   jax.ShapeDtypeStruct((T, 8, 2 * Cp), jnp.float32)],
        scratch_shapes=[pltpu.VMEM((tile_n, Ho + 2, Wo + 2, Cp), jnp.bfloat16)],
        compiler_params=cparams,
    )(y1, scale1, shift1, w2col)

    scale2, shift2 = bn_fold(st2, g2, be2)

    # -------- pass 3: bn2-normalize + residual add + relu --------
    out = pl.pallas_call(
        functools.partial(pass3_kernel, Ho=Ho, Wo=Wo, Cp=Cp, tile_n=tile_n),
        grid=(T,),
        in_specs=[tile_spec, tile_spec, full_spec((1, Cp)), full_spec((1, Cp))],
        out_specs=tile_spec,
        out_shape=act(out_dtype),
        compiler_params=cparams,
    )(y2, sc, scale2, shift2)

    out = out[..., :Cout]                        # drop the lane padding
    return jnp.transpose(out, (0, 3, 1, 2))      # NHWC -> NCHW


# ----------------------------------------------------------------------------
# pure-JAX f32 reference (XLA convs) mirroring the PyTorch forward
# ----------------------------------------------------------------------------
def residual_reference(x, params, *, strides=1):
    eps = EPS

    def conv(x, w_hwio, b, s, pad):
        o = jax.lax.conv_general_dilated(
            x, w_hwio, (s, s), [(pad, pad), (pad, pad)],
            dimension_numbers=("NCHW", "HWIO", "NCHW"))
        return o + b.reshape(1, -1, 1, 1)

    def bn(x, g, be):
        mu = x.mean(axis=(0, 2, 3), keepdims=True)
        var = ((x - mu) ** 2).mean(axis=(0, 2, 3), keepdims=True)
        return ((x - mu) * jax.lax.rsqrt(var + eps) * g.reshape(1, -1, 1, 1)
                + be.reshape(1, -1, 1, 1))

    y = jax.nn.relu(bn(conv(x, params["w1"], params["b1"], strides, 1),
                       params["g1"], params["be1"]))
    y = bn(conv(y, params["w2"], params["b2"], 1, 1), params["g2"], params["be2"])
    if params["use_1x1conv"]:
        cin, cout = params["w3"].shape
        sc = conv(x, params["w3"].reshape(1, 1, cin, cout), params["b3"], strides, 0)
    else:
        sc = x
    return jax.nn.relu(y + sc)


if __name__ == "__main__":
    key = jax.random.PRNGKey(0)
    kx, kp1, kp2 = jax.random.split(key, 3)

    x = jax.random.normal(kx, (2, 4, 16, 16), jnp.float32)

    # bf16 activations / matmul inputs with f32 accumulation -> bf16-level tol.
    TOL = 3e-2

    # Case 1: identity shortcut (use_1x1conv=False, strides=1).
    # tile_n=1 on purpose: exercises the multi-tile grid and the cross-tile
    # BN partial-sum reduction.
    params1 = init_residual_params(kp1, 4, 4, use_1x1conv=False)
    out1 = jax.block_until_ready(residual_forward(x, params1, strides=1, tile_n=1))
    ref1 = residual_reference(x, params1, strides=1)
    np.testing.assert_allclose(np.asarray(jnp.asarray(out1, jnp.float32)),
                               np.asarray(ref1), rtol=TOL, atol=TOL)

    # Case 2: projection shortcut (use_1x1conv=True, strides=2)
    params2 = init_residual_params(kp2, 4, 8, use_1x1conv=True)
    out2 = jax.block_until_ready(residual_forward(x, params2, strides=2, tile_n=1))
    ref2 = residual_reference(x, params2, strides=2)
    np.testing.assert_allclose(np.asarray(jnp.asarray(out2, jnp.float32)),
                               np.asarray(ref2), rtol=TOL, atol=TOL)

    print("KERNEL_OK")
</pallas_src>

<mosaic_0001>
module attributes {stable_mosaic.version = 11 : i64} {
  func.func @pass1_kernel(%arg0: i32, %arg1: memref<1x18x18x128xbf16, #tpu.memory_space<vmem>>, %arg2: memref<1152x128xbf16, #tpu.memory_space<vmem>>, %arg3: memref<1x16x16x128xbf16, #tpu.memory_space<vmem>>, %arg4: memref<1x16x16x128xbf16, #tpu.memory_space<vmem>>, %arg5: memref<1x8x256xf32, #tpu.memory_space<vmem>>) attributes {dimension_semantics = [#tpu.dimension_semantics<parallel>], iteration_bounds = array<i64: 2>, scalar_prefetch = 0 : i64, scratch_operands = 0 : i64, tpu.core_type = #tpu.core_type<tc>, window_params = [{transform_indices = @transform_0, window_bounds = array<i64: 1, 18, 18, 128>}, {pipeline_mode = #tpu.pipeline_mode<synchronous>, transform_indices = @transform_1, window_bounds = array<i64: 1152, 128>}, {transform_indices = @transform_2, window_bounds = array<i64: 1, 16, 16, 128>}, {transform_indices = @transform_3, window_bounds = array<i64: 1, 16, 16, 128>}, {transform_indices = @transform_4, window_bounds = array<i64: 1, 8, 256>}]} {
    %c0 = arith.constant 0 : index
    %c0_0 = arith.constant 0 : index
    %c0_1 = arith.constant 0 : index
    %c0_2 = arith.constant 0 : index
    %0 = vector.load %arg1[%c0, %c0_0, %c0_1, %c0_2] : memref<1x18x18x128xbf16, #tpu.memory_space<vmem>>, vector<1x16x16x128xbf16>
    %1 = vector.shape_cast %0 : vector<1x16x16x128xbf16> to vector<256x128xbf16>
    %c0_3 = arith.constant 0 : index
    %c0_4 = arith.constant 0 : index
    %c1 = arith.constant 1 : index
    %c0_5 = arith.constant 0 : index
    %2 = vector.load %arg1[%c0_3, %c0_4, %c1, %c0_5] : memref<1x18x18x128xbf16, #tpu.memory_space<vmem>>, vector<1x16x16x128xbf16>
    %3 = vector.shape_cast %2 : vector<1x16x16x128xbf16> to vector<256x128xbf16>
    %c0_6 = arith.constant 0 : index
    %c0_7 = arith.constant 0 : index
    %c2 = arith.constant 2 : index
    %c0_8 = arith.constant 0 : index
    %4 = vector.load %arg1[%c0_6, %c0_7, %c2, %c0_8] : memref<1x18x18x128xbf16, #tpu.memory_space<vmem>>, vector<1x16x16x128xbf16>
    %5 = vector.shape_cast %4 : vector<1x16x16x128xbf16> to vector<256x128xbf16>
    %c0_9 = arith.constant 0 : index
    %c1_10 = arith.constant 1 : index
    %c0_11 = arith.constant 0 : index
    %c0_12 = arith.constant 0 : index
    %6 = vector.load %arg1[%c0_9, %c1_10, %c0_11, %c0_12] : memref<1x18x18x128xbf16, #tpu.memory_space<vmem>>, vector<1x16x16x128xbf16>
    %7 = vector.shape_cast %6 : vector<1x16x16x128xbf16> to vector<256x128xbf16>
    %c0_13 = arith.constant 0 : index
    %c1_14 = arith.constant 1 : index
    %c1_15 = arith.constant 1 : index
    %c0_16 = arith.constant 0 : index
    %8 = vector.load %arg1[%c0_13, %c1_14, %c1_15, %c0_16] : memref<1x18x18x128xbf16, #tpu.memory_space<vmem>>, vector<1x16x16x128xbf16>
    %9 = vector.shape_cast %8 : vector<1x16x16x128xbf16> to vector<256x128xbf16>
    %c0_17 = arith.constant 0 : index
    %c1_18 = arith.constant 1 : index
    %c2_19 = arith.constant 2 : index
    %c0_20 = arith.constant 0 : index
    %10 = vector.load %arg1[%c0_17, %c1_18, %c2_19, %c0_20] : memref<1x18x18x128xbf16, #tpu.memory_space<vmem>>, vector<1x16x16x128xbf16>
    %11 = vector.shape_cast %10 : vector<1x16x16x128xbf16> to vector<256x128xbf16>
    %c0_21 = arith.constant 0 : index
    %c2_22 = arith.constant 2 : index
    %c0_23 = arith.constant 0 : index
    %c0_24 = arith.constant 0 : index
    %12 = vector.load %arg1[%c0_21, %c2_22, %c0_23, %c0_24] : memref<1x18x18x128xbf16, #tpu.memory_space<vmem>>, vector<1x16x16x128xbf16>
    %13 = vector.shape_cast %12 : vector<1x16x16x128xbf16> to vector<256x128xbf16>
    %c0_25 = arith.constant 0 : index
    %c2_26 = arith.constant 2 : index
    %c1_27 = arith.constant 1 : index
    %c0_28 = arith.constant 0 : index
    %14 = vector.load %arg1[%c0_25, %c2_26, %c1_27, %c0_28] : memref<1x18x18x128xbf16, #tpu.memory_space<vmem>>, vector<1x16x16x128xbf16>
    %15 = vector.shape_cast %14 : vector<1x16x16x128xbf16> to vector<256x128xbf16>
    %c0_29 = arith.constant 0 : index
    %c2_30 = arith.constant 2 : index
    %c2_31 = arith.constant 2 : index
    %c0_32 = arith.constant 0 : index
    %16 = vector.load %arg1[%c0_29, %c2_30, %c2_31, %c0_32] : memref<1x18x18x128xbf16, #tpu.memory_space<vmem>>, vector<1x16x16x128xbf16>
    %17 = vector.shape_cast %16 : vector<1x16x16x128xbf16> to vector<256x128xbf16>
    %18 = tpu.concatenate %1, %3, %5, %7, %9, %11, %13, %15, %17 in 1 : vector<256x128xbf16>, vector<256x128xbf16>, vector<256x128xbf16>, vector<256x128xbf16>, vector<256x128xbf16>, vector<256x128xbf16>, vector<256x128xbf16>, vector<256x128xbf16>, vector<256x128xbf16> -> vector<256x1152xbf16>
    %c0_33 = arith.constant 0 : index
    %c0_34 = arith.constant 0 : index
    %19 = vector.load %arg2[%c0_33, %c0_34] : memref<1152x128xbf16, #tpu.memory_space<vmem>>, vector<1152x128xbf16>
    %cst = arith.constant dense<0.000000e+00> : vector<256x128xf32>
    %20 = tpu.matmul %18, %19, %cst {dimension_numbers = #tpu.dot_dimension_numbers<[1], [0], [0], [1], [0, 0, 1, 1], [], []>} : vector<256x1152xbf16>, vector<1152x128xbf16>, vector<256x128xf32> -> vector<256x128xf32>
    %21 = arith.mulf %20, %20 : vector<256x128xf32>
    %22 = tpu.concatenate %20, %21 in 1 : vector<256x128xf32>, vector<256x128xf32> -> vector<256x256xf32>
    %23 = arith.truncf %22 : vector<256x256xf32> to vector<256x256xbf16>
    %cst_35 = arith.constant 1.000000e+00 : bf16
    %24 = vector.broadcast %cst_35 : bf16 to vector<8x256xbf16>
    %cst_36 = arith.constant dense<0.000000e+00> : vector<8x256xf32>
    %25 = tpu.matmul %24, %23, %cst_36 {dimension_numbers = #tpu.dot_dimension_numbers<[1], [0], [0], [1], [0, 0, 1, 1], [], []>} : vector<8x256xbf16>, vector<256x256xbf16>, vector<8x256xf32> -> vector<8x256xf32>
    %26 = vector.shape_cast %25 : vector<8x256xf32> to vector<1x8x256xf32>
    %c0_37 = arith.constant 0 : index
    %c0_38 = arith.constant 0 : index
    %c0_39 = arith.constant 0 : index
    %27 = vector.load %arg5[%c0_37, %c0_38, %c0_39] : memref<1x8x256xf32, #tpu.memory_space<vmem>>, vector<1x8x256xf32>
    tpu.vector_store %arg5[%c0_37, %c0_38, %c0_39], %26 {strides = array<i32>} : memref<1x8x256xf32, #tpu.memory_space<vmem>>, vector<1x8x256xf32>,
    %28 = arith.truncf %20 : vector<256x128xf32> to vector<256x128xbf16>
    %29 = vector.shape_cast %28 : vector<256x128xbf16> to vector<1x16x16x128xbf16>
    %c0_40 = arith.constant 0 : index
    %c0_41 = arith.constant 0 : index
    %c0_42 = arith.constant 0 : index
    %c0_43 = arith.constant 0 : index
    %30 = vector.load %arg3[%c0_40, %c0_41, %c0_42, %c0_43] : memref<1x16x16x128xbf16, #tpu.memory_space<vmem>>, vector<1x16x16x128xbf16>
    tpu.vector_store %arg3[%c0_40, %c0_41, %c0_42, %c0_43], %29 {strides = array<i32>} : memref<1x16x16x128xbf16, #tpu.memory_space<vmem>>, vector<1x16x16x128xbf16>,
    %31 = vector.shape_cast %9 : vector<256x128xbf16> to vector<1x16x16x128xbf16>
    %c0_44 = arith.constant 0 : index
    %c0_45 = arith.constant 0 : index
    %c0_46 = arith.constant 0 : index
    %c0_47 = arith.constant 0 : index
    %32 = vector.load %arg4[%c0_44, %c0_45, %c0_46, %c0_47] : memref<1x16x16x128xbf16, #tpu.memory_space<vmem>>, vector<1x16x16x128xbf16>
    tpu.vector_store %arg4[%c0_44, %c0_45, %c0_46, %c0_47], %31 {strides = array<i32>} : memref<1x16x16x128xbf16, #tpu.memory_space<vmem>>, vector<1x16x16x128xbf16>,
    return
  }
  func.func @transform_0(%arg0: i32) -> (i32, i32, i32, i32) {
    %c0_i32 = arith.constant 0 : i32
    %c0_i32_0 = arith.constant 0 : i32
    %c0_i32_1 = arith.constant 0 : i32
    %c0_i32_2 = arith.constant 0 : i32
    return %arg0, %c0_i32, %c0_i32_0, %c0_i32_1 : i32, i32, i32, i32
  }
  func.func @transform_1(%arg0: i32) -> (i32, i32) {
    %c0_i32 = arith.constant 0 : i32
    %c0_i32_0 = arith.constant 0 : i32
    %c0_i32_1 = arith.constant 0 : i32
    return %c0_i32, %c0_i32_0 : i32, i32
  }
  func.func @transform_2(%arg0: i32) -> (i32, i32, i32, i32) {
    %c0_i32 = arith.constant 0 : i32
    %c0_i32_0 = arith.constant 0 : i32
    %c0_i32_1 = arith.constant 0 : i32
    %c0_i32_2 = arith.constant 0 : i32
    return %arg0, %c0_i32, %c0_i32_0, %c0_i32_1 : i32, i32, i32, i32
  }
  func.func @transform_3(%arg0: i32) -> (i32, i32, i32, i32) {
    %c0_i32 = arith.constant 0 : i32
    %c0_i32_0 = arith.constant 0 : i32
    %c0_i32_1 = arith.constant 0 : i32
    %c0_i32_2 = arith.constant 0 : i32
    return %arg0, %c0_i32, %c0_i32_0, %c0_i32_1 : i32, i32, i32, i32
  }
  func.func @transform_4(%arg0: i32) -> (i32, i32, i32) {
    %c0_i32 = arith.constant 0 : i32
    %c0_i32_0 = arith.constant 0 : i32
    %c0_i32_1 = arith.constant 0 : i32
    return %arg0, %c0_i32, %c0_i32_0 : i32, i32, i32
  }
}

</mosaic_0001>

<bundles_post_ra>
// kernel: tpu_custom_call.1
= control target key start
LH: loop header
LB: loop body
LE: loop exit
PB: predicated region body
PF: predicated region fallthrough
CT: control target
= control target key end

     0   :  { %s7625_s0 = inlined_call_operand.vmem [shape: bf16[2,18,18,128], index: 0, kind: input, shape index: {}]   ;;  %s7626_s1 = inlined_call_operand.vmem [shape: bf16[1152,128], index: 1, kind: input, shape index: {}]   ;;  %s7627_s2 = inlined_call_operand.hbm [shape: bf16[2,16,16,128], index: 2, kind: output, shape index: {0}]   ;;  %s7628_s3 = inlined_call_operand.hbm [shape: bf16[2,16,16,128], index: 3, kind: output, shape index: {1}]   ;;  %s7629_s4 = inlined_call_operand.hbm [shape: f32[2,8,256], index: 4, kind: output, shape index: {2}]  }
   0x1   :  { %7631 = sst [smem:[#allocation20_spill]] %s7625_s0 }
   0x2   :  { %10 = vsyncpa [#allocation3], 0 }
   0x3   :  { %12 = vsyncpa [#allocation3 + $0x1], 0 }
   0x4   :  { %13 = vsyncpa [#allocation5], 0 }
   0x5   :  { %15 = vsyncpa [#allocation5 + $0x1], 0  ;;  %s5623_s15 = smov 0   ;;  %s5625_s16 = smov 0  }
   0x6   :  { %s5627_s17 = smov 0   ;;  %s5629_s18 = smov 0  }
   0x7 LB: > { %s5644_s19 = sadd.s32 4294967295, %s5593_s18   ;;  %s7630_s20 = sadd.s32 4294967294, %s5593_s18   ;;  %s5593_s18 = sphi %s5629_s18, %s7692_s18   ;;  %s5589_s17 = sphi %s5627_s17, %s7691_s17   ;;  %s5585_s16 = sphi %s5625_s16, %s7690_s16   ;;  %s5581_s15 = sphi %s5623_s15, %s7689_s15  }
   0x8   : > { %s5648_s21 = sadd.s32 1, %s5593_s18   ;;  %s75_s22 = sadd.s32 1, %s5589_s17 }
   0x9   : > { %s72_s23 = ssub.s32 %s5593_s18, %s5648_s21  ;;  %p85_p0 = scmp.ne.s32.totalorder %s5589_s17, %s5585_s16 }
   0xa   : > { %p73_p1 = scmp.eq.s32.totalorder %s72_s23, 0  ;;  %p86_p2 = scmp.eq.s32.totalorder %s5644_s19, 1 }
   0xb   : > { %p91_p3 = scmp.ne.s32.totalorder %s5585_s16, %s5581_s15  ;;  %p92_p4 = scmp.eq.s32.totalorder %s7630_s20, 1 }
   0xc   : > { %s5661_s24 = scalar_select %p73_p1, %s5589_s17, %s75_s22  }
   0xd   : > { %p5663_p5 = por %p86_p2, %p85_p0  ;;  %p5667_p6 = por %p92_p4, %p91_p3 }
   0xe   : > { %p4480_p7 = scmp.ge.s32.totalorder %s5593_s18, 1  ;;  %p173_p8 = scmp.lt.s32.totalorder %s5593_s18, 3 }
  0x10   : > { %p174_p9 = pnand %p4480_p7, %p173_p8 }
  0x12   : > { %177 = sbr.rel (%p174_p9) target bundleno = 956 (0x3bc), region = 28 }
  0x17   : > { %v5207_v0 = vld [vmem:[%s7626_s1 + $0x38] sm:$0xff]  ;;  %p209_p10 = scmp.lt.s32.totalorder %s5644_s19, 1  ;;  %v5206_v2 = vld [vmem:[%s7626_s1 + $0x30] sm:$0xff]  ;;  %v5205_v4 = vld [vmem:[%s7626_s1 + $0x28] sm:$0xff]  ;;  %s7634_s0 = sld [smem:[#allocation20_spill]]  ;;  %vm714_vm3 = vcmask 1042432  }
  0x18   : > { %v5215_v1 = vld [vmem:[%s7626_s1 + $0x78] sm:$0xff]  ;;  %3247 = vmatpush.bf16.msra.mxu0 %v5207_v0  ;;  %5370 = vmatpush.bf16.msra.mxu2 %v5207_v0  ;;  %v5214_v3 = vld [vmem:[%s7626_s1 + $0x70] sm:$0xff]  ;;  %v5213_v5 = vld [vmem:[%s7626_s1 + $0x68] sm:$0xff]  ;;  %vm263_vm0 = vsmask.f32 3328  ;;  %s5892_s8 = sand.u32 1, %s5585_s16  }
  0x19   : > { %s210_s7 = scalar_select %p209_p10, %s5644_s19, 1  ;;  %5371 = vmatpush.bf16.msra.mxu3 %v5207_v0  ;;  %3336 = vmatpush.bf16.msra.mxu1 %v5215_v1  ;;  %v5204_v12 = vld [vmem:[%s7626_s1 + $0x20] sm:$0xff]  ;;  %v5203_v19 = vld [vmem:[%s7626_s1 + $0x18] sm:$0xff]  ;;  %vm264_vm1 = vsmask.f32 7440  ;;  %v5202_v24 = vld [vmem:[%s7626_s1 + $0x10] sm:$0xff] }
  0x1a   : > { %v5212_v13 = vld [vmem:[%s7626_s1 + $0x60] sm:$0xff]  ;;  %v5211_v20 = vld [vmem:[%s7626_s1 + $0x58] sm:$0xff]  ;;  %v5210_v25 = vld [vmem:[%s7626_s1 + $0x50] sm:$0xff]  ;;  %s4481_s9 = sshll.u32 %s5892_s8, 7  ;;  %vm715_vm4 = vcmask 1046532   ;;  %s4299_s5 = sand.u32 1, %s5644_s19  }
  0x1b   : > { %s5386_s10 = smul.u32 216, %s210_s7  ;;  %vm5727_vm2 = vmor %vm263_vm0, %vm264_vm1  ;;  %v5201_v32 = vld [vmem:[%s7626_s1 + $0x8] sm:$0xff]  ;;  %v5200_v40 = vld [vmem:[%s7626_s1] sm:$0xff]  ;;  %s5918_s12 = scalar_lea.vmem [#allocation4], %s4481_s9 }
  0x1c   : > { %3248 = vmatpush.bf16.msra.mxu0 %v5206_v2  ;;  %5372 = vmatpush.bf16.msra.mxu2 %v5206_v2  ;;  %v5209_v35 = vld [vmem:[%s7626_s1 + $0x48] sm:$0xff]  ;;  %v5208_v43 = vld [vmem:[%s7626_s1 + $0x40] sm:$0xff]  ;;  %vm5927_vm5 = vmor %vm714_vm3, %vm715_vm4  ;;  %s7228_s28 = scalar_lea.vmem [#allocation2], %s4481_s9  ;;  %s4334_s6 = sshll.u32 %s5918_s12, 4  ;;  %s4335_s6 = int_to_ptr.vmem [resolvable:$true] %s4334_s6 }
  0x1d   : > { %s5693_s22 = scalar_lea.vmem %s7634_s0, %s5386_s10  ;;  %5373 = vmatpush.bf16.msra.mxu3 %v5206_v2  ;;  %3337 = vmatpush.bf16.msra.mxu1 %v5214_v3  ;;  %s4317_s14 = sshll.u32 %s7228_s28, 4  ;;  %s4318_s14 = int_to_ptr.vmem [resolvable:$true] %s4317_s14 }
  0x1e   : > { %v215_v6 = vld [vmem:[%s5693_s22] sm:$0xf]  ;;  %v5700_v7 = vld [vmem:[%s5693_s22 + $0x4] sm:$0xf]  ;;  %v5711_v18 = vld [vmem:[%s5693_s22 + $0x8] sm:$0x1] }
  0x1f   : > { %v267_v8 = vshrl.u32 %v215_v6, 16  ;;  %v270_v9 = vshll.u32 %v215_v6, 16  ;;  %v276_v10 = vshll.u32 %v5700_v7, 16  ;;  %v280_v11 = vshrl.u32 %v5700_v7, 16  ;;  %v217_v29 = vld [vmem:[%s5693_s22 + $0xc] sm:$0xf] }
  0x20   : > { %3249 = vmatpush.bf16.msra.mxu0 %v5205_v4  ;;  %5374 = vmatpush.bf16.msra.mxu2 %v5205_v4  ;;  %v286_v23 = vshll.u32 %v5711_v18, 16  ;;  %v5732_v31 = vld [vmem:[%s5693_s22 + $0x10] sm:$0xf]  ;;  %v291_v33 = vshrl.u32 %v217_v29, 16  ;;  %v294_v34 = vshll.u32 %v217_v29, 16  ;;  %v5152_v49 = vld [vmem:[%s5693_s22] sm:$0xff] }
  0x21   : > { %5375 = vmatpush.bf16.msra.mxu3 %v5205_v4  ;;  %3338 = vmatpush.bf16.msra.mxu1 %v5213_v5  ;;  %v269_v14 = vrot.slane %v267_v8, 4  ;;  %v272_v15 = vrot.slane %v270_v9, 5  ;;  %v278_v16 = vrot.slane %v276_v10, 5  ;;  %v282_v17 = vrot.slane %v280_v11, 4  ;;  %v5753_v48 = vld [vmem:[%s5693_s22 + $0x14] sm:$0x1] }
  0x22   : > { %v288_v28 = vrot.slane %v286_v23, 5  ;;  %v300_v38 = vshll.u32 %v5732_v31, 16  ;;  %v304_v39 = vshrl.u32 %v5732_v31, 16  ;;  %v293_v44 = vrot.slane %v291_v33, 4  ;;  %v5158_v50 = vld [vmem:[%s5693_s22 + $0x48] sm:$0xff]  ;;  %s7566_s23 = scalar_lea.sflag [#allocation5], %s4299_s5 }
  0x23   : > { %v273_v21 = vor.u32 %v272_v15, %v269_v14  ;;  %v283_v22 = vor.u32 %v282_v17, %v278_v16  ;;  %v296_v45 = vrot.slane %v294_v34, 5  ;;  %v5163_v51 = vld [vmem:[%s5693_s22 + $0x84] sm:$0xff]  ;;  %v310_v55 = vshll.u32 %v5753_v48, 16  ;;  %v219_v59 = vld [vmem:[%s5693_s22 + $0x18] sm:$0xf]  ;;  %v5153_v11 = vld [vmem:[%s5693_s22 + $0xc] sm:$0xff] }
  0x24   : > { %3250 = vmatpush.bf16.msra.mxu0 %v5204_v12  ;;  %5376 = vmatpush.bf16.msra.mxu2 %v5204_v12  ;;  %v302_v46 = vrot.slane %v300_v38, 5  ;;  %v306_v47 = vrot.slane %v304_v39, 4  ;;  %v5761_v60 = vld [vmem:[%s5693_s22 + $0x1c] sm:$0xf]  ;;  %v315_v61 = vshrl.u32 %v219_v59, 16  ;;  %v318_v62 = vshll.u32 %v219_v59, 16 }
  0x25   : > { %5377 = vmatpush.bf16.msra.mxu3 %v5204_v12  ;;  %3339 = vmatpush.bf16.msra.mxu1 %v5212_v13  ;;  %v274_v26 = vrot.slane %v273_v21, 4  ;;  %v284_v27 = vrot.slane %v283_v22, 4  ;;  %v297_v53 = vor.u32 %v296_v45, %v293_v44  ;;  %v312_v58 = vrot.slane %v310_v55, 5  ;;  %v5770_v10 = vld [vmem:[%s5693_s22 + $0x20] sm:$0x1]  ;;  %v5159_v12 = vld [vmem:[%s5693_s22 + $0x54] sm:$0xff] }
  0x26   : > { %v307_v54 = vor.u32 %v306_v47, %v302_v46  ;;  %v324_v1 = vshll.u32 %v5761_v60, 16  ;;  %v328_v2 = vshrl.u32 %v5761_v60, 16  ;;  %v317_v5 = vrot.slane %v315_v61, 4  ;;  %v5164_v13 = vld [vmem:[%s5693_s22 + $0x90] sm:$0xff]  ;;  %v5220_v44 = vld [vmem:[%s7626_s1 + $0xa0] sm:$0xff]  ;;  %v5154_v47 = vld [vmem:[%s5693_s22 + $0x18] sm:$0xff] }
  0x27   : > { %v279_v36 = vsel %vm5727_vm2, %v274_v26, %v278_v16  ;;  %v289_v37 = vsel %vm5727_vm2, %v284_v27, %v288_v28  ;;  %v298_v56 = vrot.slane %v297_v53, 4  ;;  %v320_v6 = vrot.slane %v318_v62, 5  ;;  %v5230_v26 = vld [vmem:[%s7626_s1 + $0xf0] sm:$0xff]  ;;  %v5790_v27 = vld [vmem:[%s5693_s22 + $0x28] sm:$0xf]  ;;  %v5228_v45 = vld [vmem:[%s7626_s1 + $0xe0] sm:$0xff] }
  0x28   : > { %3251 = vmatpush.bf16.msra.mxu0 %v5203_v19  ;;  %5378 = vmatpush.bf16.msra.mxu2 %v5203_v19  ;;  %v2127_v41 = vunpack.c.l.b16 %v279_v36  ;;  %v2128_v42 = vunpack.c.l.b16 %v289_v37  ;;  %v308_v57 = vrot.slane %v307_v54, 4  ;;  %v326_v8 = vrot.slane %v324_v1, 5  ;;  %v5221_v36 = vld [vmem:[%s7626_s1 + $0xa8] sm:$0xff]  ;;  %v5219_v55 = vld [vmem:[%s7626_s1 + $0x98] sm:$0xff]  ;;  %v223_v59 = vld [vmem:[%s5693_s22 + $0x30] sm:$0xf] }
  0x29   : > { %5379 = vmatpush.bf16.msra.mxu3 %v5203_v19  ;;  %3340 = vmatpush.bf16.msra.mxu1 %v5211_v20  ;;  %v303_v63 = vsel %vm5727_vm2, %v298_v56, %v302_v46  ;;  %v330_v9 = vrot.slane %v328_v2, 4  ;;  %v321_v15 = vor.u32 %v320_v6, %v317_v5  ;;  %v334_v17 = vshll.u32 %v5770_v10, 16  ;;  %v5223_v19 = vld [vmem:[%s7626_s1 + $0xb8] sm:$0xff]  ;;  %v5229_v37 = vld [vmem:[%s7626_s1 + $0xe8] sm:$0xff]  ;;  %v5226_v1 = vld [vmem:[%s7626_s1 + $0xd0] sm:$0xff] }
  0x2a   : > { %v2159_v52 = vpack.c.b16 %v2128_v42, %v2127_v41  ;;  %v313_v0 = vsel %vm5727_vm2, %v308_v57, %v312_v58  ;;  %v2129_v3 = vunpack.c.l.b16 %v303_v63  ;;  %v5231_v20 = vld [vmem:[%s7626_s1 + $0xf8] sm:$0xff]  ;;  %v348_v34 = vshll.u32 %v5790_v27, 16  ;;  %v5811_v46 = vld [vmem:[%s5693_s22 + $0x2c] sm:$0x1]  ;;  %v5828_v63 = vld [vmem:[%s5693_s22 + $0x34] sm:$0xf] }
  0x2b   : > { %v2130_v4 = vunpack.c.l.b16 %v313_v0  ;;  %v331_v16 = vor.u32 %v330_v9, %v326_v8  ;;  %v322_v21 = vrot.slane %v321_v15, 4  ;;  %v336_v23 = vrot.slane %v334_v17, 5  ;;  %v5227_v56 = vld [vmem:[%s7626_s1 + $0xd8] sm:$0xff]  ;;  %v5218_v0 = vld [vmem:[%s7626_s1 + $0x90] sm:$0xff] }
  0x2c   : > { %3252 = vmatpush.bf16.msra.mxu0 %v5202_v24  ;;  %5380 = vmatpush.bf16.msra.mxu2 %v5202_v24  ;;  %v350_v42 = vrot.slane %v348_v34, 5  ;;  %v358_v54 = vshll.u32 %v5811_v46, 16  ;;  %v5239_v57 = vld [vmem:[%s7626_s1 + $0x138] sm:$0xff]  ;;  %v5238_v2 = vld [vmem:[%s7626_s1 + $0x130] sm:$0xff]  ;;  %v372_v5 = vshll.u32 %v5828_v63, 16  ;;  %v376_v6 = vshrl.u32 %v5828_v63, 16 }
  0x2d   : > { %5381 = vmatpush.bf16.msra.mxu3 %v5202_v24  ;;  %3341 = vmatpush.bf16.msra.mxu1 %v5210_v25  ;;  %v2160_v14 = vpack.c.b16 %v2130_v4, %v2129_v3  ;;  %v332_v22 = vrot.slane %v331_v16, 4  ;;  %v221_v24 = vld [vmem:[%s5693_s22 + $0x24] sm:$0xf]  ;;  %v5222_v25 = vld [vmem:[%s7626_s1 + $0xb0] sm:$0xff]  ;;  %v363_v3 = vshrl.u32 %v223_v59, 16  ;;  %v366_v4 = vshll.u32 %v223_v59, 16 }
  0x2e   : > { %v339_v28 = vshrl.u32 %v221_v24, 16  ;;  %v342_v29 = vshll.u32 %v221_v24, 16  ;;  %v360_v62 = vrot.slane %v358_v54, 5  ;;  %v5236_v24 = vld [vmem:[%s7626_s1 + $0x120] sm:$0xff]  ;;  %v4533_v59 = vld [vmem:[%s5693_s22 + $0x14] sm:$0x1] }
  0x2f   : > { %v337_v33 = vsel %vm5727_vm2, %v332_v22, %v336_v23  ;;  %v368_v15 = vrot.slane %v366_v4, 5  ;;  %v5216_v22 = vld [vmem:[%s7626_s1 + $0x80] sm:$0xff] }
  0x30   : > { %3253 = vmatpush.bf16.msra.mxu0 %v5201_v32  ;;  %5382 = vmatpush.bf16.msra.mxu2 %v5201_v32  ;;  %v2132_v39 = vunpack.c.l.b16 %v337_v33  ;;  %v344_v41 = vrot.slane %v342_v29, 5  ;;  %v5224_v23 = vld [vmem:[%s7626_s1 + $0xc0] sm:$0xff]  ;;  %v5166_v29 = vld [vmem:[%s5693_s22 + $0xa8] sm:$0xff] }
  0x31   : > { %5383 = vmatpush.bf16.msra.mxu3 %v5201_v32  ;;  %3342 = vmatpush.bf16.msra.mxu1 %v5209_v35  ;;  %v327_v32 = vsel %vm5727_vm2, %v322_v21, %v326_v8  ;;  %v352_v35 = vshrl.u32 %v5790_v27, 16  ;;  %v5855_v21 = vld [vmem:[%s5693_s22 + $0x38] sm:$0x1] }
  0x32   : > { %v2131_v38 = vunpack.c.l.b16 %v327_v32  ;;  %v382_v34 = vshll.u32 %v5855_v21, 16 }
  0x34   : > { %3254 = vmatpush.bf16.msra.mxu0 %v5200_v40  ;;  %5384 = vmatpush.bf16.msra.mxu2 %v5200_v40 }
  0x35   : > { %5385 = vmatpush.bf16.msra.mxu3 %v5200_v40  ;;  %3343 = vmatpush.bf16.msra.mxu1 %v5208_v43  ;;  %v341_v40 = vrot.slane %v339_v28, 4  ;;  %v354_v43 = vrot.slane %v352_v35, 4 }
  0x37   : > { %3255 = vmatmul.bf16.vlgmr.msra.gmra.mxu0 %v5152_v49  ;;  %3285 = vmatmul.bf16.vlgmr.msra.gmra.mxu2 %v5158_v50  ;;  %v5160_v49 = vld [vmem:[%s5693_s22 + $0x60] sm:$0xff]  ;;  %v355_v53 = vor.u32 %v354_v43, %v350_v42 }
  0x38   : > { %3310 = vmatmul.bf16.vlgmr.msra.gmra.mxu3 %v5163_v51  ;;  %3344 = vmatmul.bf16.vlgmr.msra.gmra.mxu1 %v2159_v52  ;;  %v5165_v50 = vld [vmem:[%s5693_s22 + $0x9c] sm:$0xff]  ;;  %v2161_v51 = vpack.c.b16 %v2132_v39, %v2131_v38  ;;  %v345_v52 = vor.u32 %v344_v41, %v341_v40  ;;  %v384_v38 = vrot.slane %v382_v34, 5  ;;  %v5234_v41 = vld [vmem:[%s7626_s1 + $0x110] sm:$0xff] }
  0x39   : > { %3425 = vmatpush.bf16.msrb.mxu2 %v5223_v19  ;;  %3514 = vmatpush.bf16.msrb.mxu3 %v5231_v20  ;;  %v356_v61 = vrot.slane %v355_v53, 4  ;;  %v374_v19 = vrot.slane %v372_v5, 5  ;;  %v378_v20 = vrot.slane %v376_v6, 4  ;;  %v225_v39 = vld [vmem:[%s5693_s22 + $0x3c] sm:$0xf] }
  0x3a   : > { %v346_v58 = vrot.slane %v345_v52, 4  ;;  %3603 = vmatpush.bf16.msrb.mxu0 %v5239_v57  ;;  %v5875_v40 = vld [vmem:[%s5693_s22 + $0x40] sm:$0xf] }
  0x3b   : > { %v361_v9 = vsel %vm5727_vm2, %v356_v61, %v360_v62  ;;  %v379_v33 = vor.u32 %v378_v20, %v374_v19  ;;  %v396_v52 = vshll.u32 %v5875_v40, 16  ;;  %v400_v53 = vshrl.u32 %v5875_v40, 16 }
  0x3c   : > { %v351_v8 = vsel %vm5727_vm2, %v346_v58, %v350_v42  ;;  %v2134_v17 = vunpack.c.l.b16 %v361_v9  ;;  %v4501_v42 = vld [vmem:[%s5693_s22 + $0xc] sm:$0xf]  ;;  %v719_v20 = vrot.slane %v5700_v7, 5 }
  0x3d   : > { %3426 = vmatpush.bf16.msrb.mxu2 %v5222_v25  ;;  %3515 = vmatpush.bf16.msrb.mxu3 %v5230_v26  ;;  %v2133_v16 = vunpack.c.l.b16 %v351_v8  ;;  %v5155_v25 = vld [vmem:[%s5693_s22 + $0x24] sm:$0xff]  ;;  %v5161_v26 = vld [vmem:[%s5693_s22 + $0x6c] sm:$0xff]  ;;  %v5895_v6 = vrot.slane %v396_v52, 5  ;;  %v402_v8 = vrot.slane %v400_v53, 4 }
  0x3e   : > { %3604 = vmatpush.bf16.msrb.mxu0 %v5238_v2  ;;  %v5233_v58 = vld [vmem:[%s7626_s1 + $0x108] sm:$0xff]  ;;  %v898_v2 = vshll.u32 %v4533_v59, 16  ;;  %v721_v34 = vrot.slane %v719_v20, 4 }
  0x3f   : > { %v2162_v32 = vpack.c.b16 %v2134_v17, %v2133_v16  ;;  %v5162_v16 = vld [vmem:[%s5693_s22 + $0x78] sm:$0xff] }
  0x41   : > { %3427 = vmatpush.bf16.msrb.mxu2 %v5221_v36  ;;  %3516 = vmatpush.bf16.msrb.mxu3 %v5229_v37  ;;  %v5235_v36 = vld [vmem:[%s7626_s1 + $0x118] sm:$0xff]  ;;  %v380_v37 = vrot.slane %v379_v33, 4 }
  0x45   : > { %3428 = vmatpush.bf16.msrb.mxu2 %v5220_v44  ;;  %3517 = vmatpush.bf16.msrb.mxu3 %v5228_v45  ;;  %v4502_v44 = vld [vmem:[%s5693_s22 + $0x10] sm:$0xf]  ;;  %v879_v45 = vshrl.u32 %v4501_v42, 16 }
  0x46   : > { %v892_v61 = vshrl.u32 %v4502_v44, 16 }
  0x47   : > { %3260 = vmatmul.bf16.gmra.mxu0 %v5153_v11  ;;  %3290 = vmatmul.bf16.gmra.mxu2 %v5159_v12  ;;  %v5217_v11 = vld [vmem:[%s7626_s1 + $0x88] sm:$0xff]  ;;  %v881_v54 = vrot.slane %v879_v45, 4  ;;  %v4504_v45 = vld [vmem:[%s5693_s22 + $0x1c] sm:$0xf] }
  0x48   : > { %3315 = vmatmul.bf16.gmra.mxu3 %v5164_v13  ;;  %3349 = vmatmul.bf16.gmra.mxu1 %v2160_v14  ;;  %v5225_v12 = vld [vmem:[%s7626_s1 + $0xc8] sm:$0xff]  ;;  %v365_v14 = vrot.slane %v363_v3, 4  ;;  %v894_v4 = vrot.slane %v892_v61, 4 }
  0x49   : > { %3429 = vmatpush.bf16.msrb.mxu2 %v5219_v55  ;;  %3518 = vmatpush.bf16.msrb.mxu3 %v5227_v56  ;;  %v5237_v13 = vld [vmem:[%s7626_s1 + $0x128] sm:$0xff]  ;;  %v888_v56 = vshll.u32 %v4502_v44, 16  ;;  %v4503_v44 = vld [vmem:[%s5693_s22 + $0x18] sm:$0xf] }
  0x4a   : > { %3605 = vmatpush.bf16.msrb.mxu0 %v5237_v13  ;;  %v369_v28 = vor.u32 %v368_v15, %v365_v14  ;;  %v900_v14 = vrot.slane %v898_v2, 5  ;;  %v5156_v15 = vld [vmem:[%s5693_s22 + $0x30] sm:$0xff]  ;;  %v906_v53 = vshll.u32 %v4503_v44, 16 }
  0x4b   : > { %v5952_v2 = vld [vmem:[%s5693_s22 + $0x50] sm:$0x1] }
  0x4c   : > { %v370_v35 = vrot.slane %v369_v28, 4 }
  0x4d   : > { %3430 = vmatpush.bf16.msrb.mxu2 %v5218_v0  ;;  %3519 = vmatpush.bf16.msrb.mxu3 %v5226_v1  ;;  %v890_v1 = vrot.slane %v888_v56, 5 }
  0x4e   : > { %3606 = vmatpush.bf16.msrb.mxu0 %v5236_v24  ;;  %v375_v43 = vsel %vm5727_vm2, %v370_v35, %v374_v19  ;;  %v650_v19 = vld [vmem:[%s5693_s22] sm:$0xe]  ;;  %v722_v35 = vrot.slane %v5711_v18, 5 }
  0x4f   : > { %v2135_v57 = vunpack.c.l.b16 %v375_v43  ;;  %v895_v13 = vor.u32 %v894_v4, %v890_v1  ;;  %v4485_v7 = vrot.slane %v650_v19, 9 }
  0x50   : > { %v723_v18 = vsel %vm5927_vm5, %v721_v34, %v722_v35 }
  0x51   : > { %3431 = vmatpush.bf16.msrb.mxu2 %v5217_v11  ;;  %3520 = vmatpush.bf16.msrb.mxu3 %v5225_v12  ;;  %v5899_v11 = vld [vmem:[%s5693_s22 + $0x44] sm:$0x1]  ;;  %v896_v24 = vrot.slane %v895_v13, 4  ;;  %v720_v43 = vsel %vm5927_vm5, %v4485_v7, %v719_v20  ;;  %v2192_v61 = vunpack.c.l.b16 %v723_v18 }
  0x52   : > { %3607 = vmatpush.bf16.msrb.mxu0 %v5235_v36  ;;  %v5232_v12 = vld [vmem:[%s7626_s1 + $0x100] sm:$0xff]  ;;  %v406_v28 = vshll.u32 %v5899_v11, 16  ;;  %v5935_v36 = vld [vmem:[%s5693_s22 + $0x4c] sm:$0xf]  ;;  %v2191_v59 = vunpack.c.l.b16 %v720_v43  ;;  %v729_v43 = vrot.slane %v5753_v48, 5 }
  0x54   : > { %v2223_v19 = vpack.c.b16 %v2192_v61, %v2191_v59 }
  0x55   : > { %3432 = vmatpush.bf16.msrb.mxu2 %v5216_v22  ;;  %3521 = vmatpush.bf16.msrb.mxu3 %v5224_v23  ;;  %v5167_v22 = vld [vmem:[%s5693_s22 + $0xb4] sm:$0xff] }
  0x56   : > { %3608 = vmatpush.bf16.msrb.mxu0 %v5234_v41 }
  0x57   : > { %3265 = vmatmul.bf16.gmra.mxu0 %v5154_v47  ;;  %3295 = vmatmul.bf16.gmra.mxu2 %v5160_v49  ;;  %v882_v47 = vshll.u32 %v4501_v42, 16  ;;  %v385_v49 = vsel %vm5727_vm2, %v380_v37, %v384_v38  ;;  %v408_v42 = vrot.slane %v406_v28, 5 }
  0x58   : > { %3320 = vmatmul.bf16.gmra.mxu3 %v5165_v50  ;;  %3354 = vmatmul.bf16.gmra.mxu1 %v2161_v51  ;;  %v387_v50 = vshrl.u32 %v225_v39, 16  ;;  %v390_v51 = vshll.u32 %v225_v39, 16  ;;  %v2136_v62 = vunpack.c.l.b16 %v385_v49  ;;  %v424_v49 = vshrl.u32 %v5935_v36, 16 }
  0x59   : > { %v884_v55 = vrot.slane %v882_v47, 5  ;;  %v420_v47 = vshll.u32 %v5935_v36, 16 }
  0x5a   : > { %v389_v3 = vrot.slane %v387_v50, 4  ;;  %v392_v5 = vrot.slane %v390_v51, 5  ;;  %3609 = vmatpush.bf16.msrb.mxu0 %v5233_v58  ;;  %v2163_v17 = vpack.c.b16 %v2136_v62, %v2135_v57  ;;  %v903_v50 = vshrl.u32 %v4503_v44, 16  ;;  %v4534_v62 = vld [vmem:[%s5693_s22 + $0x20] sm:$0x1] }
  0x5b   : > { %v885_v0 = vor.u32 %v884_v55, %v881_v54  ;;  %v912_v54 = vshll.u32 %v4504_v45, 16  ;;  %v916_v58 = vshrl.u32 %v4504_v45, 16  ;;  %v426_v4 = vrot.slane %v424_v49, 4 }
  0x5c   : > { %v905_v57 = vrot.slane %v903_v50, 4  ;;  %v4505_v50 = vld [vmem:[%s5693_s22 + $0x24] sm:$0xf] }
  0x5d   : > { %v886_v9 = vrot.slane %v885_v0, 4  ;;  %v908_v0 = vrot.slane %v906_v53, 5 }
  0x5e   : > { %3610 = vmatpush.bf16.msrb.mxu0 %v5232_v12 }
  0x5f   : > { %v5911_v23 = vsel %vm5727_vm2, %v886_v9, %v890_v1  ;;  %v914_v1 = vrot.slane %v912_v54, 5  ;;  %v909_v13 = vor.u32 %v908_v0, %v905_v57  ;;  %v4506_v54 = vld [vmem:[%s5693_s22 + $0x28] sm:$0xf]  ;;  %v930_v57 = vshll.u32 %v4505_v50, 16 }
  0x60   : > { %4262 = vst [vmem:[%s5918_s12] sm:$0xf] %v5911_v23  ;;  %v940_v59 = vshrl.u32 %v4506_v54, 16 }
  0x67   : > { %3270 = vmatmul.bf16.gmra.mxu0 %v5155_v25  ;;  %3300 = vmatmul.bf16.gmra.mxu2 %v5161_v26  ;;  %v393_v25 = vor.u32 %v392_v5, %v389_v3  ;;  %v403_v26 = vor.u32 %v402_v8, %v5895_v6  ;;  %v422_v3 = vrot.slane %v420_v47, 5  ;;  %v918_v5 = vrot.slane %v916_v58, 4 }
  0x68   : > { %3325 = vmatmul.bf16.gmra.mxu3 %v5166_v29  ;;  %3359 = vmatmul.bf16.gmra.mxu1 %v2162_v32  ;;  %v227_v29 = vld [vmem:[%s5693_s22 + $0x48] sm:$0xf]  ;;  %v5924_v32 = vsel %vm5727_vm2, %v896_v24, %v900_v14  ;;  %v922_v8 = vshll.u32 %v4534_v62, 16  ;;  %v430_v14 = vshll.u32 %v5952_v2, 16  ;;  %v936_v58 = vshll.u32 %v4506_v54, 16 }
  0x69   : > { %4263 = vst [vmem:[%s5918_s12 + $0x4] sm:$0xf] %v5924_v32  ;;  %v411_v37 = vshrl.u32 %v227_v29, 16  ;;  %v414_v38 = vshll.u32 %v227_v29, 16  ;;  %v394_v39 = vrot.slane %v393_v25, 4  ;;  %v404_v41 = vrot.slane %v403_v26, 4 }
  0x6a   : > { %v427_v20 = vor.u32 %v426_v4, %v422_v3  ;;  %v924_v24 = vrot.slane %v922_v8, 5  ;;  %v5168_v26 = vld [vmem:[%s5693_s22 + $0xc] sm:$0xff]  ;;  %v432_v35 = vrot.slane %v430_v14, 5 }
  0x6b   : > { %v413_v51 = vrot.slane %v411_v37, 4  ;;  %v416_v52 = vrot.slane %v414_v38, 5  ;;  %v399_v55 = vsel %vm5727_vm2, %v394_v39, %v5895_v6  ;;  %v409_v56 = vsel %vm5727_vm2, %v404_v41, %v408_v42  ;;  %v651_v29 = vld [vmem:[%s5693_s22 + $0xc] sm:$0xe]  ;;  %v229_v37 = vld [vmem:[%s5693_s22 + $0x54] sm:$0xf] }
  0x6c   : > { %v2137_v6 = vunpack.c.l.b16 %v399_v55  ;;  %v2138_v9 = vunpack.c.l.b16 %v409_v56  ;;  %v5967_v38 = vld [vmem:[%s5693_s22 + $0x58] sm:$0xf]  ;;  %v428_v39 = vrot.slane %v427_v20, 4  ;;  %v4486_v41 = vrot.slane %v651_v29, 9  ;;  %v5989_v55 = vld [vmem:[%s5693_s22 + $0x5c] sm:$0x1] }
  0x6d   : > { %v417_v12 = vor.u32 %v416_v52, %v413_v51  ;;  %v435_v45 = vshrl.u32 %v229_v37, 16  ;;  %v438_v18 = vshll.u32 %v229_v37, 16  ;;  %v444_v47 = vshll.u32 %v5967_v38, 16  ;;  %v652_v29 = vld [vmem:[%s5693_s22 + $0x18] sm:$0xe] }
  0x6e   : > { %v2164_v25 = vpack.c.b16 %v2138_v9, %v2137_v6  ;;  %v448_v49 = vshrl.u32 %v5967_v38, 16  ;;  %v433_v51 = vsel %vm5727_vm2, %v428_v39, %v432_v35  ;;  %v927_v56 = vshrl.u32 %v4505_v50, 16  ;;  %v5169_v35 = vld [vmem:[%s5693_s22 + $0x18] sm:$0xff]  ;;  %v231_v39 = vld [vmem:[%s5693_s22 + $0x60] sm:$0xf] }
  0x6f   : > { %v418_v28 = vrot.slane %v417_v12, 4  ;;  %v437_v61 = vrot.slane %v435_v45, 4  ;;  %v440_v62 = vrot.slane %v438_v18, 5  ;;  %v446_v0 = vrot.slane %v444_v47, 5  ;;  %v6004_v18 = vld [vmem:[%s5693_s22 + $0x64] sm:$0xf] }
  0x70   : > { %v929_v8 = vrot.slane %v927_v56, 4  ;;  %v932_v6 = vrot.slane %v930_v57, 5  ;;  %v2335_v12 = vunpack.c.l.b16 %v5911_v23  ;;  %v454_v14 = vshll.u32 %v5989_v55, 16  ;;  %v4507_v54 = vld [vmem:[%s5693_s22 + $0x30] sm:$0xf] }
  0x71   : > { %v423_v44 = vsel %vm5727_vm2, %v418_v28, %v422_v3  ;;  %v2140_v3 = vunpack.c.l.b16 %v433_v51  ;;  %v441_v20 = vor.u32 %v440_v62, %v437_v61  ;;  %v736_v47 = vrot.slane %v5770_v10, 5  ;;  %v4508_v61 = vld [vmem:[%s5693_s22 + $0x34] sm:$0xf] }
  0x72   : > { %v2139_v52 = vunpack.c.l.b16 %v423_v44  ;;  %v456_v37 = vrot.slane %v454_v14, 5  ;;  %v4487_v44 = vrot.slane %v652_v29, 9  ;;  %v462_v50 = vshll.u32 %v231_v39, 16 }
  0x73   : > { %v951_v62 = vshrl.u32 %v4507_v54, 16  ;;  %v740_v29 = vrot.slane %v5790_v27, 5 }
  0x75   : > { %v953_v14 = vrot.slane %v951_v62, 4 }
  0x77   : > { %3275 = vmatmul.bf16.gmra.mxu0 %v5156_v15  ;;  %3305 = vmatmul.bf16.gmra.mxu2 %v5162_v16  ;;  %v910_v15 = vrot.slane %v909_v13, 4  ;;  %v919_v16 = vor.u32 %v918_v5, %v914_v1  ;;  %v4535_v5 = vld [vmem:[%s5693_s22 + $0x2c] sm:$0x1]  ;;  %v2336_v13 = vunpack.c.l.b16 %v5924_v32 }
  0x78   : > { %3330 = vmatmul.bf16.gmra.mxu3 %v5167_v22  ;;  %3364 = vmatmul.bf16.gmra.mxu1 %v2163_v17  ;;  %v5157_v17 = vld [vmem:[%s5693_s22 + $0x3c] sm:$0xff]  ;;  %v726_v22 = vrot.slane %v5732_v31, 5 }
  0x79   : > { %v5961_v7 = vsel %vm5727_vm2, %v910_v15, %v914_v1  ;;  %v920_v34 = vrot.slane %v919_v16, 4  ;;  %v450_v1 = vrot.slane %v448_v49, 4  ;;  %v933_v15 = vor.u32 %v932_v6, %v929_v8 }
  0x7a   : > { %4264 = vst [vmem:[%s5918_s12 + $0x8] sm:$0xf] %v5961_v7  ;;  %v728_v42 = vrot.slane %v726_v22, 4  ;;  %v727_v48 = vsel %vm5927_vm5, %v4486_v41, %v726_v22  ;;  %v938_v16 = vrot.slane %v936_v58, 5  ;;  %v2367_v23 = vpack.c.b16 %v2336_v13, %v2335_v12  ;;  %v6028_v12 = vld [vmem:[%s5693_s22 + $0x68] sm:$0x1] }
  0x7b   : > { %v5971_v31 = vsel %vm5727_vm2, %v920_v34, %v924_v24  ;;  %v2193_v4 = vunpack.c.l.b16 %v727_v48  ;;  %v451_v22 = vor.u32 %v450_v1, %v446_v0  ;;  %v733_v24 = vrot.slane %v5761_v60, 5  ;;  %v4536_v13 = vld [vmem:[%s5693_s22 + $0x38] sm:$0x1] }
  0x7c   : > { %4265 = vst [vmem:[%s5918_s12 + $0xc] sm:$0xf] %v5971_v31  ;;  %v730_v53 = vsel %vm5927_vm5, %v728_v42, %v729_v43  ;;  %v2165_v34 = vpack.c.b16 %v2140_v3, %v2139_v52  ;;  %v442_v41 = vrot.slane %v441_v20, 4  ;;  %v459_v49 = vshrl.u32 %v231_v39, 16 }
  0x7d   : > { %v2194_v9 = vunpack.c.l.b16 %v730_v53  ;;  %v452_v42 = vrot.slane %v451_v22, 4  ;;  %v735_v45 = vrot.slane %v733_v24, 4  ;;  %v468_v52 = vshll.u32 %v6004_v18, 16 }
  0x7e   : > { %v472_v48 = vshrl.u32 %v6004_v18, 16  ;;  %v447_v53 = vsel %vm5727_vm2, %v442_v41, %v446_v0  ;;  %v734_v56 = vsel %vm5927_vm5, %v4487_v44, %v733_v24  ;;  %v461_v58 = vrot.slane %v459_v49, 4  ;;  %v5170_v41 = vld [vmem:[%s5693_s22 + $0x24] sm:$0xff] }
  0x7f   : > { %v2224_v28 = vpack.c.b16 %v2194_v9, %v2193_v4  ;;  %v457_v10 = vsel %vm5727_vm2, %v452_v42, %v456_v37  ;;  %v737_v57 = vsel %vm5927_vm5, %v735_v45, %v736_v47  ;;  %v954_v1 = vshll.u32 %v4507_v54, 16  ;;  %v653_v37 = vld [vmem:[%s5693_s22 + $0x24] sm:$0xe] }
  0x80   : > { %v960_v3 = vshll.u32 %v4508_v61, 16  ;;  %v964_v4 = vshrl.u32 %v4508_v61, 16  ;;  %v2141_v0 = vunpack.c.l.b16 %v447_v53  ;;  %v474_v8 = vrot.slane %v472_v48, 4 }
  0x81   : > { %v2142_v6 = vunpack.c.l.b16 %v457_v10  ;;  %v2195_v9 = vunpack.c.l.b16 %v734_v56  ;;  %v4488_v49 = vrot.slane %v653_v37, 9  ;;  %v743_v48 = vrot.slane %v5811_v46, 5 }
  0x82   : > { %v962_v24 = vrot.slane %v960_v3, 5  ;;  %v747_v37 = vrot.slane %v5828_v63, 5 }
  0x83   : > { %v2166_v39 = vpack.c.b16 %v2142_v6, %v2141_v0  ;;  %v741_v61 = vsel %vm5927_vm5, %v4488_v49, %v740_v29  ;;  %v235_v49 = vld [vmem:[%s5693_s22 + $0x78] sm:$0xf] }
  0x87   : > { %3280 = vmatmul.bf16.gmra.mxu0 %v5157_v17  ;;  %3433 = vmatmul.bf16.vlgmr.msrb.gmra.mxu2 %v2223_v19  ;;  %v942_v17 = vrot.slane %v940_v59, 4  ;;  %v946_v19 = vshll.u32 %v4535_v5, 16  ;;  %v464_v59 = vrot.slane %v462_v50, 5  ;;  %v470_v5 = vrot.slane %v468_v52, 5  ;;  %v6043_v52 = vld [vmem:[%s5693_s22 + $0x70] sm:$0xf] }
  0x88   : > { %3369 = vmatmul.bf16.gmra.mxu1 %v2164_v25  ;;  %3522 = vmatmul.bf16.vlgmr.msrb.gmra.mxu3 %v5168_v26  ;;  %v934_v25 = vrot.slane %v933_v15, 4  ;;  %v956_v15 = vrot.slane %v954_v1, 5  ;;  %v742_v50 = vrot.slane %v740_v29, 4  ;;  %v492_v56 = vshll.u32 %v6043_v52, 16 }
  0x89   : > { %v943_v26 = vor.u32 %v942_v17, %v938_v16  ;;  %v948_v32 = vrot.slane %v946_v19, 5  ;;  %v2337_v17 = vunpack.c.l.b16 %v5961_v7  ;;  %v2338_v19 = vunpack.c.l.b16 %v5971_v31 }
  0x8a   : > { %v6001_v43 = vsel %vm5727_vm2, %v934_v25, %v938_v16  ;;  %v2196_v16 = vunpack.c.l.b16 %v737_v57  ;;  %v465_v20 = vor.u32 %v464_v59, %v461_v58  ;;  %v957_v22 = vor.u32 %v956_v15, %v953_v14  ;;  %v4509_v59 = vld [vmem:[%s5693_s22 + $0x3c] sm:$0xf] }
  0x8b   : > { %v944_v60 = vrot.slane %v943_v26, 4  ;;  %4266 = vst [vmem:[%s5918_s12 + $0x10] sm:$0xf] %v6001_v43  ;;  %v966_v25 = vrot.slane %v964_v4, 4  ;;  %v970_v26 = vshll.u32 %v4536_v13, 16  ;;  %v2368_v7 = vpack.c.b16 %v2338_v19, %v2337_v17 }
  0x8c   : > { %v466_v42 = vrot.slane %v465_v20, 4  ;;  %v496_v57 = vshrl.u32 %v6043_v52, 16  ;;  %v744_v62 = vsel %vm5927_vm5, %v742_v50, %v743_v48  ;;  %v4510_v4 = vld [vmem:[%s5693_s22 + $0x40] sm:$0xf]  ;;  %v975_v0 = vshrl.u32 %v4509_v59, 16 }
  0x8d   : > { %v6011_v51 = vsel %vm5727_vm2, %v944_v60, %v948_v32  ;;  %v958_v32 = vrot.slane %v957_v22, 4  ;;  %v972_v31 = vrot.slane %v970_v26, 5  ;;  %v233_v60 = vld [vmem:[%s5693_s22 + $0x6c] sm:$0xf]  ;;  %v984_v6 = vshll.u32 %v4510_v4, 16 }
  0x8e   : > { %4267 = vst [vmem:[%s5918_s12 + $0x14] sm:$0xf] %v6011_v51  ;;  %v483_v53 = vshrl.u32 %v233_v60, 16  ;;  %v486_v10 = vshll.u32 %v233_v60, 16  ;;  %v471_v58 = vsel %vm5727_vm2, %v466_v42, %v470_v5  ;;  %v6066_v13 = vrot.slane %v492_v56, 5 }
  0x8f   : > { %v6040_v47 = vsel %vm5727_vm2, %v958_v32, %v962_v24  ;;  %v498_v14 = vrot.slane %v496_v57, 4  ;;  %v6069_v17 = vld [vmem:[%s5693_s22 + $0x74] sm:$0x1]  ;;  %v4537_v19 = vld [vmem:[%s5693_s22 + $0x44] sm:$0x1]  ;;  %v977_v20 = vrot.slane %v975_v0, 4  ;;  %v2340_v26 = vunpack.c.l.b16 %v6011_v51 }
  0x90   : > { %4268 = vst [vmem:[%s5918_s12 + $0x18] sm:$0xf] %v6040_v47  ;;  %v485_v1 = vrot.slane %v483_v53, 4  ;;  %v488_v3 = vrot.slane %v486_v10, 5  ;;  %v986_v29 = vrot.slane %v984_v6, 5 }
  0x91   : > { %v4511_v6 = vld [vmem:[%s5693_s22 + $0x48] sm:$0xf] }
  0x97   : > { %3438 = vmatmul.bf16.gmra.mxu2 %v2224_v28  ;;  %3611 = vmatmul.bf16.vlgmr.msrb.gmra.mxu0 %v2367_v23  ;;  %v475_v28 = vor.u32 %v474_v8, %v470_v5  ;;  %v478_v23 = vshll.u32 %v6028_v12, 16  ;;  %v978_v8 = vshll.u32 %v4509_v59, 16  ;;  %v2143_v5 = vunpack.c.l.b16 %v471_v58 }
  0x98   : > { %3374 = vmatmul.bf16.gmra.mxu1 %v2165_v34  ;;  %3527 = vmatmul.bf16.gmra.mxu3 %v5169_v35  ;;  %v967_v34 = vor.u32 %v966_v25, %v962_v24  ;;  %v2225_v35 = vpack.c.b16 %v2196_v16, %v2195_v9  ;;  %v988_v9 = vshrl.u32 %v4510_v4, 16  ;;  %v2197_v16 = vunpack.c.l.b16 %v741_v61 }
  0x99   : > { %v476_v44 = vrot.slane %v475_v28, 4  ;;  %v480_v45 = vrot.slane %v478_v23, 5  ;;  %v980_v22 = vrot.slane %v978_v8, 5  ;;  %v2198_v24 = vunpack.c.l.b16 %v744_v62 }
  0x9a   : > { %v968_v27 = vrot.slane %v967_v34, 4  ;;  %v2339_v25 = vunpack.c.l.b16 %v6001_v43  ;;  %v489_v28 = vor.u32 %v488_v3, %v485_v1  ;;  %v990_v32 = vrot.slane %v988_v9, 4  ;;  %v654_v43 = vld [vmem:[%s5693_s22 + $0x30] sm:$0xe] }
  0x9b   : > { %v481_v46 = vsel %vm5727_vm2, %v476_v44, %v480_v45  ;;  %v981_v23 = vor.u32 %v980_v22, %v977_v20  ;;  %v994_v34 = vshll.u32 %v4537_v19, 16  ;;  %v5171_v45 = vld [vmem:[%s5693_s22 + $0x30] sm:$0xff]  ;;  %v4489_v57 = vrot.slane %v654_v43, 9  ;;  %v4512_v19 = vld [vmem:[%s5693_s22 + $0x4c] sm:$0xf] }
  0x9c   : > { %v6050_v54 = vsel %vm5727_vm2, %v968_v27, %v972_v31  ;;  %v2144_v15 = vunpack.c.l.b16 %v481_v46  ;;  %v2369_v42 = vpack.c.b16 %v2340_v26, %v2339_v25  ;;  %v490_v27 = vrot.slane %v489_v28, 4  ;;  %v6087_v46 = vld [vmem:[%s5693_s22 + $0x7c] sm:$0xf] }
  0x9d   : > { %4269 = vst [vmem:[%s5918_s12 + $0x1c] sm:$0xf] %v6050_v54  ;;  %v982_v31 = vrot.slane %v981_v23, 4  ;;  %v996_v51 = vrot.slane %v994_v34, 5  ;;  %v749_v58 = vrot.slane %v747_v37, 4  ;;  %v750_v59 = vrot.slane %v5855_v21, 5 }
  0x9e   : > { %v2167_v44 = vpack.c.b16 %v2144_v15, %v2143_v5  ;;  %v507_v61 = vshrl.u32 %v235_v49, 16  ;;  %v510_v62 = vshll.u32 %v235_v49, 16  ;;  %v516_v3 = vshll.u32 %v6087_v46, 16 }
  0x9f   : > { %v6082_v63 = vsel %vm5727_vm2, %v982_v31, %v986_v29  ;;  %v520_v4 = vshrl.u32 %v6087_v46, 16  ;;  %v495_v21 = vsel %vm5727_vm2, %v490_v27, %v6066_v13  ;;  %v748_v5 = vsel %vm5927_vm5, %v4489_v57, %v747_v37  ;;  %v4538_v37 = vld [vmem:[%s5693_s22 + $0x50] sm:$0x1] }
  0xa0   : > { %4270 = vst [vmem:[%s5918_s12 + $0x20] sm:$0xf] %v6082_v63  ;;  %v509_v15 = vrot.slane %v507_v61, 4  ;;  %v999_v22 = vshrl.u32 %v4511_v6, 16  ;;  %v1012_v25 = vshrl.u32 %v4512_v19, 16  ;;  %v2145_v28 = vunpack.c.l.b16 %v495_v21 }
  0xa1   : > { %v2342_v43 = vunpack.c.l.b16 %v6050_v54  ;;  %v1018_v27 = vshll.u32 %v4538_v37, 16  ;;  %v4513_v37 = vld [vmem:[%s5693_s22 + $0x54] sm:$0xf] }
  0xa2   : > { %v1001_v31 = vrot.slane %v999_v22, 4  ;;  %v6142_v22 = vld [vmem:[%s5693_s22 + $0x88] sm:$0xf] }
  0xa3   : > { %v1020_v61 = vrot.slane %v1018_v27, 5 }
  0xa7   : > { %3443 = vmatmul.bf16.gmra.mxu2 %v2225_v35  ;;  %3616 = vmatmul.bf16.gmra.mxu0 %v2368_v7  ;;  %v499_v35 = vor.u32 %v498_v14, %v6066_v13  ;;  %v502_v7 = vshll.u32 %v6069_v17, 16  ;;  %v751_v14 = vsel %vm5927_vm5, %v749_v58, %v750_v59  ;;  %v1002_v13 = vshll.u32 %v4511_v6, 16  ;;  %v655_v59 = vld [vmem:[%s5693_s22 + $0x3c] sm:$0xe] }
  0xa8   : > { %3379 = vmatmul.bf16.gmra.mxu1 %v2166_v39  ;;  %3532 = vmatmul.bf16.gmra.mxu3 %v5170_v41  ;;  %v991_v39 = vor.u32 %v990_v32, %v986_v29  ;;  %v2226_v41 = vpack.c.b16 %v2198_v24, %v2197_v16  ;;  %v512_v16 = vrot.slane %v510_v62, 5  ;;  %v1008_v24 = vshll.u32 %v4512_v19, 16 }
  0xa9   : > { %v500_v48 = vrot.slane %v499_v35, 4  ;;  %v504_v53 = vrot.slane %v502_v7, 5  ;;  %v6115_v29 = vrot.slane %v516_v3, 5  ;;  %v522_v32 = vrot.slane %v520_v4, 4  ;;  %v6120_v7 = vld [vmem:[%s5693_s22 + $0x80] sm:$0x1] }
  0xaa   : > { %v992_v10 = vrot.slane %v991_v39, 4  ;;  %v2199_v35 = vunpack.c.l.b16 %v748_v5  ;;  %v1004_v39 = vrot.slane %v1002_v13, 5  ;;  %v5172_v4 = vld [vmem:[%s5693_s22 + $0x3c] sm:$0xff]  ;;  %v4490_v19 = vrot.slane %v655_v59, 9  ;;  %v6175_v59 = vld [vmem:[%s5693_s22 + $0x8c] sm:$0x1] }
  0xab   : > { %v505_v8 = vsel %vm5727_vm2, %v500_v48, %v504_v53  ;;  %v523_v49 = vor.u32 %v522_v32, %v6115_v29  ;;  %v754_v53 = vrot.slane %v5875_v40, 5  ;;  %v757_v13 = vrot.slane %v5899_v11, 5 }
  0xac   : > { %v6094_v1 = vsel %vm5727_vm2, %v992_v10, %v996_v51  ;;  %v2146_v23 = vunpack.c.l.b16 %v505_v8  ;;  %v513_v51 = vor.u32 %v512_v16, %v509_v15  ;;  %v237_v8 = vld [vmem:[%s5693_s22 + $0x84] sm:$0xf] }
  0xad   : > { %4271 = vst [vmem:[%s5918_s12 + $0x24] sm:$0xf] %v6094_v1  ;;  %v524_v5 = vrot.slane %v523_v49, 4 }
  0xae   : > { %v2168_v3 = vpack.c.b16 %v2146_v23, %v2145_v28  ;;  %v514_v21 = vrot.slane %v513_v51, 4  ;;  %v540_v28 = vshll.u32 %v6142_v22, 16  ;;  %v544_v23 = vshrl.u32 %v6142_v22, 16  ;;  %v4514_v51 = vld [vmem:[%s5693_s22 + $0x58] sm:$0xf] }
  0xaf   : > { %v1036_v27 = vshrl.u32 %v4514_v51, 16 }
  0xb0   : > { %v519_v11 = vsel %vm5727_vm2, %v514_v21, %v6115_v29  ;;  %v1026_v29 = vshll.u32 %v4513_v37, 16  ;;  %v2343_v21 = vunpack.c.l.b16 %v6082_v63 }
  0xb4   : > { %v3256_v60 = vpop.f32.mrf.mxu0 }
  0xb5   : > { %v3345_v50 = vpop.f32.mrf.mxu1 }
  0xb6   : > { %v6084_v56 = vadd.f32 %v3345_v50, %v3256_v60  ;;  %v1005_v60 = vor.u32 %v1004_v39, %v1001_v31  ;;  %v526_v50 = vshll.u32 %v6120_v7, 16  ;;  %v755_v39 = vsel %vm5927_vm5, %v4490_v19, %v754_v53 }
  0xb7   : > { %3448 = vmatmul.bf16.gmra.mxu2 %v2226_v41  ;;  %3621 = vmatmul.bf16.gmra.mxu0 %v2369_v42  ;;  %v2200_v41 = vunpack.c.l.b16 %v751_v14  ;;  %v2341_v42 = vunpack.c.l.b16 %v6040_v47 }
  0xb8   : > { %3384 = vmatmul.bf16.gmra.mxu1 %v2167_v44  ;;  %3537 = vmatmul.bf16.gmra.mxu3 %v5171_v45  ;;  %v1010_v44 = vrot.slane %v1008_v24, 5  ;;  %v1014_v45 = vrot.slane %v1012_v25, 4  ;;  %v1006_v10 = vrot.slane %v1005_v60, 4  ;;  %v528_v14 = vrot.slane %v526_v50, 5 }
  0xb9   : > { %v2227_v54 = vpack.c.b16 %v2200_v41, %v2199_v35  ;;  %v2370_v58 = vpack.c.b16 %v2342_v43, %v2341_v42  ;;  %v531_v24 = vshrl.u32 %v237_v8, 16  ;;  %v534_v25 = vshll.u32 %v237_v8, 16 }
  0xba   : > { %v6100_v0 = vpop.f32.mrf.mxu2  ;;  %v1015_v47 = vor.u32 %v1014_v45, %v1010_v44  ;;  %v6137_v40 = vsel %vm5727_vm2, %v1006_v10, %v1010_v44  ;;  %v529_v35 = vsel %vm5727_vm2, %v524_v5, %v528_v14  ;;  %v1023_v44 = vshrl.u32 %v4513_v37, 16 }
  0xbb   : > { %v6108_v9 = vpop.f32.mrf.mxu3  ;;  %4272 = vst [vmem:[%s5918_s12 + $0x28] sm:$0xf] %v6137_v40  ;;  %v533_v42 = vrot.slane %v531_v24, 4  ;;  %v536_v43 = vrot.slane %v534_v25, 5  ;;  %v1032_v45 = vshll.u32 %v4514_v51, 16  ;;  %v2147_v50 = vunpack.c.l.b16 %v519_v11 }
  0xbc   : > { %7639 = vst [vmem:[#allocation9_spill] sm:$0xff] %v6108_v9  ;;  %v3258_v20 = vpop.f32.mrf.mxu0  ;;  %v1016_v15 = vrot.slane %v1015_v47, 4  ;;  %v2148_v10 = vunpack.c.l.b16 %v529_v35  ;;  %v6170_v47 = vrot.slane %v540_v28, 5  ;;  %v2344_v8 = vunpack.c.l.b16 %v6094_v1  ;;  %v656_v35 = vld [vmem:[%s5693_s22 + $0x48] sm:$0xe] }
  0xbd   : > { %v3347_v26 = vpop.f32.mrf.mxu1  ;;  %v1034_v14 = vrot.slane %v1032_v45, 5  ;;  %v761_v25 = vrot.slane %v5935_v36, 5  ;;  %v239_v51 = vld [vmem:[%s5693_s22 + $0x90] sm:$0xf] }
  0xbe   : > { %v6117_v34 = vadd.f32 %v3347_v26, %v3258_v20  ;;  %v756_v20 = vrot.slane %v754_v53, 4  ;;  %v6149_v26 = vsel %vm5727_vm2, %v1016_v15, %v1020_v61  ;;  %v4539_v61 = vld [vmem:[%s5693_s22 + $0x5c] sm:$0x1]  ;;  %v1038_v15 = vrot.slane %v1036_v27, 4 }
  0xbf   : > { %4273 = vst [vmem:[%s5918_s12 + $0x2c] sm:$0xf] %v6149_v26  ;;  %v1042_v19 = vshll.u32 %v4539_v61, 16  ;;  %v2371_v11 = vpack.c.b16 %v2344_v8, %v2343_v21  ;;  %v558_v61 = vshll.u32 %v239_v51, 16 }
  0xc0   : > { %v758_v41 = vsel %vm5927_vm5, %v756_v20, %v757_v13  ;;  %v550_v13 = vshll.u32 %v6175_v59, 16  ;;  %v1039_v63 = vor.u32 %v1038_v15, %v1034_v14 }
  0xc1   : > { %v1044_v37 = vrot.slane %v1042_v19, 5 }
  0xc2   : > { %v6127_v48 = vpop.f32.mrf.mxu2  ;;  %v1040_v45 = vrot.slane %v1039_v63, 4 }
  0xc3   : > { %v6130_v57 = vpop.f32.mrf.mxu3 }
  0xc4   : > { %7640 = vst [vmem:[#allocation10_spill] sm:$0xff] %v6130_v57  ;;  %v3261_v62 = vpop.f32.mrf.mxu0 }
  0xc5   : > { %v3350_v6 = vpop.f32.mrf.mxu1 }
  0xc6   : > { %v6139_v16 = vadd.f32 %v3350_v6, %v3261_v62  ;;  %v1025_v62 = vrot.slane %v1023_v44, 4  ;;  %v537_v6 = vor.u32 %v536_v43, %v533_v42  ;;  %v5173_v42 = vld [vmem:[%s5693_s22 + $0x48] sm:$0xff] }
  0xc7   : > { %3453 = vmatmul.bf16.gmra.mxu2 %v2227_v54  ;;  %3626 = vmatmul.bf16.gmra.mxu0 %v2370_v58  ;;  %v546_v54 = vrot.slane %v544_v23, 4  ;;  %v2201_v58 = vunpack.c.l.b16 %v755_v39 }
  0xc8   : > { %3389 = vmatmul.bf16.gmra.mxu1 %v2168_v3  ;;  %3542 = vmatmul.bf16.gmra.mxu3 %v5172_v4  ;;  %v1028_v3 = vrot.slane %v1026_v29, 5  ;;  %v2202_v4 = vunpack.c.l.b16 %v758_v41  ;;  %v2169_v41 = vpack.c.b16 %v2148_v10, %v2147_v50  ;;  %v538_v43 = vrot.slane %v537_v6, 4  ;;  %v4515_v6 = vld [vmem:[%s5693_s22 + $0x60] sm:$0xf] }
  0xc9   : > { %v547_v20 = vor.u32 %v546_v54, %v6170_v47  ;;  %v552_v29 = vrot.slane %v550_v13, 5  ;;  %v763_v54 = vrot.slane %v761_v25, 4  ;;  %v764_v50 = vrot.slane %v5952_v2, 5  ;;  %v4516_v13 = vld [vmem:[%s5693_s22 + $0x64] sm:$0xf] }
  0xca   : > { %v6155_v32 = vpop.f32.mrf.mxu2  ;;  %v1029_v5 = vor.u32 %v1028_v3, %v1025_v62  ;;  %v2228_v1 = vpack.c.b16 %v2202_v4, %v2201_v58  ;;  %v6197_v58 = vld [vmem:[%s5693_s22 + $0x94] sm:$0xf]  ;;  %v555_v10 = vshrl.u32 %v239_v51, 16  ;;  %v6204_v62 = vsel %vm5727_vm2, %v1040_v45, %v1044_v37  ;;  %v6228_v51 = vld [vmem:[%s5693_s22 + $0x98] sm:$0x1] }
  0xcb   : > { %v6163_v31 = vpop.f32.mrf.mxu3  ;;  %v548_v44 = vrot.slane %v547_v20, 4  ;;  %4275 = vst [vmem:[%s5918_s12 + $0x34] sm:$0xf] %v6204_v62  ;;  %v564_v3 = vshll.u32 %v6197_v58, 16  ;;  %v568_v4 = vshrl.u32 %v6197_v58, 16  ;;  %v543_v2 = vsel %vm5727_vm2, %v538_v43, %v6170_v47 }
  0xcc   : > { %7641 = vst [vmem:[#allocation11_spill] sm:$0xff] %v6163_v31  ;;  %v3263_v60 = vpop.f32.mrf.mxu0  ;;  %v1030_v28 = vrot.slane %v1029_v5, 4  ;;  %v765_v15 = vsel %vm5927_vm5, %v763_v54, %v764_v50  ;;  %v557_v19 = vrot.slane %v555_v10, 4  ;;  %v560_v20 = vrot.slane %v558_v61, 5 }
  0xcd   : > { %v3352_v49 = vpop.f32.mrf.mxu1  ;;  %v553_v8 = vsel %vm5727_vm2, %v548_v44, %v552_v29  ;;  %v1047_v63 = vshrl.u32 %v4515_v6, 16  ;;  %v1050_v47 = vshll.u32 %v4515_v6, 16  ;;  %v2149_v37 = vunpack.c.l.b16 %v543_v2 }
  0xce   : > { %v6172_v53 = vadd.f32 %v3352_v49, %v3263_v60  ;;  %v6192_v36 = vsel %vm5727_vm2, %v1030_v28, %v1034_v14  ;;  %v4491_v49 = vrot.slane %v656_v35, 9  ;;  %v2204_v45 = vunpack.c.l.b16 %v765_v15 }
  0xcf   : > { %4274 = vst [vmem:[%s5918_s12 + $0x30] sm:$0xf] %v6192_v36  ;;  %v1049_v44 = vrot.slane %v1047_v63, 4  ;;  %v1052_v29 = vrot.slane %v1050_v47, 5  ;;  %v2346_v54 = vunpack.c.l.b16 %v6149_v26  ;;  %v561_v50 = vor.u32 %v560_v20, %v557_v19  ;;  %v657_v20 = vld [vmem:[%s5693_s22 + $0x54] sm:$0xe] }
  0xd0   : > { %v762_v14 = vsel %vm5927_vm5, %v4491_v49, %v761_v25  ;;  %v2345_v49 = vunpack.c.l.b16 %v6137_v40 }
  0xd1   : > { %v2203_v25 = vunpack.c.l.b16 %v762_v14  ;;  %v1053_v10 = vor.u32 %v1052_v29, %v1049_v44  ;;  %v768_v14 = vrot.slane %v5967_v38, 5  ;;  %v562_v19 = vrot.slane %v561_v50, 4  ;;  %v6258_v50 = vld [vmem:[%s5693_s22 + $0xa0] sm:$0xf] }
  0xd2   : > { %v6182_v24 = vpop.f32.mrf.mxu2  ;;  %v2372_v26 = vpack.c.b16 %v2346_v54, %v2345_v49  ;;  %v4492_v29 = vrot.slane %v657_v20, 9  ;;  %v771_v49 = vrot.slane %v5989_v55, 5  ;;  %v241_v54 = vld [vmem:[%s5693_s22 + $0x9c] sm:$0xf] }
  0xd3   : > { %v6185_v23 = vpop.f32.mrf.mxu3  ;;  %v2229_v40 = vpack.c.b16 %v2204_v45, %v2203_v25  ;;  %v770_v45 = vrot.slane %v768_v14, 4 }
  0xd4   : > { %7642 = vst [vmem:[#allocation12_spill] sm:$0xff] %v6185_v23  ;;  %v3266_v39 = vpop.f32.mrf.mxu0  ;;  %v6300_v23 = vld [vmem:[%s5693_s22 + $0xac] sm:$0xf] }
  0xd5   : > { %v3355_v60 = vpop.f32.mrf.mxu1 }
  0xd6   : > { %v6194_v27 = vadd.f32 %v3355_v60, %v3266_v39  ;;  %v2150_v39 = vunpack.c.l.b16 %v553_v8  ;;  %v4540_v60 = vld [vmem:[%s5693_s22 + $0x68] sm:$0x1]  ;;  %v574_v8 = vshll.u32 %v6228_v51, 16 }
  0xd7   : > { %3458 = vmatmul.bf16.gmra.mxu2 %v2228_v1  ;;  %3631 = vmatmul.bf16.gmra.mxu0 %v2371_v11  ;;  %v1056_v1 = vshll.u32 %v4516_v13, 16  ;;  %v1060_v11 = vshrl.u32 %v4516_v13, 16  ;;  %v1054_v13 = vrot.slane %v1053_v10, 4 }
  0xd8   : > { %3394 = vmatmul.bf16.gmra.mxu1 %v2169_v41  ;;  %3547 = vmatmul.bf16.gmra.mxu3 %v5173_v42  ;;  %v566_v41 = vrot.slane %v564_v3, 5  ;;  %v570_v42 = vrot.slane %v568_v4, 4  ;;  %v1066_v3 = vshll.u32 %v4540_v60, 16  ;;  %v576_v60 = vrot.slane %v574_v8, 5 }
  0xd9   : > { %v1058_v61 = vrot.slane %v1056_v1, 5  ;;  %v1062_v2 = vrot.slane %v1060_v11, 4  ;;  %v2170_v1 = vpack.c.b16 %v2150_v39, %v2149_v37  ;;  %v5174_v11 = vld [vmem:[%s5693_s22 + $0x54] sm:$0xff]  ;;  %v579_v8 = vshrl.u32 %v241_v54, 16 }
  0xda   : > { %v6210_v21 = vpop.f32.mrf.mxu2  ;;  %v571_v4 = vor.u32 %v570_v42, %v566_v41  ;;  %v1068_v63 = vrot.slane %v1066_v3, 5  ;;  %v567_v37 = vsel %vm5727_vm2, %v562_v19, %v566_v41  ;;  %v769_v41 = vsel %vm5927_vm5, %v4492_v29, %v768_v14  ;;  %v4517_v3 = vld [vmem:[%s5693_s22 + $0x6c] sm:$0xf] }
  0xdb   : > { %v6218_v5 = vpop.f32.mrf.mxu3  ;;  %v1063_v15 = vor.u32 %v1062_v2, %v1058_v61  ;;  %v6243_v38 = vsel %vm5727_vm2, %v1054_v13, %v1058_v61  ;;  %v6266_v61 = vunpack.c.l.b16 %v567_v37  ;;  %v772_v2 = vsel %vm5927_vm5, %v770_v45, %v771_v49  ;;  %v4541_v45 = vld [vmem:[%s5693_s22 + $0x74] sm:$0x1] }
  0xdc   : > { %7643 = vst [vmem:[#allocation13_spill] sm:$0xff] %v6218_v5  ;;  %v3268_v28 = vpop.f32.mrf.mxu0  ;;  %v572_v42 = vrot.slane %v571_v4, 4  ;;  %v582_v13 = vshll.u32 %v241_v54, 16  ;;  %v1071_v20 = vshrl.u32 %v4517_v3, 16  ;;  %v2348_v29 = vunpack.c.l.b16 %v6204_v62 }
  0xdd   : > { %v3357_v35 = vpop.f32.mrf.mxu1  ;;  %v1064_v44 = vrot.slane %v1063_v15, 4  ;;  %4276 = vst [vmem:[%s5918_s12 + $0x38] sm:$0xf] %v6243_v38  ;;  %v588_v15 = vshll.u32 %v6258_v50, 16  ;;  %v581_v54 = vrot.slane %v579_v8, 4 }
  0xde   : > { %v6225_v43 = vadd.f32 %v3357_v35, %v3268_v28  ;;  %v577_v10 = vsel %vm5727_vm2, %v572_v42, %v576_v60  ;;  %v2206_v42 = vunpack.c.l.b16 %v772_v2  ;;  %v2347_v60 = vunpack.c.l.b16 %v6192_v36  ;;  %v6286_v36 = vld [vmem:[%s5693_s22 + $0xa4] sm:$0x1] }
  0xdf   : > { %v6254_v39 = vsel %vm5727_vm2, %v1064_v44, %v1068_v63  ;;  %v1074_v63 = vshll.u32 %v4517_v3, 16  ;;  %v1073_v49 = vrot.slane %v1071_v20, 4  ;;  %v6283_v3 = vrot.slane %v588_v15, 5  ;;  %v658_v20 = vld [vmem:[%s5693_s22 + $0x60] sm:$0xe] }
  0xe0   : > { %4277 = vst [vmem:[%s5918_s12 + $0x3c] sm:$0xf] %v6254_v39  ;;  %v598_v5 = vshll.u32 %v6286_v36, 16 }
  0xe1   : > { %v1076_v37 = vrot.slane %v1074_v63, 5 }
  0xe2   : > { %v6234_v6 = vpop.f32.mrf.mxu2 }
  0xe3   : > { %v6237_v28 = vpop.f32.mrf.mxu3 }
  0xe4   : > { %7644 = vst [vmem:[#allocation14_spill] sm:$0xff] %v6237_v28  ;;  %v3271_v47 = vpop.f32.mrf.mxu0  ;;  %v1090_v28 = vshll.u32 %v4541_v45, 16  ;;  %v5175_v45 = vld [vmem:[%s5693_s22 + $0x60] sm:$0xff] }
  0xe5   : > { %v3360_v35 = vpop.f32.mrf.mxu1 }
  0xe6   : > { %v6245_v25 = vadd.f32 %v3360_v35, %v3271_v47  ;;  %v2205_v35 = vunpack.c.l.b16 %v769_v41 }
  0xe7   : > { %3463 = vmatmul.bf16.gmra.mxu2 %v2229_v40  ;;  %3636 = vmatmul.bf16.gmra.mxu0 %v2372_v26  ;;  %v592_v40 = vshrl.u32 %v6258_v50, 16  ;;  %v4518_v26 = vld [vmem:[%s5693_s22 + $0x70] sm:$0xf] }
  0xe8   : > { %3399 = vmatmul.bf16.gmra.mxu1 %v2170_v1  ;;  %3552 = vmatmul.bf16.gmra.mxu3 %v5174_v11  ;;  %v1080_v47 = vshll.u32 %v4518_v26, 16  ;;  %v1084_v1 = vshrl.u32 %v4518_v26, 16  ;;  %v2152_v11 = vunpack.c.l.b16 %v577_v10  ;;  %v1077_v10 = vor.u32 %v1076_v37, %v1073_v49 }
  0xe9   : > { %v594_v26 = vrot.slane %v592_v40, 4  ;;  %v2230_v15 = vpack.c.b16 %v2206_v42, %v2205_v35  ;;  %v243_v40 = vld [vmem:[%s5693_s22 + $0xa8] sm:$0xf]  ;;  %v1092_v49 = vrot.slane %v1090_v28, 5 }
  0xea   : > { %v6262_v55 = vpop.f32.mrf.mxu2  ;;  %v1082_v41 = vrot.slane %v1080_v47, 5  ;;  %v1086_v2 = vrot.slane %v1084_v1, 4  ;;  %v1078_v63 = vrot.slane %v1077_v10, 4  ;;  %v2171_v1 = vpack.c.b16 %v2152_v11, %v6266_v61 }
  0xeb   : > { %v6273_v4 = vpop.f32.mrf.mxu3  ;;  %v778_v61 = vrot.slane %v6028_v12, 5  ;;  %v606_v11 = vshll.u32 %v243_v40, 16 }
  0xec   : > { %7645 = vst [vmem:[#allocation15_spill] sm:$0xff] %v6273_v4  ;;  %v3273_v19 = vpop.f32.mrf.mxu0  ;;  %v584_v4 = vrot.slane %v582_v13, 5  ;;  %v1087_v8 = vor.u32 %v1086_v2, %v1082_v41  ;;  %v4493_v2 = vrot.slane %v658_v20, 9  ;;  %v6304_v35 = vsel %vm5727_vm2, %v1078_v63, %v1082_v41 }
  0xed   : > { %v3362_v14 = vpop.f32.mrf.mxu1  ;;  %4278 = vst [vmem:[%s5918_s12 + $0x40] sm:$0xf] %v6304_v35  ;;  %v600_v20 = vrot.slane %v598_v5, 5 }
  0xee   : > { %v6279_v44 = vadd.f32 %v3362_v14, %v3273_v19  ;;  %v775_v19 = vrot.slane %v6004_v18, 5  ;;  %v2373_v14 = vpack.c.b16 %v2348_v29, %v2347_v60  ;;  %v585_v37 = vor.u32 %v584_v4, %v581_v54 }
  0xef   : > { %v595_v18 = vor.u32 %v594_v26, %v6283_v3  ;;  %v1088_v28 = vrot.slane %v1087_v8, 4  ;;  %v603_v4 = vshrl.u32 %v243_v40, 16  ;;  %v612_v60 = vshll.u32 %v6300_v23, 16  ;;  %v5247_v26 = vld [vmem:[%s7626_s1 + $0x178] sm:$0xff] }
  0xf0   : > { %v777_v31 = vrot.slane %v775_v19, 4  ;;  %v616_v29 = vshrl.u32 %v6300_v23, 16  ;;  %v586_v12 = vrot.slane %v585_v37, 4  ;;  %3692 = vmatpush.bf16.msrb.mxu1 %v5247_v26  ;;  %v776_v8 = vsel %vm5927_vm5, %v4493_v2, %v775_v19 }
  0xf1   : > { %v6315_v54 = vsel %vm5727_vm2, %v1088_v28, %v1092_v49  ;;  %v596_v41 = vrot.slane %v595_v18, 4  ;;  %v608_v40 = vrot.slane %v606_v11, 5  ;;  %v4519_v49 = vld [vmem:[%s5693_s22 + $0x78] sm:$0xf]  ;;  %v6342_v18 = vld [vmem:[%s5693_s22 + $0xb0] sm:$0x1]  ;;  %v2349_v11 = vunpack.c.l.b16 %v6243_v38 }
  0xf2   : > { %v6289_v62 = vpop.f32.mrf.mxu2  ;;  %4279 = vst [vmem:[%s5918_s12 + $0x44] sm:$0xf] %v6315_v54  ;;  %v618_v5 = vrot.slane %v616_v29, 4  ;;  %v591_v19 = vsel %vm5727_vm2, %v586_v12, %v6283_v3  ;;  %v1098_v2 = vshll.u32 %v4519_v49, 16  ;;  %v4520_v29 = vld [vmem:[%s5693_s22 + $0x7c] sm:$0xf] }
  0xf3   : > { %v6292_v13 = vpop.f32.mrf.mxu3  ;;  %v5245_v12 = vld [vmem:[%s7626_s1 + $0x168] sm:$0xff] }
  0xf4   : > { %7646 = vst [vmem:[#allocation16_spill] sm:$0xff] %v6292_v13  ;;  %v3276_v47 = vpop.f32.mrf.mxu0  ;;  %v659_v38 = vld [vmem:[%s5693_s22 + $0x6c] sm:$0xe]  ;;  %v1100_v13 = vrot.slane %v1098_v2, 5 }
  0xf5   : > { %v3365_v10 = vpop.f32.mrf.mxu1  ;;  %v4494_v2 = vrot.slane %v659_v38, 9  ;;  %v245_v38 = vld [vmem:[%s5693_s22 + $0xb4] sm:$0xf] }
  0xf6   : > { %v6306_v42 = vadd.f32 %v3365_v10, %v3276_v47  ;;  %v1095_v10 = vshrl.u32 %v4519_v49, 16  ;;  %v2153_v49 = vunpack.c.l.b16 %v591_v19 }
  0xf7   : > { %3468 = vmatmul.bf16.gmra.mxu2 %v2230_v15  ;;  %3641 = vmatmul.bf16.gmra.mxu0 %v2373_v14  ;;  %v779_v15 = vsel %vm5927_vm5, %v777_v31, %v778_v61  ;;  %v605_v14 = vrot.slane %v603_v4, 4  ;;  %v601_v31 = vsel %vm5727_vm2, %v596_v41, %v600_v20  ;;  %v2207_v61 = vunpack.c.l.b16 %v776_v8  ;;  %v4542_v41 = vld [vmem:[%s5693_s22 + $0x80] sm:$0x1] }
  0xf8   : > { %3404 = vmatmul.bf16.gmra.mxu1 %v2171_v1  ;;  %3557 = vmatmul.bf16.gmra.mxu3 %v5175_v45  ;;  %v6331_v1 = vrot.slane %v612_v60, 5  ;;  %v5246_v45 = vld [vmem:[%s7626_s1 + $0x170] sm:$0xff]  ;;  %v2208_v4 = vunpack.c.l.b16 %v779_v15  ;;  %v2350_v60 = vunpack.c.l.b16 %v6254_v39  ;;  %v1097_v20 = vrot.slane %v1095_v10, 4 }
  0xf9   : > { %3693 = vmatpush.bf16.msrb.mxu1 %v5246_v45  ;;  %v609_v3 = vor.u32 %v608_v40, %v605_v14  ;;  %v622_v8 = vshll.u32 %v6342_v18, 16  ;;  %v2154_v15 = vunpack.c.l.b16 %v601_v31  ;;  %v1104_v39 = vshll.u32 %v4520_v29, 16 }
  0xfa   : > { %v6322_v63 = vpop.f32.mrf.mxu2  ;;  %v1108_v45 = vshrl.u32 %v4520_v29, 16  ;;  %v2231_v57 = vpack.c.b16 %v2208_v4, %v2207_v61  ;;  %v1114_v14 = vshll.u32 %v4542_v41, 16  ;;  %v782_v10 = vrot.slane %v6043_v52, 5  ;;  %v5244_v61 = vld [vmem:[%s7626_s1 + $0x160] sm:$0xff]  ;;  %v5176_v29 = vld [vmem:[%s5693_s22 + $0x6c] sm:$0xff] }
  0xfb   : > { %7647 = vst [vmem:[#allocation17_spill] sm:$0xff] %v6322_v63  ;;  %v6329_v47 = vpop.f32.mrf.mxu3  ;;  %v1101_v19 = vor.u32 %v1100_v13, %v1097_v20  ;;  %v1106_v9 = vrot.slane %v1104_v39, 5  ;;  %v624_v31 = vrot.slane %v622_v8, 5  ;;  %v785_v8 = vrot.slane %v6069_v17, 5  ;;  %v5243_v17 = vld [vmem:[%s7626_s1 + $0x158] sm:$0xff] }
  0xfc   : > { %7648 = vst [vmem:[#allocation18_spill] sm:$0xff] %v6329_v47  ;;  %v3278_v37 = vpop.f32.mrf.mxu0  ;;  %v619_v47 = vor.u32 %v618_v5, %v6331_v1  ;;  %v1110_v4 = vrot.slane %v1108_v45, 4  ;;  %v1116_v13 = vrot.slane %v1114_v14, 5  ;;  %v784_v20 = vrot.slane %v782_v10, 4 }
  0xfd   : > { %v3367_v28 = vpop.f32.mrf.mxu1  ;;  %3694 = vmatpush.bf16.msrb.mxu1 %v5245_v12 }
  0xfe   : > { %v6347_v26 = vadd.f32 %v3367_v28, %v3278_v37  ;;  %v2374_v37 = vpack.c.b16 %v2350_v60, %v2349_v11  ;;  %v610_v28 = vrot.slane %v609_v3, 4  ;;  %v620_v63 = vrot.slane %v619_v47, 4 }
  0xff   : > { %v2172_v60 = vpack.c.b16 %v2154_v15, %v2153_v49  ;;  %v1102_v3 = vrot.slane %v1101_v19, 4  ;;  %v1111_v52 = vor.u32 %v1110_v4, %v1106_v9  ;;  %v783_v15 = vsel %vm5927_vm5, %v4494_v2, %v782_v10  ;;  %v4521_v19 = vld [vmem:[%s5693_s22 + $0x84] sm:$0xf]  ;;  %v5242_v4 = vld [vmem:[%s7626_s1 + $0x150] sm:$0xff] }
 0x100   : > { %v615_v47 = vsel %vm5727_vm2, %v610_v28, %v6331_v1  ;;  %v625_v49 = vsel %vm5727_vm2, %v620_v63, %v624_v31  ;;  %v627_v63 = vshrl.u32 %v245_v38, 16  ;;  %v786_v28 = vsel %vm5927_vm5, %v784_v20, %v785_v8  ;;  %v4522_v31 = vld [vmem:[%s5693_s22 + $0x88] sm:$0xf] }
 0x101   : > { %3695 = vmatpush.bf16.msrb.mxu1 %v5244_v61  ;;  %v6378_v39 = vsel %vm5727_vm2, %v1102_v3, %v1106_v9  ;;  %v1112_v45 = vrot.slane %v1111_v52, 4  ;;  %v6394_v14 = vunpack.c.l.b16 %v625_v49  ;;  %v2209_v10 = vunpack.c.l.b16 %v783_v15 }
 0x102   : > { %v6356_v40 = vpop.f32.mrf.mxu2  ;;  %4280 = vst [vmem:[%s5918_s12 + $0x48] sm:$0xf] %v6378_v39  ;;  %v630_v3 = vshll.u32 %v245_v38, 16  ;;  %v5241_v38 = vld [vmem:[%s7626_s1 + $0x148] sm:$0xff] }
 0x103   : > { %v6359_v5 = vpop.f32.mrf.mxu3  ;;  %v6390_v1 = vsel %vm5727_vm2, %v1112_v45, %v1116_v13 }
 0x104   : > { %7649 = vst [vmem:[#allocation19_spill] sm:$0xff] %v6359_v5  ;;  %v3281_v11 = vpop.f32.mrf.mxu0 }
 0x105   : > { %v3370_v12 = vpop.f32.mrf.mxu1  ;;  %3696 = vmatpush.bf16.msrb.mxu1 %v5243_v17  ;;  %4281 = vst [vmem:[%s5918_s12 + $0x4c] sm:$0xf] %v6390_v1  ;;  %v2210_v17 = vunpack.c.l.b16 %v786_v28  ;;  %v6419_v28 = vld [vmem:[%s5693_s22 + $0xbc] sm:$0x1] }
 0x106   : > { %v6365_v41 = vadd.f32 %v3370_v12, %v3281_v11  ;;  %v1119_v11 = vshrl.u32 %v4521_v19, 16 }
 0x107   : > { %3473 = vmatmul.bf16.gmra.mxu2 %v2231_v57  ;;  %3646 = vmatmul.bf16.gmra.mxu0 %v2374_v37  ;;  %v6386_v57 = vld [vmem:[%s5693_s22 + $0xb8] sm:$0xf]  ;;  %v6392_v37 = vunpack.c.l.b16 %v615_v47  ;;  %v1132_v47 = vshrl.u32 %v4522_v31, 16 }
 0x108   : > { %3409 = vmatmul.bf16.gmra.mxu1 %v2172_v60  ;;  %3562 = vmatmul.bf16.gmra.mxu3 %v5176_v29  ;;  %v1122_v60 = vshll.u32 %v4521_v19, 16  ;;  %v1128_v29 = vshll.u32 %v4522_v31, 16  ;;  %v636_v52 = vshll.u32 %v6386_v57, 16  ;;  %v640_v13 = vshrl.u32 %v6386_v57, 16  ;;  %v4543_v19 = vld [vmem:[%s5693_s22 + $0x8c] sm:$0x1] }
 0x109   : > { %3697 = vmatpush.bf16.msrb.mxu1 %v5242_v4  ;;  %v1134_v5 = vrot.slane %v1132_v47, 4  ;;  %v2352_v31 = vunpack.c.l.b16 %v6315_v54  ;;  %v1138_v4 = vshll.u32 %v4543_v19, 16  ;;  %v2173_v47 = vpack.c.b16 %v6394_v14, %v6392_v37 }
 0x10a   : > { %v3434_v9 = vpop.f32.mrf.mxu2  ;;  %v1124_v49 = vrot.slane %v1122_v60, 5  ;;  %v1130_v15 = vrot.slane %v1128_v29, 5  ;;  %v6416_v60 = vrot.slane %v636_v52, 5  ;;  %v642_v29 = vrot.slane %v640_v13, 4  ;;  %v660_v13 = vld [vmem:[%s5693_s22 + $0x78] sm:$0xe] }
 0x10b   : > { %v3435_v2 = vadd.f32 %v3434_v9, %v6084_v56  ;;  %v3523_v61 = vpop.f32.mrf.mxu3  ;;  %v1121_v56 = vrot.slane %v1119_v11, 4  ;;  %v2351_v9 = vunpack.c.l.b16 %v6304_v35  ;;  %v632_v11 = vrot.slane %v630_v3, 5 }
 0x10c   : > { %v3283_v12 = vpop.f32.mrf.mxu0  ;;  %v789_v54 = vrot.slane %v6087_v46, 5  ;;  %v5177_v46 = vld [vmem:[%s5693_s22 + $0x78] sm:$0xff] }
 0x10d   : > { %v3524_v20 = vadd.f32 %v3523_v61, %v3435_v2  ;;  %v3372_v8 = vpop.f32.mrf.mxu1  ;;  %v629_v2 = vrot.slane %v627_v63, 4  ;;  %v1125_v61 = vor.u32 %v1124_v49, %v1121_v56  ;;  %3698 = vmatpush.bf16.msrb.mxu1 %v5241_v38  ;;  %v1140_v56 = vrot.slane %v1138_v4, 5  ;;  %v5240_v38 = vld [vmem:[%s7626_s1 + $0x140] sm:$0xff] }
 0x10e   : > { %v6408_v45 = vadd.f32 %v3372_v8, %v3283_v12  ;;  %v1135_v12 = vor.u32 %v1134_v5, %v1130_v15  ;;  %v2232_v49 = vpack.c.b16 %v2210_v17, %v2209_v10  ;;  %v2375_v5 = vpack.c.b16 %v2352_v31, %v2351_v9 }
 0x10f   : > { %v1126_v35 = vrot.slane %v1125_v61, 4  ;;  %v633_v14 = vor.u32 %v632_v11, %v629_v2  ;;  %v643_v61 = vor.u32 %v642_v29, %v6416_v60  ;;  %v791_v2 = vrot.slane %v789_v54, 4 }
 0x110   : > { %v1136_v63 = vrot.slane %v1135_v12, 4  ;;  %v792_v4 = vrot.slane %v6120_v7, 5 }
 0x111   : > { %v6431_v19 = vsel %vm5727_vm2, %v1126_v35, %v1130_v15  ;;  %3699 = vmatpush.bf16.msrb.mxu1 %v5240_v38  ;;  %v4495_v15 = vrot.slane %v660_v13, 9  ;;  %v634_v11 = vrot.slane %v633_v14, 4  ;;  %v644_v29 = vrot.slane %v643_v61, 4 }
 0x112   : > { %v3436_v8 = vpop.f32.mrf.mxu2  ;;  %v6438_v10 = vsel %vm5727_vm2, %v1136_v63, %v1140_v56  ;;  %4282 = vst [vmem:[%s5918_s12 + $0x50] sm:$0xf] %v6431_v19  ;;  %v4523_v63 = vld [vmem:[%s5693_s22 + $0x90] sm:$0xf]  ;;  %v4524_v56 = vld [vmem:[%s5693_s22 + $0x94] sm:$0xf] }
 0x113   : > { %v3437_v3 = vadd.f32 %v3436_v8, %v6117_v34  ;;  %v3525_v52 = vpop.f32.mrf.mxu3  ;;  %v646_v34 = vshll.u32 %v6419_v28, 16  ;;  %4283 = vst [vmem:[%s5918_s12 + $0x54] sm:$0xf] %v6438_v10  ;;  %v793_v8 = vsel %vm5927_vm5, %v791_v2, %v792_v4  ;;  %v639_v13 = vsel %vm5727_vm2, %v634_v11, %v6416_v60  ;;  %v4544_v2 = vld [vmem:[%s5693_s22 + $0x98] sm:$0x1] }
 0x114   : > { %v3612_v37 = vpop.f32.mrf.mxu0  ;;  %v1156_v38 = vshrl.u32 %v4524_v56, 16  ;;  %v2354_v60 = vunpack.c.l.b16 %v6390_v1  ;;  %v661_v1 = vld [vmem:[%s5693_s22 + $0x84] sm:$0xe] }
 0x115   : > { %v3526_v17 = vadd.f32 %v3525_v52, %v3437_v3  ;;  %v6442_v9 = vpop.f32.mrf.mxu1  ;;  %v6444_v31 = vadd.f32 %v3612_v37, %v3524_v20  ;;  %v648_v12 = vrot.slane %v646_v34, 5  ;;  %v790_v20 = vsel %vm5927_vm5, %v4495_v15, %v789_v54 }
 0x116   : > { %v1143_v52 = vshrl.u32 %v4523_v63, 16  ;;  %v2211_v34 = vunpack.c.l.b16 %v790_v20  ;;  %v2212_v15 = vunpack.c.l.b16 %v793_v8 }
 0x117   : > { %3478 = vmatmul.bf16.gmra.mxu2 %v2232_v49  ;;  %3651 = vmatmul.bf16.gmra.mxu0 %v2375_v5  ;;  %v1146_v49 = vshll.u32 %v4523_v63, 16  ;;  %v649_v54 = vsel %vm5727_vm2, %v644_v29, %v648_v12  ;;  %v2353_v63 = vunpack.c.l.b16 %v6378_v39  ;;  %v1162_v29 = vshll.u32 %v4544_v2, 16 }
 0x118   : > { %3414 = vmatmul.bf16.gmra.mxu1 %v2173_v47  ;;  %3567 = vmatmul.bf16.gmra.mxu3 %v5177_v46  ;;  %v1152_v47 = vshll.u32 %v4524_v56, 16  ;;  %v2157_v12 = vunpack.c.l.b16 %v639_v13  ;;  %v2158_v56 = vunpack.c.l.b16 %v649_v54  ;;  %v2233_v20 = vpack.c.b16 %v2212_v15, %v2211_v34 }
 0x119   : > { %v1148_v61 = vrot.slane %v1146_v49, 5  ;;  %v2376_v39 = vpack.c.b16 %v2354_v60, %v2353_v63  ;;  %v799_v60 = vrot.slane %v6175_v59, 5 }
 0x11a   : > { %v3439_v35 = vpop.f32.mrf.mxu2  ;;  %v1154_v4 = vrot.slane %v1152_v47, 5 }
 0x11b   : > { %v3440_v3 = vadd.f32 %v3439_v35, %v6139_v16  ;;  %v3528_v7 = vpop.f32.mrf.mxu3  ;;  %v1145_v16 = vrot.slane %v1143_v52, 4  ;;  %v1158_v35 = vrot.slane %v1156_v38, 4  ;;  %v1164_v52 = vrot.slane %v1162_v29, 5 }
 0x11c   : > { %v3614_v5 = vpop.f32.mrf.mxu0  ;;  %v2174_v38 = vpack.c.b16 %v2158_v56, %v2157_v12 }
 0x11d   : > { %v3529_v37 = vadd.f32 %v3528_v7, %v3440_v3  ;;  %v6461_v46 = vpop.f32.mrf.mxu1  ;;  %v6463_v14 = vadd.f32 %v3614_v5, %v3526_v17  ;;  %v1149_v11 = vor.u32 %v1148_v61, %v1145_v16  ;;  %v1159_v17 = vor.u32 %v1158_v35, %v1154_v4  ;;  %v5178_v16 = vld [vmem:[%s5693_s22 + $0x84] sm:$0xff]  ;;  %v5439_v61 = vld [vmem:[%s5693_s22 + $0x10] sm:$0xf] }
 0x11e   : > { %v796_v5 = vrot.slane %v6142_v22, 5  ;;  %v1328_v34 = vrot.slane %v5439_v61, 5  ;;  %v4496_v35 = vrot.slane %v661_v1, 9 }
 0x11f   : > { %v1150_v3 = vrot.slane %v1149_v11, 4  ;;  %v1160_v8 = vrot.slane %v1159_v17, 4  ;;  %v5440_v11 = vld [vmem:[%s5693_s22 + $0x14] sm:$0x1] }
 0x120   : > { %v798_v63 = vrot.slane %v796_v5, 4  ;;  %v1331_v29 = vrot.slane %v5440_v11, 5  ;;  %v1330_v56 = vrot.slane %v1328_v34, 4 }
 0x121   : > { %v6473_v13 = vsel %vm5727_vm2, %v1150_v3, %v1154_v4  ;;  %v4549_v4 = vld [vmem:[%s5693_s22 + $0xc] sm:$0xe]  ;;  %v4525_v3 = vld [vmem:[%s5693_s22 + $0x9c] sm:$0xf] }
 0x122   : > { %v3441_v7 = vpop.f32.mrf.mxu2  ;;  %4284 = vst [vmem:[%s5918_s12 + $0x58] sm:$0xf] %v6473_v13  ;;  %v4565_v12 = vrot.slane %v4549_v4, 9  ;;  %v1167_v59 = vshrl.u32 %v4525_v3, 16  ;;  %v1332_v1 = vsel %vm5927_vm5, %v1330_v56, %v1331_v29 }
 0x123   : > { %v3442_v49 = vadd.f32 %v3441_v7, %v6172_v53  ;;  %v3530_v47 = vpop.f32.mrf.mxu3  ;;  %v6479_v53 = vsel %vm5727_vm2, %v1160_v8, %v1164_v52  ;;  %v4526_v7 = vld [vmem:[%s5693_s22 + $0xa0] sm:$0xf] }
 0x124   : > { %v3617_v54 = vpop.f32.mrf.mxu0  ;;  %4285 = vst [vmem:[%s5918_s12 + $0x5c] sm:$0xf] %v6479_v53  ;;  %v1169_v61 = vrot.slane %v1167_v59, 4 }
 0x125   : > { %v3531_v15 = vadd.f32 %v3530_v47, %v3442_v49  ;;  %v6483_v2 = vpop.f32.mrf.mxu1  ;;  %v6485_v22 = vadd.f32 %v3617_v54, %v3529_v37  ;;  %v797_v37 = vsel %vm5927_vm5, %v4496_v35, %v796_v5  ;;  %v1170_v49 = vshll.u32 %v4525_v3, 16 }
 0x126   : > { %v1176_v54 = vshll.u32 %v4526_v7, 16  ;;  %v1180_v5 = vshrl.u32 %v4526_v7, 16  ;;  %v2213_v35 = vunpack.c.l.b16 %v797_v37  ;;  %v2400_v7 = vunpack.c.l.b16 %v1332_v1 }
 0x127   : > { %3483 = vmatmul.bf16.gmra.mxu2 %v2233_v20  ;;  %3656 = vmatmul.bf16.gmra.mxu0 %v2376_v39  ;;  %v800_v20 = vsel %vm5927_vm5, %v798_v63, %v799_v60  ;;  %v1329_v39 = vsel %vm5927_vm5, %v4565_v12, %v1328_v34  ;;  %v1172_v4 = vrot.slane %v1170_v49, 5  ;;  %v4545_v60 = vld [vmem:[%s5693_s22 + $0xa4] sm:$0x1]  ;;  %v2355_v34 = vunpack.c.l.b16 %v6431_v19 }
 0x128   : > { %3419 = vmatmul.bf16.gmra.mxu1 %v2174_v38  ;;  %3572 = vmatmul.bf16.gmra.mxu3 %v5178_v16  ;;  %v2214_v63 = vunpack.c.l.b16 %v800_v20  ;;  %v1178_v11 = vrot.slane %v1176_v54, 5  ;;  %v2356_v12 = vunpack.c.l.b16 %v6438_v10  ;;  %v1186_v56 = vshll.u32 %v4545_v60, 16  ;;  %v662_v10 = vld [vmem:[%s5693_s22 + $0x90] sm:$0xe] }
 0x129   : > { %v1173_v29 = vor.u32 %v1172_v4, %v1169_v61  ;;  %v2399_v3 = vunpack.c.l.b16 %v1329_v39  ;;  %v803_v54 = vrot.slane %v6197_v58, 5  ;;  %v5441_v4 = vld [vmem:[%s5693_s22 + $0x1c] sm:$0xf] }
 0x12a   : > { %v3444_v17 = vpop.f32.mrf.mxu2  ;;  %v2234_v37 = vpack.c.b16 %v2214_v63, %v2213_v35  ;;  %v1188_v59 = vrot.slane %v1186_v56, 5  ;;  %v2377_v19 = vpack.c.b16 %v2356_v12, %v2355_v34  ;;  %v1335_v35 = vrot.slane %v5441_v4, 5 }
 0x12b   : > { %v3445_v8 = vadd.f32 %v3444_v17, %v6194_v27  ;;  %v3533_v52 = vpop.f32.mrf.mxu3  ;;  %v1182_v17 = vrot.slane %v1180_v5, 4  ;;  %v5179_v5 = vld [vmem:[%s5693_s22 + $0x90] sm:$0xff]  ;;  %v2431_v61 = vpack.c.b16 %v2400_v7, %v2399_v3  ;;  %v805_v34 = vrot.slane %v803_v54, 4  ;;  %v5442_v3 = vld [vmem:[%s5693_s22 + $0x20] sm:$0x1] }
 0x12c   : > { %v3619_v47 = vpop.f32.mrf.mxu0  ;;  %v806_v12 = vrot.slane %v6228_v51, 5  ;;  %v1337_v56 = vrot.slane %v1335_v35, 4  ;;  %v1338_v7 = vrot.slane %v5442_v3, 5 }
 0x12d   : > { %v3534_v38 = vadd.f32 %v3533_v52, %v3445_v8  ;;  %v6503_v16 = vpop.f32.mrf.mxu1  ;;  %v6505_v27 = vadd.f32 %v3619_v47, %v3531_v15  ;;  %v1183_v15 = vor.u32 %v1182_v17, %v1178_v11  ;;  %v1174_v8 = vrot.slane %v1173_v29, 4 }
 0x12e   : > { %v4497_v17 = vrot.slane %v662_v10, 9  ;;  %v1339_v10 = vsel %vm5927_vm5, %v1337_v56, %v1338_v7 }
 0x12f   : > { %v1184_v20 = vrot.slane %v1183_v15, 4  ;;  %v6515_v39 = vsel %vm5727_vm2, %v1174_v8, %v1178_v11  ;;  %v4550_v11 = vld [vmem:[%s5693_s22 + $0x18] sm:$0xe]  ;;  %v4527_v8 = vld [vmem:[%s5693_s22 + $0xa8] sm:$0xf] }
 0x130   : > { %4286 = vst [vmem:[%s5918_s12 + $0x60] sm:$0xf] %v6515_v39  ;;  %v4566_v29 = vrot.slane %v4550_v11, 9  ;;  %v1191_v51 = vshrl.u32 %v4527_v8, 16 }
 0x131   : > { %v6521_v63 = vsel %vm5727_vm2, %v1184_v20, %v1188_v59 }
 0x132   : > { %v3446_v52 = vpop.f32.mrf.mxu2  ;;  %4287 = vst [vmem:[%s5918_s12 + $0x64] sm:$0xf] %v6521_v63  ;;  %v1193_v4 = vrot.slane %v1191_v51, 4 }
 0x133   : > { %v3447_v49 = vadd.f32 %v3446_v52, %v6225_v43  ;;  %v3535_v47 = vpop.f32.mrf.mxu3  ;;  %v4528_v52 = vld [vmem:[%s5693_s22 + $0xac] sm:$0xf] }
 0x134   : > { %v3622_v1 = vpop.f32.mrf.mxu0 }
 0x135   : > { %v3536_v43 = vadd.f32 %v3535_v47, %v3447_v49  ;;  %v6525_v60 = vpop.f32.mrf.mxu1  ;;  %v6527_v58 = vadd.f32 %v3622_v1, %v3534_v38  ;;  %v804_v38 = vsel %vm5927_vm5, %v4497_v17, %v803_v54  ;;  %v1194_v49 = vshll.u32 %v4527_v8, 16 }
 0x136   : > { %v1200_v1 = vshll.u32 %v4528_v52, 16  ;;  %v1204_v54 = vshrl.u32 %v4528_v52, 16  ;;  %v2215_v17 = vunpack.c.l.b16 %v804_v38  ;;  %v2402_v52 = vunpack.c.l.b16 %v1339_v10 }
 0x137   : > { %3488 = vmatmul.bf16.gmra.mxu2 %v2234_v37  ;;  %3661 = vmatmul.bf16.gmra.mxu0 %v2377_v19  ;;  %v807_v37 = vsel %vm5927_vm5, %v805_v34, %v806_v12  ;;  %v1336_v19 = vsel %vm5927_vm5, %v4566_v29, %v1335_v35  ;;  %v1196_v11 = vrot.slane %v1194_v49, 5  ;;  %v4546_v12 = vld [vmem:[%s5693_s22 + $0xb0] sm:$0x1]  ;;  %v2357_v35 = vunpack.c.l.b16 %v6473_v13 }
 0x138   : > { %3577 = vmatmul.bf16.gmra.mxu3 %v5179_v5  ;;  %3700 = vmatmul.bf16.vlgmr.msrb.gmra.mxu1 %v2431_v61  ;;  %v2216_v34 = vunpack.c.l.b16 %v807_v37  ;;  %v1202_v3 = vrot.slane %v1200_v1, 5  ;;  %v2358_v29 = vunpack.c.l.b16 %v6479_v53  ;;  %v1210_v7 = vshll.u32 %v4546_v12, 16  ;;  %v663_v53 = vld [vmem:[%s5693_s22 + $0x9c] sm:$0xe] }
 0x139   : > { %v1197_v56 = vor.u32 %v1196_v11, %v1193_v4  ;;  %v2401_v8 = vunpack.c.l.b16 %v1336_v19  ;;  %v810_v1 = vrot.slane %v6258_v50, 5  ;;  %v5443_v11 = vld [vmem:[%s5693_s22 + $0x28] sm:$0xf] }
 0x13a   : > { %v3449_v15 = vpop.f32.mrf.mxu2  ;;  %v2235_v38 = vpack.c.b16 %v2216_v34, %v2215_v17  ;;  %v1212_v51 = vrot.slane %v1210_v7, 5  ;;  %v2378_v13 = vpack.c.b16 %v2358_v29, %v2357_v35  ;;  %v1342_v17 = vrot.slane %v5443_v11, 5 }
 0x13b   : > { %v3450_v20 = vadd.f32 %v3449_v15, %v6245_v25  ;;  %v3538_v59 = vpop.f32.mrf.mxu3  ;;  %v1206_v15 = vrot.slane %v1204_v54, 4  ;;  %v5180_v54 = vld [vmem:[%s5693_s22 + $0x9c] sm:$0xff]  ;;  %v2432_v4 = vpack.c.b16 %v2402_v52, %v2401_v8  ;;  %v812_v35 = vrot.slane %v810_v1, 4  ;;  %v5444_v52 = vld [vmem:[%s5693_s22 + $0x2c] sm:$0x1] }
 0x13c   : > { %v3624_v47 = vpop.f32.mrf.mxu0  ;;  %v813_v29 = vrot.slane %v6286_v36, 5  ;;  %v1344_v8 = vrot.slane %v1342_v17, 4 }
 0x13d   : > { %v3539_v5 = vadd.f32 %v3538_v59, %v3450_v20  ;;  %v6545_v61 = vpop.f32.mrf.mxu1  ;;  %v6547_v25 = vadd.f32 %v3624_v47, %v3536_v43  ;;  %v1207_v43 = vor.u32 %v1206_v15, %v1202_v3  ;;  %v1198_v20 = vrot.slane %v1197_v56, 4  ;;  %v4551_v15 = vld [vmem:[%s5693_s22 + $0x24] sm:$0xe]  ;;  %v5255_v56 = vld [vmem:[%s7626_s1 + $0x1b8] sm:$0xff] }
 0x13e   : > { %v4567_v7 = vrot.slane %v4551_v15, 9  ;;  %3781 = vmatpush.bf16.msra.mxu2 %v5255_v56 }
 0x13f   : > { %v1208_v37 = vrot.slane %v1207_v43, 4  ;;  %v6557_v19 = vsel %vm5727_vm2, %v1198_v20, %v1202_v3  ;;  %v4498_v3 = vrot.slane %v663_v53, 9  ;;  %v1345_v43 = vrot.slane %v5444_v52, 5 }
 0x140   : > { %4288 = vst [vmem:[%s5918_s12 + $0x68] sm:$0xf] %v6557_v19 }
 0x141   : > { %v6563_v34 = vsel %vm5727_vm2, %v1208_v37, %v1212_v51  ;;  %v811_v36 = vsel %vm5927_vm5, %v4498_v3, %v810_v1  ;;  %v1343_v1 = vsel %vm5927_vm5, %v4567_v7, %v1342_v17  ;;  %v5253_v17 = vld [vmem:[%s7626_s1 + $0x1a8] sm:$0xff] }
 0x142   : > { %v3451_v59 = vpop.f32.mrf.mxu2  ;;  %4289 = vst [vmem:[%s5918_s12 + $0x6c] sm:$0xf] %v6563_v34  ;;  %v5261_v7 = vld [vmem:[%s7626_s1 + $0x1e8] sm:$0xff] }
 0x143   : > { %v3452_v49 = vadd.f32 %v3451_v59, %v6279_v44  ;;  %v3540_v47 = vpop.f32.mrf.mxu3  ;;  %v4529_v59 = vld [vmem:[%s5693_s22 + $0xb4] sm:$0xf] }
 0x144   : > { %v3627_v10 = vpop.f32.mrf.mxu0  ;;  %v1215_v53 = vshrl.u32 %v4529_v59, 16 }
 0x145   : > { %v3541_v44 = vadd.f32 %v3540_v47, %v3452_v49  ;;  %v6567_v12 = vpop.f32.mrf.mxu1  ;;  %v6569_v50 = vadd.f32 %v3627_v10, %v3539_v5  ;;  %v5263_v5 = vld [vmem:[%s7626_s1 + $0x1f8] sm:$0xff]  ;;  %v814_v49 = vsel %vm5927_vm5, %v812_v35, %v813_v29  ;;  %v5254_v47 = vld [vmem:[%s7626_s1 + $0x1b0] sm:$0xff]  ;;  %v1218_v10 = vshll.u32 %v4529_v59, 16 }
 0x146   : > { %3870 = vmatpush.bf16.msra.mxu3 %v5263_v5  ;;  %3782 = vmatpush.bf16.msra.mxu2 %v5254_v47  ;;  %v1217_v29 = vrot.slane %v1215_v53, 4  ;;  %v2217_v5 = vunpack.c.l.b16 %v811_v36  ;;  %v2218_v52 = vunpack.c.l.b16 %v814_v49  ;;  %v2360_v59 = vunpack.c.l.b16 %v6521_v63 }
 0x147   : > { %3493 = vmatmul.bf16.gmra.mxu2 %v2235_v38  ;;  %3666 = vmatmul.bf16.gmra.mxu0 %v2378_v13  ;;  %v4530_v38 = vld [vmem:[%s5693_s22 + $0xb8] sm:$0xf]  ;;  %v5262_v13 = vld [vmem:[%s7626_s1 + $0x1f0] sm:$0xff]  ;;  %v1220_v56 = vrot.slane %v1218_v10, 5  ;;  %v2403_v36 = vunpack.c.l.b16 %v1343_v1  ;;  %v817_v53 = vrot.slane %v6300_v23, 5 }
 0x148   : > { %3582 = vmatmul.bf16.gmra.mxu3 %v5180_v54  ;;  %3705 = vmatmul.bf16.gmra.mxu1 %v2432_v4  ;;  %v1224_v4 = vshll.u32 %v4530_v38, 16  ;;  %v1228_v11 = vshrl.u32 %v4530_v38, 16  ;;  %v664_v1 = vld [vmem:[%s5693_s22 + $0xa8] sm:$0xe] }
 0x149   : > { %v1221_v38 = vor.u32 %v1220_v56, %v1217_v29  ;;  %v5260_v29 = vld [vmem:[%s7626_s1 + $0x1e0] sm:$0xff] }
 0x14a   : > { %v3454_v20 = vpop.f32.mrf.mxu2  ;;  %3871 = vmatpush.bf16.msra.mxu3 %v5262_v13  ;;  %3783 = vmatpush.bf16.msra.mxu2 %v5253_v17 }
 0x14b   : > { %v3455_v37 = vadd.f32 %v3454_v20, %v6306_v42  ;;  %v3543_v51 = vpop.f32.mrf.mxu3  ;;  %v1346_v42 = vsel %vm5927_vm5, %v1344_v8, %v1345_v43  ;;  %v4547_v8 = vld [vmem:[%s5693_s22 + $0xbc] sm:$0x1]  ;;  %v1226_v43 = vrot.slane %v1224_v4, 5  ;;  %v1230_v20 = vrot.slane %v1228_v11, 4 }
 0x14c   : > { %v3629_v54 = vpop.f32.mrf.mxu0  ;;  %v1222_v47 = vrot.slane %v1221_v38, 4  ;;  %v2236_v4 = vpack.c.b16 %v2218_v52, %v2217_v5  ;;  %v5445_v5 = vld [vmem:[%s5693_s22 + $0x34] sm:$0xf]  ;;  %v819_v38 = vrot.slane %v817_v53, 4 }
 0x14d   : > { %v3544_v15 = vadd.f32 %v3543_v51, %v3455_v37  ;;  %v6599_v3 = vpop.f32.mrf.mxu1  ;;  %v6601_v35 = vadd.f32 %v3629_v54, %v3541_v44  ;;  %v2359_v44 = vunpack.c.l.b16 %v6515_v39  ;;  %v1234_v37 = vshll.u32 %v4547_v8, 16 }
 0x14e   : > { %v2404_v51 = vunpack.c.l.b16 %v1346_v42  ;;  %v1231_v49 = vor.u32 %v1230_v20, %v1226_v43  ;;  %3872 = vmatpush.bf16.msra.mxu3 %v5261_v7  ;;  %v5252_v42 = vld [vmem:[%s7626_s1 + $0x1a0] sm:$0xff]  ;;  %v6623_v23 = vsel %vm5727_vm2, %v1222_v47, %v1226_v43  ;;  %v1349_v52 = vrot.slane %v5445_v5, 5  ;;  %v5446_v47 = vld [vmem:[%s5693_s22 + $0x38] sm:$0x1] }
 0x14f   : > { %v1236_v54 = vrot.slane %v1234_v37, 5  ;;  %v2379_v11 = vpack.c.b16 %v2360_v59, %v2359_v44  ;;  %4290 = vst [vmem:[%s5918_s12 + $0x70] sm:$0xf] %v6623_v23  ;;  %v4552_v59 = vld [vmem:[%s5693_s22 + $0x30] sm:$0xe]  ;;  %3784 = vmatpush.bf16.msra.mxu2 %v5252_v42  ;;  %v4499_v43 = vrot.slane %v664_v1, 9 }
 0x150   : > { %v1232_v10 = vrot.slane %v1231_v49, 4  ;;  %v2433_v17 = vpack.c.b16 %v2404_v51, %v2403_v36  ;;  %v820_v37 = vrot.slane %v6342_v18, 5  ;;  %v5251_v36 = vld [vmem:[%s7626_s1 + $0x198] sm:$0xff]  ;;  %v4568_v49 = vrot.slane %v4552_v59, 9  ;;  %v5250_v42 = vld [vmem:[%s7626_s1 + $0x190] sm:$0xff] }
 0x151   : > { %v5271_v51 = vld [vmem:[%s7626_s1 + $0x238] sm:$0xff]  ;;  %v1351_v18 = vrot.slane %v1349_v52, 4 }
 0x152   : > { %v3456_v13 = vpop.f32.mrf.mxu2  ;;  %v6629_v7 = vsel %vm5727_vm2, %v1232_v10, %v1236_v54  ;;  %3873 = vmatpush.bf16.msra.mxu3 %v5260_v29  ;;  %v818_v54 = vsel %vm5927_vm5, %v4499_v43, %v817_v53  ;;  %3959 = vmatpush.bf16.msra.mxu0 %v5271_v51  ;;  %v5258_v29 = vld [vmem:[%s7626_s1 + $0x1d0] sm:$0xff] }
 0x153   : > { %v3457_v39 = vadd.f32 %v3456_v13, %v6347_v26  ;;  %v3545_v63 = vpop.f32.mrf.mxu3  ;;  %v5181_v26 = vld [vmem:[%s5693_s22 + $0xa8] sm:$0xff]  ;;  %4291 = vst [vmem:[%s5918_s12 + $0x74] sm:$0xf] %v6629_v7  ;;  %v1352_v13 = vrot.slane %v5446_v47, 5  ;;  %3785 = vmatpush.bf16.msra.mxu2 %v5251_v36  ;;  %v5270_v53 = vld [vmem:[%s7626_s1 + $0x230] sm:$0xff]  ;;  %v2219_v47 = vunpack.c.l.b16 %v818_v54  ;;  %v2362_v54 = vunpack.c.l.b16 %v6563_v34 }
 0x154   : > { %v3632_v56 = vpop.f32.mrf.mxu0 }
 0x155   : > { %v3546_v8 = vadd.f32 %v3545_v63, %v3457_v39  ;;  %v6633_v20 = vpop.f32.mrf.mxu1  ;;  %v6635_v44 = vadd.f32 %v3632_v56, %v3544_v15  ;;  %v5259_v15 = vld [vmem:[%s7626_s1 + $0x1d8] sm:$0xff]  ;;  %v821_v39 = vsel %vm5927_vm5, %v819_v38, %v820_v37  ;;  %v4531_v63 = vld [vmem:[%s5693_s22 + $0xc0] sm:$0xf]  ;;  %v1353_v59 = vsel %vm5927_vm5, %v1351_v18, %v1352_v13 }
 0x156   : > { %3874 = vmatpush.bf16.msra.mxu3 %v5259_v15  ;;  %v1239_v56 = vshrl.u32 %v4531_v63, 16  ;;  %3960 = vmatpush.bf16.msra.mxu0 %v5270_v53 }
 0x157   : > { %3498 = vmatmul.bf16.gmra.mxu2 %v2236_v4  ;;  %3671 = vmatmul.bf16.gmra.mxu0 %v2379_v11  ;;  %v4532_v4 = vld [vmem:[%s5693_s22 + $0xc4] sm:$0xf] }
 0x158   : > { %3587 = vmatmul.bf16.gmra.mxu3 %v5181_v26  ;;  %3710 = vmatmul.bf16.gmra.mxu1 %v2433_v17  ;;  %v1242_v26 = vshll.u32 %v4531_v63, 16  ;;  %v1248_v17 = vshll.u32 %v4532_v4, 16  ;;  %v1252_v43 = vshrl.u32 %v4532_v4, 16  ;;  %v1241_v36 = vrot.slane %v1239_v56, 4 }
 0x159   : > { %3786 = vmatpush.bf16.msra.mxu2 %v5250_v42  ;;  %v2361_v63 = vunpack.c.l.b16 %v6557_v19 }
 0x15a   : > { %v3459_v10 = vpop.f32.mrf.mxu2  ;;  %3875 = vmatpush.bf16.msra.mxu3 %v5258_v29  ;;  %v1244_v15 = vrot.slane %v1242_v26, 5  ;;  %v1250_v18 = vrot.slane %v1248_v17, 5  ;;  %v1254_v13 = vrot.slane %v1252_v43, 4 }
 0x15b   : > { %v3460_v11 = vadd.f32 %v3459_v10, %v6365_v41  ;;  %v3548_v1 = vpop.f32.mrf.mxu3  ;;  %v1350_v41 = vsel %vm5927_vm5, %v4568_v49, %v1349_v52  ;;  %v2220_v10 = vunpack.c.l.b16 %v821_v39  ;;  %v5249_v52 = vld [vmem:[%s7626_s1 + $0x188] sm:$0xff]  ;;  %v2380_v43 = vpack.c.b16 %v2362_v54, %v2361_v63 }
 0x15c   : > { %v3634_v5 = vpop.f32.mrf.mxu0  ;;  %v5257_v49 = vld [vmem:[%s7626_s1 + $0x1c8] sm:$0xff]  ;;  %v1245_v4 = vor.u32 %v1244_v15, %v1241_v36  ;;  %v1255_v42 = vor.u32 %v1254_v13, %v1250_v18  ;;  %v5256_v36 = vld [vmem:[%s7626_s1 + $0x1c0] sm:$0xff] }
 0x15d   : > { %v3549_v38 = vadd.f32 %v3548_v1, %v3460_v11  ;;  %v6671_v37 = vadd.f32 %v3634_v5, %v3546_v8  ;;  %v6673_v51 = vpop.f32.mrf.mxu1  ;;  %v5269_v8 = vld [vmem:[%s7626_s1 + $0x228] sm:$0xff]  ;;  %v2405_v11 = vunpack.c.l.b16 %v1350_v41  ;;  %v2406_v1 = vunpack.c.l.b16 %v1353_v59  ;;  %3787 = vmatpush.bf16.msra.mxu2 %v5249_v52  ;;  %v5248_v59 = vld [vmem:[%s7626_s1 + $0x180] sm:$0xff]  ;;  %v665_v52 = vld [vmem:[%s5693_s22 + $0xb4] sm:$0xe] }
 0x15e   : > { %v4548_v39 = vld [vmem:[%s5693_s22 + $0xc8] sm:$0x1]  ;;  %3876 = vmatpush.bf16.msra.mxu3 %v5257_v49  ;;  %v1246_v53 = vrot.slane %v1245_v4, 4  ;;  %v2237_v26 = vpack.c.b16 %v2220_v10, %v2219_v47  ;;  %3961 = vmatpush.bf16.msra.mxu0 %v5269_v8  ;;  %v1256_v17 = vrot.slane %v1255_v42, 4  ;;  %v824_v41 = vrot.slane %v6386_v57, 5  ;;  %v5268_v15 = vld [vmem:[%s7626_s1 + $0x220] sm:$0xff] }
 0x15f   : > { %v1258_v29 = vshll.u32 %v4548_v39, 16  ;;  %v5182_v10 = vld [vmem:[%s5693_s22 + $0xb4] sm:$0xff]  ;;  %v2434_v57 = vpack.c.b16 %v2406_v1, %v2405_v11  ;;  %v5447_v49 = vld [vmem:[%s5693_s22 + $0x40] sm:$0xf]  ;;  %v4553_v39 = vld [vmem:[%s5693_s22 + $0x3c] sm:$0xe] }
 0x160   : > { %v1356_v8 = vrot.slane %v5447_v49, 5  ;;  %v826_v4 = vrot.slane %v824_v41, 4  ;;  %v827_v11 = vrot.slane %v6419_v28, 5  ;;  %v4569_v42 = vrot.slane %v4553_v39, 9  ;;  %v5265_v39 = vld [vmem:[%s7626_s1 + $0x208] sm:$0xff] }
 0x161   : > { %v1260_v5 = vrot.slane %v1258_v29, 5  ;;  %3788 = vmatpush.bf16.msra.mxu2 %v5248_v59 }
 0x162   : > { %v3461_v56 = vpop.f32.mrf.mxu2  ;;  %3877 = vmatpush.bf16.msra.mxu3 %v5256_v36  ;;  %3962 = vmatpush.bf16.msra.mxu0 %v5268_v15  ;;  %v1358_v29 = vrot.slane %v1356_v8, 4  ;;  %v828_v59 = vsel %vm5927_vm5, %v826_v4, %v827_v11  ;;  %v5266_v36 = vld [vmem:[%s7626_s1 + $0x210] sm:$0xff]  ;;  %v2363_v4 = vunpack.c.l.b16 %v6623_v23  ;;  %v2364_v11 = vunpack.c.l.b16 %v6629_v7 }
 0x163   : > { %v3462_v19 = vadd.f32 %v3461_v56, %v6408_v45  ;;  %v3550_v34 = vpop.f32.mrf.mxu3  ;;  %v6700_v45 = vsel %vm5727_vm2, %v1246_v53, %v1250_v18  ;;  %v6707_v13 = vsel %vm5727_vm2, %v1256_v17, %v1260_v5  ;;  %v4500_v18 = vrot.slane %v665_v52, 9  ;;  %v5448_v53 = vld [vmem:[%s5693_s22 + $0x44] sm:$0x1]  ;;  %v4581_v17 = vld [vmem:[%s5693_s22 + $0x18] sm:$0xf] }
 0x164   : > { %v3637_v47 = vpop.f32.mrf.mxu0  ;;  %4292 = vst [vmem:[%s5918_s12 + $0x78] sm:$0xf] %v6700_v45  ;;  %v1359_v56 = vrot.slane %v5448_v53, 5  ;;  %v3378_v53 = vadd.f32 %v6461_v46, %v6127_v48  ;;  %v5264_v48 = vld [vmem:[%s7626_s1 + $0x200] sm:$0xff] }
 0x165   : > { %v3551_v63 = vadd.f32 %v3550_v34, %v3462_v19  ;;  %v6711_v54 = vadd.f32 %v3637_v47, %v3549_v38  ;;  %4293 = vst [vmem:[%s5918_s12 + $0x7c] sm:$0xf] %v6707_v13  ;;  %v5267_v38 = vld [vmem:[%s7626_s1 + $0x218] sm:$0xff]  ;;  %v6720_v1 = vpop.f32.mrf.mxu1  ;;  %v1488_v47 = vshrl.u32 %v4581_v17, 16  ;;  %s5491_s12 = scalar_lea.hbm %s7628_s3, 256 }
 0x166   : > { %v6727_v19 = vld [vmem:[%s5693_s22 + $0x1c] sm:$0xf]  ;;  %3963 = vmatpush.bf16.msra.mxu0 %v5267_v38 }
 0x167   : > { %3503 = vmatmul.bf16.gmra.mxu2 %v2237_v26  ;;  %3676 = vmatmul.bf16.gmra.mxu0 %v2380_v43  ;;  %v3376_v26 = vadd.f32 %v6442_v9, %v6100_v0  ;;  %v825_v43 = vsel %vm5927_vm5, %v4500_v18, %v824_v41  ;;  %v1357_v0 = vsel %vm5927_vm5, %v4569_v42, %v1356_v8  ;;  %v1497_v41 = vshll.u32 %v6727_v19, 16 }
 0x168   : > { %3592 = vmatmul.bf16.gmra.mxu3 %v5182_v10  ;;  %3715 = vmatmul.bf16.gmra.mxu1 %v2434_v57  ;;  %v1360_v9 = vsel %vm5927_vm5, %v1358_v29, %v1359_v56  ;;  %v1491_v10 = vshll.u32 %v4581_v17, 16  ;;  %v1501_v49 = vshrl.u32 %v6727_v19, 16  ;;  %v2221_v18 = vunpack.c.l.b16 %v825_v43 }
 0x169   : > { %v2222_v8 = vunpack.c.l.b16 %v828_v59  ;;  %v2407_v38 = vunpack.c.l.b16 %v1357_v0  ;;  %v1490_v42 = vrot.slane %v1488_v47, 4  ;;  %v1499_v56 = vrot.slane %v1497_v41, 5  ;;  %v5449_v59 = vld [vmem:[%s5693_s22 + $0x4c] sm:$0xf] }
 0x16a   : > { %v3464_v5 = vpop.f32.mrf.mxu2  ;;  %3964 = vmatpush.bf16.msra.mxu0 %v5266_v36  ;;  %v1493_v29 = vrot.slane %v1491_v10, 5  ;;  %v2381_v43 = vpack.c.b16 %v2364_v11, %v2363_v4  ;;  %v1363_v36 = vrot.slane %v5449_v59, 5  ;;  %v5450_v4 = vld [vmem:[%s5693_s22 + $0x50] sm:$0x1] }
 0x16b   : > { %v3465_v28 = vadd.f32 %v3464_v5, %v3376_v26  ;;  %v3553_v34 = vpop.f32.mrf.mxu3  ;;  %v1503_v26 = vrot.slane %v1501_v49, 4  ;;  %v1366_v11 = vrot.slane %v5450_v4, 5 }
 0x16c   : > { %v3639_v15 = vpop.f32.mrf.mxu0  ;;  %v1494_v47 = vor.u32 %v1493_v29, %v1490_v42  ;;  %v4583_v29 = vld [vmem:[%s5693_s22 + $0x24] sm:$0xf] }
 0x16d   : > { %v3554_v57 = vadd.f32 %v3553_v34, %v3465_v28  ;;  %v6740_v52 = vadd.f32 %v3639_v15, %v3551_v63  ;;  %v2408_v63 = vunpack.c.l.b16 %v1360_v9  ;;  %v6751_v17 = vpop.f32.mrf.mxu1  ;;  %v6754_v28 = vld [vmem:[%s5693_s22 + $0x20] sm:$0x1]  ;;  %v2238_v34 = vpack.c.b16 %v2222_v8, %v2221_v18  ;;  %v4554_v9 = vld [vmem:[%s5693_s22 + $0x48] sm:$0xe] }
 0x16e   : > { %3965 = vmatpush.bf16.msra.mxu0 %v5265_v39  ;;  %v5183_v15 = vld [vmem:[%s5693_s22 + $0xc0] sm:$0xff]  ;;  %v1504_v49 = vor.u32 %v1503_v26, %v1499_v56  ;;  %v1507_v39 = vshll.u32 %v6754_v28, 16  ;;  %v4570_v18 = vrot.slane %v4554_v9, 9  ;;  %v1365_v8 = vrot.slane %v1363_v36, 4 }
 0x16f   : > { %v2435_v0 = vpack.c.b16 %v2408_v63, %v2407_v38  ;;  %v1495_v38 = vrot.slane %v1494_v47, 4  ;;  %v3381_v63 = vadd.f32 %v6483_v2, %v6155_v32  ;;  %v1512_v2 = vshrl.u32 %v4583_v29, 16 }
 0x170   : > { %v1509_v42 = vrot.slane %v1507_v39, 5  ;;  %v3383_v47 = vadd.f32 %v6503_v16, %v6182_v24  ;;  %v1937_v16 = vrot.slane %v6727_v19, 5 }
 0x171   : > { %v1500_v32 = vsel %vm5727_vm2, %v1495_v38, %v1499_v56  ;;  %v2366_v56 = vunpack.c.l.b16 %v6707_v13 }
 0x172   : > { %v3466_v5 = vpop.f32.mrf.mxu2  ;;  %3966 = vmatpush.bf16.msra.mxu0 %v5264_v48  ;;  %v1515_v48 = vshll.u32 %v4583_v29, 16  ;;  %v5184_v29 = vld [vmem:[%s5693_s22 + $0x18] sm:$0xff] }
 0x173   : > { %v3467_v23 = vadd.f32 %v3466_v5, %v3378_v53  ;;  %v3555_v7 = vpop.f32.mrf.mxu3  ;;  %v6770_v53 = vld [vmem:[%s5693_s22 + $0x28] sm:$0xf] }
 0x174   : > { %v3642_v46 = vpop.f32.mrf.mxu0  ;;  %v1525_v9 = vshrl.u32 %v6770_v53, 16  ;;  %v1517_v38 = vrot.slane %v1515_v48, 5 }
 0x175   : > { %v3556_v10 = vadd.f32 %v3555_v7, %v3467_v23  ;;  %v6762_v41 = vadd.f32 %v3642_v46, %v3554_v57  ;;  %v1505_v57 = vrot.slane %v1504_v49, 4  ;;  %v1364_v7 = vsel %vm5927_vm5, %v4570_v18, %v1363_v36 }
 0x176   : > { %v1521_v46 = vshll.u32 %v6770_v53, 16  ;;  %v2365_v49 = vunpack.c.l.b16 %v6700_v45  ;;  %v2409_v39 = vunpack.c.l.b16 %v1364_v7 }
 0x177   : > { %3508 = vmatmul.bf16.gmra.mxu2 %v2238_v34  ;;  %3681 = vmatmul.bf16.gmra.mxu0 %v2381_v43  ;;  %v1367_v34 = vsel %vm5927_vm5, %v1365_v8, %v1366_v11  ;;  %v6776_v43 = vpop.f32.mrf.mxu1  ;;  %v1510_v36 = vsel %vm5727_vm2, %v1505_v57, %v1509_v42  ;;  %v2543_v8 = vunpack.c.l.b16 %v1500_v32  ;;  %v1514_v11 = vrot.slane %v1512_v2, 4 }
 0x178   : > { %3597 = vmatmul.bf16.gmra.mxu3 %v5183_v15  ;;  %3720 = vmatmul.bf16.gmra.mxu1 %v2435_v0  ;;  %v2410_v18 = vunpack.c.l.b16 %v1367_v34  ;;  %v2544_v4 = vunpack.c.l.b16 %v1510_v36  ;;  %v1527_v57 = vrot.slane %v1525_v9, 4  ;;  %v2382_v13 = vpack.c.b16 %v2366_v56, %v2365_v49  ;;  %v5451_v34 = vld [vmem:[%s5693_s22 + $0x58] sm:$0xf] }
 0x179   : > { %v1518_v19 = vor.u32 %v1517_v38, %v1514_v11  ;;  %v1939_v49 = vrot.slane %v1937_v16, 4  ;;  %v1940_v56 = vrot.slane %v6754_v28, 5  ;;  %v3386_v11 = vadd.f32 %v6525_v60, %v6210_v21 }
 0x17a   : > { %v3469_v26 = vpop.f32.mrf.mxu2  ;;  %v2575_v7 = vpack.c.b16 %v2544_v4, %v2543_v8 }
 0x17b   : > { %v3470_v5 = vadd.f32 %v3469_v26, %v3381_v63  ;;  %v3558_v23 = vpop.f32.mrf.mxu3  ;;  %v6793_v63 = vrot.slane %v1521_v46, 5  ;;  %v4629_v26 = vld [vmem:[%s5693_s22 + $0x18] sm:$0xe]  ;;  %v4555_v46 = vld [vmem:[%s5693_s22 + $0x54] sm:$0xe]  ;;  %v1519_v38 = vrot.slane %v1518_v19, 4 }
 0x17c   : > { %v3644_v59 = vpop.f32.mrf.mxu0 }
 0x17d   : > { %v3559_v15 = vadd.f32 %v3558_v23, %v3470_v5  ;;  %v6781_v0 = vadd.f32 %v3644_v59, %v3556_v10  ;;  %v6791_v10 = vld [vmem:[%s5693_s22 + $0x2c] sm:$0x1]  ;;  %v2436_v23 = vpack.c.b16 %v2410_v18, %v2409_v39  ;;  %v1370_v59 = vrot.slane %v5451_v34, 5  ;;  %v4585_v39 = vld [vmem:[%s5693_s22 + $0x30] sm:$0xf] }
 0x17e   : > { %v1531_v32 = vshll.u32 %v6791_v10, 16  ;;  %v1528_v36 = vor.u32 %v1527_v57, %v6793_v63  ;;  %v4571_v18 = vrot.slane %v4555_v46, 9  ;;  %v1524_v19 = vsel %vm5727_vm2, %v1519_v38, %v6793_v63  ;;  %v6836_v63 = vld [vmem:[%s5693_s22 + $0x38] sm:$0x1] }
 0x17f   : > { %v6804_v9 = vpop.f32.mrf.mxu1  ;;  %v1372_v8 = vrot.slane %v1370_v59, 4  ;;  %v3388_v38 = vadd.f32 %v6545_v61, %v6234_v6  ;;  %v1944_v6 = vrot.slane %v6770_v53, 5  ;;  %v1947_v53 = vrot.slane %v6791_v10, 5 }
 0x180   : > { %v1529_v57 = vrot.slane %v1528_v36, 4  ;;  %v1371_v21 = vsel %vm5927_vm5, %v4571_v18, %v1370_v59 }
 0x182   : > { %v3471_v24 = vpop.f32.mrf.mxu2 }
 0x183   : > { %v3472_v45 = vadd.f32 %v3471_v24, %v3383_v47  ;;  %v3560_v42 = vpop.f32.mrf.mxu3  ;;  %v4645_v47 = vrot.slane %v4629_v26, 9  ;;  %v6810_v24 = vld [vmem:[%s5693_s22 + $0x34] sm:$0xf] }
 0x184   : > { %v3647_v5 = vpop.f32.mrf.mxu0  ;;  %v1549_v34 = vshrl.u32 %v6810_v24, 16 }
 0x185   : > { %v3561_v2 = vadd.f32 %v3560_v42, %v3472_v45  ;;  %v6800_v48 = vadd.f32 %v3647_v5, %v3559_v15  ;;  %v5452_v15 = vld [vmem:[%s5693_s22 + $0x5c] sm:$0x1]  ;;  %v1533_v45 = vrot.slane %v1531_v32, 5  ;;  %v1938_v28 = vsel %vm5927_vm5, %v4645_v47, %v1937_v16 }
 0x186   : > { %v1373_v4 = vrot.slane %v5452_v15, 5  ;;  %v2607_v47 = vunpack.c.l.b16 %v1938_v28  ;;  %v1551_v18 = vrot.slane %v1549_v34, 4  ;;  %v1555_v34 = vshll.u32 %v6836_v63, 16 }
 0x187   : > { %3686 = vmatmul.bf16.gmra.mxu0 %v2382_v13  ;;  %3789 = vmatmul.bf16.vlgmr.msra.gmra.mxu2 %v5184_v29  ;;  %v1941_v13 = vsel %vm5927_vm5, %v1939_v49, %v1940_v56  ;;  %v1536_v29 = vshrl.u32 %v4585_v39, 16  ;;  %v1534_v36 = vsel %vm5727_vm2, %v1529_v57, %v1533_v45 }
 0x188   : > { %3725 = vmatmul.bf16.gmra.mxu1 %v2436_v23  ;;  %3878 = vmatmul.bf16.vlgmr.msra.gmra.mxu3 %v2575_v7  ;;  %v1539_v23 = vshll.u32 %v4585_v39, 16  ;;  %v1545_v7 = vshll.u32 %v6810_v24, 16  ;;  %v1374_v60 = vsel %vm5927_vm5, %v1372_v8, %v1373_v4  ;;  %v2608_v49 = vunpack.c.l.b16 %v1941_v13  ;;  %v6833_v8 = vpop.f32.mrf.mxu1 }
 0x189   : > { %v1538_v56 = vrot.slane %v1536_v29, 4  ;;  %v2412_v15 = vunpack.c.l.b16 %v1374_v60  ;;  %v2545_v4 = vunpack.c.l.b16 %v1524_v19 }
 0x18a   : > { %v3474_v42 = vpop.f32.mrf.mxu2  ;;  %v1541_v39 = vrot.slane %v1539_v23, 5  ;;  %v6831_v59 = vrot.slane %v1545_v7, 5  ;;  %v2639_v45 = vpack.c.b16 %v2608_v49, %v2607_v47 }
 0x18b   : > { %v3475_v26 = vadd.f32 %v3474_v42, %v3386_v11  ;;  %v3563_v5 = vpop.f32.mrf.mxu3  ;;  %v2546_v11 = vunpack.c.l.b16 %v1534_v36  ;;  %v5453_v42 = vld [vmem:[%s5693_s22 + $0x64] sm:$0xf] }
 0x18c   : > { %v3649_v46 = vpop.f32.mrf.mxu0  ;;  %v1377_v28 = vrot.slane %v5453_v42, 5  ;;  %v1542_v23 = vor.u32 %v1541_v39, %v1538_v56  ;;  %v1552_v7 = vor.u32 %v1551_v18, %v6831_v59  ;;  %v4630_v36 = vld [vmem:[%s5693_s22 + $0x24] sm:$0xe]  ;;  %v5454_v56 = vld [vmem:[%s5693_s22 + $0x68] sm:$0x1] }
 0x18d   : > { %v3564_v16 = vadd.f32 %v3563_v5, %v3475_v26  ;;  %v6824_v32 = vadd.f32 %v3649_v46, %v3561_v2  ;;  %v2411_v2 = vunpack.c.l.b16 %v1371_v21  ;;  %v5185_v26 = vld [vmem:[%s5693_s22 + $0x24] sm:$0xff]  ;;  %v4556_v5 = vld [vmem:[%s5693_s22 + $0x60] sm:$0xe]  ;;  %v2576_v60 = vpack.c.b16 %v2546_v11, %v2545_v4  ;;  %v4587_v4 = vld [vmem:[%s5693_s22 + $0x3c] sm:$0xf] }
 0x18e   : > { %v4572_v47 = vrot.slane %v4556_v5, 9  ;;  %v1379_v49 = vrot.slane %v1377_v28, 4  ;;  %v1380_v39 = vrot.slane %v5454_v56, 5  ;;  %v1543_v18 = vrot.slane %v1542_v23, 4 }
 0x18f   : > { %v2437_v21 = vpack.c.b16 %v2412_v15, %v2411_v2  ;;  %v4646_v2 = vrot.slane %v4630_v36, 9  ;;  %v1946_v15 = vrot.slane %v1944_v6, 4 }
 0x190   : > { %v6854_v11 = vpop.f32.mrf.mxu1  ;;  %v1381_v5 = vsel %vm5927_vm5, %v1379_v49, %v1380_v39  ;;  %v1548_v10 = vsel %vm5727_vm2, %v1543_v18, %v6831_v59 }
 0x191   : > { %v1945_v23 = vsel %vm5927_vm5, %v4646_v2, %v1944_v6  ;;  %v2547_v6 = vunpack.c.l.b16 %v1548_v10 }
 0x192   : > { %v3476_v57 = vpop.f32.mrf.mxu2  ;;  %v2609_v49 = vunpack.c.l.b16 %v1945_v23 }
 0x193   : > { %v3477_v13 = vadd.f32 %v3476_v57, %v3388_v38  ;;  %v3565_v29 = vpop.f32.mrf.mxu3  ;;  %v1553_v38 = vrot.slane %v1552_v7, 4  ;;  %v1557_v57 = vrot.slane %v1555_v34, 5  ;;  %v1560_v7 = vshrl.u32 %v4587_v4, 16 }
 0x194   : > { %v3652_v46 = vpop.f32.mrf.mxu0  ;;  %v1563_v34 = vshll.u32 %v4587_v4, 16 }
 0x195   : > { %v3566_v61 = vadd.f32 %v3565_v29, %v3477_v13  ;;  %v6846_v19 = vadd.f32 %v3652_v46, %v3564_v16  ;;  %v3391_v16 = vadd.f32 %v6567_v12, %v6262_v55  ;;  %v6859_v13 = vld [vmem:[%s5693_s22 + $0x40] sm:$0xf]  ;;  %v1558_v55 = vsel %vm5727_vm2, %v1553_v38, %v1557_v57 }
 0x196   : > { %v1573_v59 = vshrl.u32 %v6859_v13, 16  ;;  %v2548_v39 = vunpack.c.l.b16 %v1558_v55  ;;  %v1562_v18 = vrot.slane %v1560_v7, 4  ;;  %v1565_v38 = vrot.slane %v1563_v34, 5 }
 0x197   : > { %3794 = vmatmul.bf16.gmra.mxu2 %v5185_v26  ;;  %3967 = vmatmul.bf16.vlgmr.msra.gmra.mxu0 %v2639_v45  ;;  %v1378_v45 = vsel %vm5927_vm5, %v4572_v47, %v1377_v28  ;;  %v1948_v28 = vsel %vm5927_vm5, %v1946_v15, %v1947_v53  ;;  %v2414_v47 = vunpack.c.l.b16 %v1381_v5  ;;  %v3393_v57 = vadd.f32 %v6599_v3, %v6289_v62  ;;  %v6881_v53 = vld [vmem:[%s5693_s22 + $0x44] sm:$0x1]  ;;  %v5455_v3 = vld [vmem:[%s5693_s22 + $0x70] sm:$0xf] }
 0x198   : > { %3730 = vmatmul.bf16.gmra.mxu1 %v2437_v21  ;;  %3883 = vmatmul.bf16.gmra.mxu3 %v2576_v60  ;;  %v1569_v60 = vshll.u32 %v6859_v13, 16  ;;  %v2413_v36 = vunpack.c.l.b16 %v1378_v45  ;;  %v2610_v56 = vunpack.c.l.b16 %v1948_v28  ;;  %v1575_v2 = vrot.slane %v1573_v59, 4  ;;  %v5186_v45 = vld [vmem:[%s5693_s22 + $0x30] sm:$0xff]  ;;  %v6886_v5 = vpop.f32.mrf.mxu1 }
 0x199   : > { %v2577_v62 = vpack.c.b16 %v2548_v39, %v2547_v6  ;;  %v1566_v23 = vor.u32 %v1565_v38, %v1562_v18  ;;  %v5456_v39 = vld [vmem:[%s5693_s22 + $0x74] sm:$0x1]  ;;  %v6898_v18 = vld [vmem:[%s5693_s22 + $0x4c] sm:$0xf]  ;;  %v7650_v38 = vld [vmem:[#allocation17_spill] sm:$0xff] }
 0x19a   : > { %v3479_v42 = vpop.f32.mrf.mxu2  ;;  %v2438_v55 = vpack.c.b16 %v2414_v47, %v2413_v36  ;;  %v4589_v36 = vld [vmem:[%s5693_s22 + $0x48] sm:$0xf] }
 0x19b   : > { %v3480_v29 = vadd.f32 %v3479_v42, %v3391_v16  ;;  %v3568_v26 = vpop.f32.mrf.mxu3  ;;  %v1951_v16 = vrot.slane %v6810_v24, 5  ;;  %v4557_v24 = vld [vmem:[%s5693_s22 + $0x6c] sm:$0xe] }
 0x19c   : > { %v3654_v12 = vpop.f32.mrf.mxu0  ;;  %v4573_v47 = vrot.slane %v4557_v24, 9 }
 0x19d   : > { %v3569_v46 = vadd.f32 %v3568_v26, %v3480_v29  ;;  %v6872_v21 = vadd.f32 %v3654_v12, %v3566_v61  ;;  %v6878_v61 = vrot.slane %v1569_v60, 5  ;;  %v2640_v29 = vpack.c.b16 %v2610_v56, %v2609_v49  ;;  %v4631_v26 = vld [vmem:[%s5693_s22 + $0x30] sm:$0xe] }
 0x19e   : > { %v1384_v12 = vrot.slane %v5455_v3, 5  ;;  %v1579_v60 = vshll.u32 %v6881_v53, 16  ;;  %v4647_v59 = vrot.slane %v4631_v26, 9  ;;  %v1953_v49 = vrot.slane %v1951_v16, 4 }
 0x19f   : > { %v1576_v34 = vor.u32 %v1575_v2, %v6878_v61  ;;  %v1954_v56 = vrot.slane %v6836_v63, 5  ;;  %v1567_v2 = vrot.slane %v1566_v23, 4  ;;  %v1597_v3 = vshrl.u32 %v6898_v18, 16 }
 0x1a0   : > { %v1386_v6 = vrot.slane %v1384_v12, 4  ;;  %v1952_v63 = vsel %vm5927_vm5, %v4647_v59, %v1951_v16 }
 0x1a2   : > { %v3481_v15 = vpop.f32.mrf.mxu2 }
 0x1a3   : > { %v3482_v4 = vadd.f32 %v3481_v15, %v3393_v57  ;;  %v3570_v42 = vpop.f32.mrf.mxu3  ;;  %v3396_v57 = vadd.f32 %v6633_v20, %v7650_v38  ;;  %v1577_v15 = vrot.slane %v1576_v34, 4  ;;  %v1385_v20 = vsel %vm5927_vm5, %v4573_v47, %v1384_v12 }
 0x1a4   : > { %v3657_v10 = vpop.f32.mrf.mxu0 }
 0x1a5   : > { %v3571_v28 = vadd.f32 %v3570_v42, %v3482_v4  ;;  %v6889_v7 = vadd.f32 %v3657_v10, %v3569_v46  ;;  %v1387_v46 = vrot.slane %v5456_v39, 5  ;;  %v1581_v4 = vrot.slane %v1579_v60, 5 }
 0x1a6   : > { %v1572_v60 = vsel %vm5727_vm2, %v1567_v2, %v6878_v61  ;;  %v2415_v39 = vunpack.c.l.b16 %v1385_v20  ;;  %v6924_v61 = vld [vmem:[%s5693_s22 + $0x50] sm:$0x1]  ;;  %v3398_v2 = vadd.f32 %v6673_v51, %v6356_v40  ;;  %v1958_v40 = vrot.slane %v6859_v13, 5 }
 0x1a7   : > { %3799 = vmatmul.bf16.gmra.mxu2 %v5186_v45  ;;  %3972 = vmatmul.bf16.gmra.mxu0 %v2640_v29  ;;  %v1955_v45 = vsel %vm5927_vm5, %v1953_v49, %v1954_v56  ;;  %v1584_v29 = vshrl.u32 %v4589_v36, 16  ;;  %v1388_v23 = vsel %vm5927_vm5, %v1386_v6, %v1387_v46  ;;  %v1582_v59 = vsel %vm5727_vm2, %v1577_v15, %v1581_v4  ;;  %v6919_v49 = vpop.f32.mrf.mxu1 }
 0x1a8   : > { %3735 = vmatmul.bf16.gmra.mxu1 %v2438_v55  ;;  %3888 = vmatmul.bf16.gmra.mxu3 %v2577_v62  ;;  %v1587_v55 = vshll.u32 %v4589_v36, 16  ;;  %v1593_v62 = vshll.u32 %v6898_v18, 16  ;;  %v2611_v56 = vunpack.c.l.b16 %v1952_v63  ;;  %v2612_v36 = vunpack.c.l.b16 %v1955_v45 }
 0x1a9   : > { %v1586_v12 = vrot.slane %v1584_v29, 4  ;;  %v2416_v46 = vunpack.c.l.b16 %v1388_v23  ;;  %v2549_v38 = vunpack.c.l.b16 %v1572_v60 }
 0x1aa   : > { %v3484_v42 = vpop.f32.mrf.mxu2  ;;  %v1589_v47 = vrot.slane %v1587_v55, 5  ;;  %v6921_v6 = vrot.slane %v1593_v62, 5  ;;  %v2641_v4 = vpack.c.b16 %v2612_v36, %v2611_v56 }
 0x1ab   : > { %v3485_v26 = vadd.f32 %v3484_v42, %v3396_v57  ;;  %v3573_v10 = vpop.f32.mrf.mxu3  ;;  %v2550_v57 = vunpack.c.l.b16 %v1582_v59  ;;  %v5457_v42 = vld [vmem:[%s5693_s22 + $0x7c] sm:$0xf]  ;;  %v2439_v20 = vpack.c.b16 %v2416_v46, %v2415_v39  ;;  %v1960_v39 = vrot.slane %v1958_v40, 4  ;;  %v7651_v46 = vld [vmem:[#allocation9_spill] sm:$0xff] }
 0x1ac   : > { %v3659_v24 = vpop.f32.mrf.mxu0  ;;  %v1391_v63 = vrot.slane %v5457_v42, 5  ;;  %v1590_v55 = vor.u32 %v1589_v47, %v1586_v12  ;;  %v4632_v59 = vld [vmem:[%s5693_s22 + $0x3c] sm:$0xe]  ;;  %v5458_v12 = vld [vmem:[%s5693_s22 + $0x80] sm:$0x1] }
 0x1ad   : > { %v3574_v16 = vadd.f32 %v3573_v10, %v3485_v26  ;;  %v6912_v34 = vadd.f32 %v3659_v24, %v3571_v28  ;;  %v1599_v28 = vrot.slane %v1597_v3, 4  ;;  %v5187_v26 = vld [vmem:[%s5693_s22 + $0x3c] sm:$0xff]  ;;  %v4558_v10 = vld [vmem:[%s5693_s22 + $0x78] sm:$0xe]  ;;  %v1603_v3 = vshll.u32 %v6924_v61, 16 }
 0x1ae   : > { %v2578_v23 = vpack.c.b16 %v2550_v57, %v2549_v38  ;;  %v4574_v56 = vrot.slane %v4558_v10, 9  ;;  %v1393_v36 = vrot.slane %v1391_v63, 4  ;;  %v1394_v47 = vrot.slane %v5458_v12, 5  ;;  %v4591_v57 = vld [vmem:[%s5693_s22 + $0x54] sm:$0xf] }
 0x1af   : > { %v1600_v62 = vor.u32 %v1599_v28, %v6921_v6  ;;  %v1591_v28 = vrot.slane %v1590_v55, 4  ;;  %v6938_v42 = vpop.f32.mrf.mxu1  ;;  %v4648_v13 = vrot.slane %v4632_v59, 9  ;;  %v3401_v38 = vadd.f32 %v6720_v1, %v7651_v46 }
 0x1b0   : > { %v1395_v55 = vsel %vm5927_vm5, %v1393_v36, %v1394_v47 }
 0x1b1   : > { %v2418_v12 = vunpack.c.l.b16 %v1395_v55  ;;  %v5188_v55 = vld [vmem:[%s5693_s22 + $0x48] sm:$0xff] }
 0x1b2   : > { %v3486_v15 = vpop.f32.mrf.mxu2 }
 0x1b3   : > { %v3487_v45 = vadd.f32 %v3486_v15, %v3398_v2  ;;  %v3575_v29 = vpop.f32.mrf.mxu3  ;;  %v1601_v2 = vrot.slane %v1600_v62, 4  ;;  %v1605_v15 = vrot.slane %v1603_v3, 5  ;;  %v1596_v62 = vsel %vm5727_vm2, %v1591_v28, %v6921_v6 }
 0x1b4   : > { %v3662_v24 = vpop.f32.mrf.mxu0  ;;  %v1959_v3 = vsel %vm5927_vm5, %v4648_v13, %v1958_v40  ;;  %v2551_v40 = vunpack.c.l.b16 %v1596_v62 }
 0x1b5   : > { %v3576_v51 = vadd.f32 %v3575_v29, %v3487_v45  ;;  %v6934_v60 = vadd.f32 %v3662_v24, %v3574_v16  ;;  %v1961_v16 = vrot.slane %v6881_v53, 5  ;;  %v6947_v29 = vld [vmem:[%s5693_s22 + $0x58] sm:$0xf]  ;;  %v1606_v53 = vsel %vm5727_vm2, %v1601_v2, %v1605_v15 }
 0x1b6   : > { %v1608_v24 = vshrl.u32 %v4591_v57, 16  ;;  %v1621_v6 = vshrl.u32 %v6947_v29, 16  ;;  %v2613_v47 = vunpack.c.l.b16 %v1959_v3  ;;  %v2552_v2 = vunpack.c.l.b16 %v1606_v53  ;;  %v4633_v53 = vld [vmem:[%s5693_s22 + $0x48] sm:$0xe] }
 0x1b7   : > { %3804 = vmatmul.bf16.gmra.mxu2 %v5187_v26  ;;  %3977 = vmatmul.bf16.gmra.mxu0 %v2641_v4  ;;  %v1392_v4 = vsel %vm5927_vm5, %v4574_v56, %v1391_v63  ;;  %v1962_v63 = vsel %vm5927_vm5, %v1960_v39, %v1961_v16  ;;  %v1617_v56 = vshll.u32 %v6947_v29, 16  ;;  %v7653_v39 = vld [vmem:[#allocation10_spill] sm:$0xff] }
 0x1b8   : > { %3740 = vmatmul.bf16.gmra.mxu1 %v2439_v20  ;;  %3893 = vmatmul.bf16.gmra.mxu3 %v2578_v23  ;;  %v1611_v20 = vshll.u32 %v4591_v57, 16  ;;  %v2417_v36 = vunpack.c.l.b16 %v1392_v4  ;;  %v2614_v28 = vunpack.c.l.b16 %v1962_v63  ;;  %v1610_v15 = vrot.slane %v1608_v24, 4  ;;  %v5459_v63 = vld [vmem:[%s5693_s22 + $0x88] sm:$0xf] }
 0x1b9   : > { %v6966_v16 = vrot.slane %v1617_v56, 5  ;;  %v1623_v46 = vrot.slane %v1621_v6, 4  ;;  %v1965_v4 = vrot.slane %v6898_v18, 5  ;;  %v1398_v24 = vrot.slane %v5459_v63, 5 }
 0x1ba   : > { %v3489_v45 = vpop.f32.mrf.mxu2  ;;  %v1613_v13 = vrot.slane %v1611_v20, 5  ;;  %v2642_v62 = vpack.c.b16 %v2614_v28, %v2613_v47  ;;  %v2440_v3 = vpack.c.b16 %v2418_v12, %v2417_v36  ;;  %v1968_v28 = vrot.slane %v6924_v61, 5  ;;  %v4593_v36 = vld [vmem:[%s5693_s22 + $0x60] sm:$0xf] }
 0x1bb   : > { %v3490_v26 = vadd.f32 %v3489_v45, %v3401_v38  ;;  %v3578_v10 = vpop.f32.mrf.mxu3  ;;  %v6968_v38 = vpop.f32.mrf.mxu1  ;;  %v6971_v45 = vld [vmem:[%s5693_s22 + $0x5c] sm:$0x1]  ;;  %v1624_v18 = vor.u32 %v1623_v46, %v6966_v16  ;;  %v1967_v47 = vrot.slane %v1965_v4, 4  ;;  %v1635_v63 = vshll.u32 %v4593_v36, 16 }
 0x1bc   : > { %v3664_v1 = vpop.f32.mrf.mxu0  ;;  %v1614_v20 = vor.u32 %v1613_v13, %v1610_v15  ;;  %v6986_v15 = vld [vmem:[%s5693_s22 + $0x64] sm:$0xf]  ;;  %v7655_v13 = vld [vmem:[#allocation11_spill] sm:$0xff] }
 0x1bd   : > { %v3579_v23 = vadd.f32 %v3578_v10, %v3490_v26  ;;  %v6960_v59 = vadd.f32 %v3664_v1, %v3576_v51  ;;  %v3403_v51 = vadd.f32 %v6751_v17, %v7653_v39  ;;  %v2579_v17 = vpack.c.b16 %v2552_v2, %v2551_v40  ;;  %v4559_v39 = vld [vmem:[%s5693_s22 + $0x84] sm:$0xe]  ;;  %v5460_v2 = vld [vmem:[%s5693_s22 + $0x8c] sm:$0x1] }
 0x1be   : > { %v4575_v12 = vrot.slane %v4559_v39, 9  ;;  %v1400_v40 = vrot.slane %v1398_v24, 4  ;;  %v3406_v46 = vadd.f32 %v6776_v43, %v7655_v13  ;;  %v1641_v39 = vshll.u32 %v6986_v15, 16 }
 0x1bf   : > { %7652 = vst [vmem:[#allocation17_spill] sm:$0xff] %v6960_v59 }
 0x1c2   : > { %v3491_v57 = vpop.f32.mrf.mxu2 }
 0x1c3   : > { %v3492_v26 = vadd.f32 %v3491_v57, %v3403_v51  ;;  %v3580_v10 = vpop.f32.mrf.mxu3  ;;  %v1627_v51 = vshll.u32 %v6971_v45, 16  ;;  %v4649_v57 = vrot.slane %v4633_v53, 9 }
 0x1c4   : > { %v3667_v1 = vpop.f32.mrf.mxu0 }
 0x1c5   : > { %v3581_v56 = vadd.f32 %v3580_v10, %v3492_v26  ;;  %v6977_v6 = vadd.f32 %v3667_v1, %v3579_v23  ;;  %v1401_v23 = vrot.slane %v5460_v2, 5  ;;  %v1615_v26 = vrot.slane %v1614_v20, 4 }
 0x1c6   : > { %v1625_v10 = vrot.slane %v1624_v18, 4  ;;  %v1629_v53 = vrot.slane %v1627_v51, 5  ;;  %v1966_v61 = vsel %vm5927_vm5, %v4649_v57, %v1965_v4  ;;  %v1645_v2 = vshrl.u32 %v6986_v15, 16 }
 0x1c7   : > { %7654 = vst [vmem:[#allocation9_spill] sm:$0xff] %v6977_v6  ;;  %3809 = vmatmul.bf16.gmra.mxu2 %v5188_v55  ;;  %3982 = vmatmul.bf16.gmra.mxu0 %v2642_v62  ;;  %v1969_v55 = vsel %vm5927_vm5, %v1967_v47, %v1968_v28  ;;  %v1632_v62 = vshrl.u32 %v4593_v36, 16  ;;  %v6996_v6 = vpop.f32.mrf.mxu1  ;;  %v1399_v20 = vsel %vm5927_vm5, %v4575_v12, %v1398_v24  ;;  %v2615_v28 = vunpack.c.l.b16 %v1966_v61 }
 0x1c8   : > { %3745 = vmatmul.bf16.gmra.mxu1 %v2440_v3  ;;  %3898 = vmatmul.bf16.gmra.mxu3 %v2579_v17  ;;  %v1402_v4 = vsel %vm5927_vm5, %v1400_v40, %v1401_v23  ;;  %v1620_v57 = vsel %vm5727_vm2, %v1615_v26, %v6966_v16  ;;  %v1630_v47 = vsel %vm5727_vm2, %v1625_v10, %v1629_v53  ;;  %v2616_v36 = vunpack.c.l.b16 %v1969_v55  ;;  %v7657_v16 = vld [vmem:[#allocation12_spill] sm:$0xff]  ;;  %v5461_v53 = vld [vmem:[%s5693_s22 + $0x94] sm:$0xf] }
 0x1c9   : > { %v1634_v13 = vrot.slane %v1632_v62, 4  ;;  %v1637_v24 = vrot.slane %v1635_v63, 5  ;;  %v7009_v12 = vrot.slane %v1641_v39, 5  ;;  %v1647_v40 = vrot.slane %v1645_v2, 4  ;;  %v5189_v63 = vld [vmem:[%s5693_s22 + $0x54] sm:$0xff] }
 0x1ca   : > { %v3494_v1 = vpop.f32.mrf.mxu2  ;;  %v2419_v23 = vunpack.c.l.b16 %v1399_v20  ;;  %v3408_v26 = vadd.f32 %v6804_v9, %v7657_v16  ;;  %v2643_v10 = vpack.c.b16 %v2616_v36, %v2615_v28  ;;  %v1405_v61 = vrot.slane %v5461_v53, 5  ;;  %v4560_v39 = vld [vmem:[%s5693_s22 + $0x90] sm:$0xe]  ;;  %v4634_v36 = vld [vmem:[%s5693_s22 + $0x54] sm:$0xe] }
 0x1cb   : > { %v3495_v3 = vadd.f32 %v3494_v1, %v3406_v46  ;;  %v3583_v17 = vpop.f32.mrf.mxu3  ;;  %v2553_v46 = vunpack.c.l.b16 %v1620_v57  ;;  %v2554_v1 = vunpack.c.l.b16 %v1630_v47  ;;  %v1638_v2 = vor.u32 %v1637_v24, %v1634_v13  ;;  %v5462_v13 = vld [vmem:[%s5693_s22 + $0x98] sm:$0x1] }
 0x1cc   : > { %v3669_v43 = vpop.f32.mrf.mxu0  ;;  %v1972_v9 = vrot.slane %v6947_v29, 5  ;;  %v1408_v24 = vrot.slane %v5462_v13, 5  ;;  %v4650_v29 = vrot.slane %v4634_v36, 9 }
 0x1cd   : > { %v3584_v18 = vadd.f32 %v3583_v17, %v3495_v3  ;;  %v7002_v51 = vadd.f32 %v3669_v43, %v3581_v56  ;;  %v2420_v56 = vunpack.c.l.b16 %v1402_v4  ;;  %v7012_v3 = vld [vmem:[%s5693_s22 + $0x68] sm:$0x1]  ;;  %v1648_v43 = vor.u32 %v1647_v40, %v7009_v12 }
 0x1ce   : > { %v1651_v20 = vshll.u32 %v7012_v3, 16  ;;  %v2580_v47 = vpack.c.b16 %v2554_v1, %v2553_v46  ;;  %v1639_v40 = vrot.slane %v1638_v2, 4  ;;  %v7659_v46 = vld [vmem:[#allocation13_spill] sm:$0xff] }
 0x1cf   : > { %7656 = vst [vmem:[#allocation10_spill] sm:$0xff] %v7002_v51  ;;  %v2441_v57 = vpack.c.b16 %v2420_v56, %v2419_v23  ;;  %v7025_v53 = vpop.f32.mrf.mxu1  ;;  %v1649_v51 = vrot.slane %v1648_v43, 4  ;;  %v1974_v56 = vrot.slane %v1972_v9, 4  ;;  %v3411_v1 = vadd.f32 %v6833_v8, %v7659_v46 }
 0x1d0   : > { %v1653_v23 = vrot.slane %v1651_v20, 5  ;;  %v1644_v20 = vsel %vm5727_vm2, %v1639_v40, %v7009_v12 }
 0x1d2   : > { %v3496_v17 = vpop.f32.mrf.mxu2 }
 0x1d3   : > { %v3497_v55 = vadd.f32 %v3496_v17, %v3408_v26  ;;  %v3585_v62 = vpop.f32.mrf.mxu3  ;;  %v4576_v26 = vrot.slane %v4560_v39, 9  ;;  %v1407_v17 = vrot.slane %v1405_v61, 4 }
 0x1d4   : > { %v3672_v4 = vpop.f32.mrf.mxu0 }
 0x1d5   : > { %v3586_v16 = vadd.f32 %v3585_v62, %v3497_v55  ;;  %v7022_v28 = vadd.f32 %v3672_v4, %v3584_v18  ;;  %v1975_v18 = vrot.slane %v6971_v45, 5  ;;  %v4595_v55 = vld [vmem:[%s5693_s22 + $0x6c] sm:$0xf]  ;;  %v1409_v43 = vsel %vm5927_vm5, %v1407_v17, %v1408_v24 }
 0x1d6   : > { %v1654_v45 = vsel %vm5727_vm2, %v1649_v51, %v1653_v23  ;;  %v1973_v4 = vsel %vm5927_vm5, %v4650_v29, %v1972_v9  ;;  %v2422_v24 = vunpack.c.l.b16 %v1409_v43  ;;  %v2555_v23 = vunpack.c.l.b16 %v1644_v20 }
 0x1d7   : > { %7658 = vst [vmem:[#allocation11_spill] sm:$0xff] %v7022_v28  ;;  %3814 = vmatmul.bf16.gmra.mxu2 %v5189_v63  ;;  %3987 = vmatmul.bf16.gmra.mxu0 %v2643_v10  ;;  %v1406_v63 = vsel %vm5927_vm5, %v4576_v26, %v1405_v61  ;;  %v7035_v10 = vld [vmem:[%s5693_s22 + $0x70] sm:$0xf]  ;;  %v1976_v61 = vsel %vm5927_vm5, %v1974_v56, %v1975_v18  ;;  %v2617_v51 = vunpack.c.l.b16 %v1973_v4  ;;  %v7052_v9 = vpop.f32.mrf.mxu1  ;;  %v2556_v29 = vunpack.c.l.b16 %v1654_v45  ;;  %v4635_v45 = vld [vmem:[%s5693_s22 + $0x60] sm:$0xe] }
 0x1d8   : > { %3750 = vmatmul.bf16.gmra.mxu1 %v2441_v57  ;;  %3903 = vmatmul.bf16.gmra.mxu3 %v2580_v47  ;;  %v1656_v57 = vshrl.u32 %v4595_v55, 16  ;;  %v1659_v47 = vshll.u32 %v4595_v55, 16  ;;  %v1665_v17 = vshll.u32 %v7035_v10, 16  ;;  %v1669_v12 = vshrl.u32 %v7035_v10, 16 }
 0x1d9   : > { %v2421_v13 = vunpack.c.l.b16 %v1406_v63  ;;  %v2618_v40 = vunpack.c.l.b16 %v1976_v61  ;;  %v7059_v63 = vld [vmem:[%s5693_s22 + $0x74] sm:$0x1] }
 0x1da   : > { %v3499_v62 = vpop.f32.mrf.mxu2  ;;  %v1658_v56 = vrot.slane %v1656_v57, 4  ;;  %v1661_v18 = vrot.slane %v1659_v47, 5  ;;  %v1671_v55 = vrot.slane %v1669_v12, 4  ;;  %v2581_v57 = vpack.c.b16 %v2556_v29, %v2555_v23  ;;  %v5463_v47 = vld [vmem:[%s5693_s22 + $0xa0] sm:$0xf] }
 0x1db   : > { %v3500_v39 = vadd.f32 %v3499_v62, %v3411_v1  ;;  %v3588_v2 = vpop.f32.mrf.mxu3  ;;  %v7056_v1 = vrot.slane %v1665_v17, 5  ;;  %v2644_v20 = vpack.c.b16 %v2618_v40, %v2617_v51  ;;  %v2442_v61 = vpack.c.b16 %v2422_v24, %v2421_v13  ;;  %v4597_v13 = vld [vmem:[%s5693_s22 + $0x78] sm:$0xf]  ;;  %v5464_v29 = vld [vmem:[%s5693_s22 + $0xa4] sm:$0x1] }
 0x1dc   : > { %v3674_v8 = vpop.f32.mrf.mxu0  ;;  %v1662_v17 = vor.u32 %v1661_v18, %v1658_v56  ;;  %v1982_v40 = vrot.slane %v7012_v3, 5  ;;  %v7074_v56 = vld [vmem:[%s5693_s22 + $0x7c] sm:$0xf]  ;;  %v7663_v18 = vld [vmem:[#allocation15_spill] sm:$0xff] }
 0x1dd   : > { %v3589_v36 = vadd.f32 %v3588_v2, %v3500_v39  ;;  %v7048_v26 = vadd.f32 %v3674_v8, %v3586_v16  ;;  %v7661_v16 = vld [vmem:[#allocation14_spill] sm:$0xff]  ;;  %v1979_v39 = vrot.slane %v6986_v15, 5  ;;  %v5190_v8 = vld [vmem:[%s5693_s22 + $0x60] sm:$0xff]  ;;  %v1672_v15 = vor.u32 %v1671_v55, %v7056_v1 }
 0x1de   : > { %v3413_v46 = vadd.f32 %v6854_v11, %v7661_v16  ;;  %v1412_v11 = vrot.slane %v5463_v47, 5  ;;  %v3416_v55 = vadd.f32 %v6886_v5, %v7663_v18  ;;  %v1683_v47 = vshll.u32 %v4597_v13, 16 }
 0x1df   : > { %7660 = vst [vmem:[#allocation12_spill] sm:$0xff] %v7048_v26  ;;  %v4561_v26 = vld [vmem:[%s5693_s22 + $0x9c] sm:$0xe]  ;;  %v1981_v51 = vrot.slane %v1979_v39, 4  ;;  %v1693_v5 = vshrl.u32 %v7074_v56, 16 }
 0x1e0   : > { %v4577_v24 = vrot.slane %v4561_v26, 9  ;;  %v1414_v23 = vrot.slane %v1412_v11, 4 }
 0x1e1   : > { %v1983_v26 = vsel %vm5927_vm5, %v1981_v51, %v1982_v40 }
 0x1e2   : > { %v3501_v62 = vpop.f32.mrf.mxu2  ;;  %v2620_v18 = vunpack.c.l.b16 %v1983_v26 }
 0x1e3   : > { %v3502_v2 = vadd.f32 %v3501_v62, %v3413_v46  ;;  %v3590_v43 = vpop.f32.mrf.mxu3  ;;  %v1675_v46 = vshll.u32 %v7059_v63, 16  ;;  %v4651_v62 = vrot.slane %v4635_v45, 9 }
 0x1e4   : > { %v3677_v4 = vpop.f32.mrf.mxu0 }
 0x1e5   : > { %v3591_v12 = vadd.f32 %v3590_v43, %v3502_v2  ;;  %v7065_v16 = vadd.f32 %v3677_v4, %v3589_v36  ;;  %v1415_v36 = vrot.slane %v5464_v29, 5  ;;  %v1663_v2 = vrot.slane %v1662_v17, 4  ;;  %v7078_v4 = vpop.f32.mrf.mxu1 }
 0x1e6   : > { %v1673_v43 = vrot.slane %v1672_v15, 4  ;;  %v1677_v45 = vrot.slane %v1675_v46, 5  ;;  %v1689_v29 = vshll.u32 %v7074_v56, 16  ;;  %v1413_v15 = vsel %vm5927_vm5, %v4577_v24, %v1412_v11 }
 0x1e7   : > { %7662 = vst [vmem:[#allocation13_spill] sm:$0xff] %v7065_v16  ;;  %3819 = vmatmul.bf16.gmra.mxu2 %v5190_v8  ;;  %3992 = vmatmul.bf16.gmra.mxu0 %v2644_v20  ;;  %v1980_v8 = vsel %vm5927_vm5, %v4651_v62, %v1979_v39  ;;  %v1680_v20 = vshrl.u32 %v4597_v13, 16  ;;  %v1416_v46 = vsel %vm5927_vm5, %v1414_v23, %v1415_v36  ;;  %v1685_v11 = vrot.slane %v1683_v47, 5  ;;  %v5465_v47 = vld [vmem:[%s5693_s22 + $0xac] sm:$0xf] }
 0x1e8   : > { %3755 = vmatmul.bf16.gmra.mxu1 %v2442_v61  ;;  %3908 = vmatmul.bf16.gmra.mxu3 %v2581_v57  ;;  %v1668_v51 = vsel %vm5727_vm2, %v1663_v2, %v7056_v1  ;;  %v1678_v40 = vsel %vm5727_vm2, %v1673_v43, %v1677_v45  ;;  %v2619_v13 = vunpack.c.l.b16 %v1980_v8  ;;  %v7097_v24 = vrot.slane %v1689_v29, 5  ;;  %v7102_v2 = vld [vmem:[%s5693_s22 + $0x80] sm:$0x1] }
 0x1e9   : > { %v1695_v23 = vrot.slane %v1693_v5, 4  ;;  %v2423_v36 = vunpack.c.l.b16 %v1413_v15  ;;  %v1419_v29 = vrot.slane %v5465_v47, 5 }
 0x1ea   : > { %v3504_v3 = vpop.f32.mrf.mxu2  ;;  %v2645_v45 = vpack.c.b16 %v2620_v18, %v2619_v13  ;;  %v1986_v13 = vrot.slane %v7035_v10, 5  ;;  %v1989_v10 = vrot.slane %v7059_v63, 5 }
 0x1eb   : > { %v3505_v61 = vadd.f32 %v3504_v3, %v3416_v55  ;;  %v3593_v57 = vpop.f32.mrf.mxu3  ;;  %v1682_v55 = vrot.slane %v1680_v20, 4  ;;  %v2557_v3 = vunpack.c.l.b16 %v1668_v51  ;;  %v5191_v20 = vld [vmem:[%s5693_s22 + $0x6c] sm:$0xff]  ;;  %v1696_v15 = vor.u32 %v1695_v23, %v7097_v24 }
 0x1ec   : > { %v3679_v17 = vpop.f32.mrf.mxu0 }
 0x1ed   : > { %v3594_v39 = vadd.f32 %v3593_v57, %v3505_v61  ;;  %v7090_v62 = vadd.f32 %v3679_v17, %v3591_v12  ;;  %v2424_v12 = vunpack.c.l.b16 %v1416_v46  ;;  %v2558_v61 = vunpack.c.l.b16 %v1678_v40  ;;  %v7665_v57 = vld [vmem:[#allocation16_spill] sm:$0xff]  ;;  %v4562_v17 = vld [vmem:[%s5693_s22 + $0xa8] sm:$0xe]  ;;  %v7108_v46 = vpop.f32.mrf.mxu1 }
 0x1ee   : > { %v3418_v1 = vadd.f32 %v6919_v49, %v7665_v57  ;;  %v1686_v5 = vor.u32 %v1685_v11, %v1682_v55  ;;  %v1699_v57 = vshll.u32 %v7102_v2, 16  ;;  %v1421_v55 = vrot.slane %v1419_v29, 4  ;;  %v5466_v11 = vld [vmem:[%s5693_s22 + $0xb0] sm:$0x1] }
 0x1ef   : > { %7664 = vst [vmem:[#allocation14_spill] sm:$0xff] %v7090_v62  ;;  %v2443_v40 = vpack.c.b16 %v2424_v12, %v2423_v36  ;;  %v2582_v49 = vpack.c.b16 %v2558_v61, %v2557_v3  ;;  %v4578_v62 = vrot.slane %v4562_v17, 9  ;;  %v1422_v23 = vrot.slane %v5466_v11, 5  ;;  %v7667_v61 = vld [vmem:[#allocation18_spill] sm:$0xff] }
 0x1f0   : > { %v1687_v47 = vrot.slane %v1686_v5, 4  ;;  %v1697_v16 = vrot.slane %v1696_v15, 4  ;;  %v1701_v36 = vrot.slane %v1699_v57, 5  ;;  %v1988_v3 = vrot.slane %v1986_v13, 4 }
 0x1f1   : > { %v1423_v15 = vsel %vm5927_vm5, %v1421_v55, %v1422_v23 }
 0x1f2   : > { %v3506_v43 = vpop.f32.mrf.mxu2  ;;  %v1692_v63 = vsel %vm5727_vm2, %v1687_v47, %v7097_v24 }
 0x1f3   : > { %v3507_v8 = vadd.f32 %v3506_v43, %v3418_v1  ;;  %v3595_v26 = vpop.f32.mrf.mxu3  ;;  %v4636_v43 = vld [vmem:[%s5693_s22 + $0x6c] sm:$0xe] }
 0x1f4   : > { %v3682_v51 = vpop.f32.mrf.mxu0  ;;  %v4652_v12 = vrot.slane %v4636_v43, 9 }
 0x1f5   : > { %v3596_v18 = vadd.f32 %v3595_v26, %v3507_v8  ;;  %v7112_v1 = vadd.f32 %v3682_v51, %v3594_v39  ;;  %v4599_v39 = vld [vmem:[%s5693_s22 + $0x84] sm:$0xf]  ;;  %v3421_v8 = vadd.f32 %v6938_v42, %v7667_v61  ;;  %v1702_v42 = vsel %vm5727_vm2, %v1697_v16, %v1701_v36  ;;  %v7140_v23 = vpop.f32.mrf.mxu1 }
 0x1f6   : > { %v1704_v51 = vshrl.u32 %v4599_v39, 16 }
 0x1f7   : > { %7666 = vst [vmem:[#allocation15_spill] sm:$0xff] %v7112_v1  ;;  %3824 = vmatmul.bf16.gmra.mxu2 %v5191_v20  ;;  %3997 = vmatmul.bf16.gmra.mxu0 %v2645_v45  ;;  %v1420_v45 = vsel %vm5927_vm5, %v4578_v62, %v1419_v29  ;;  %v7123_v20 = vld [vmem:[%s5693_s22 + $0x88] sm:$0xf]  ;;  %v1987_v62 = vsel %vm5927_vm5, %v4652_v12, %v1986_v13  ;;  %v2426_v12 = vunpack.c.l.b16 %v1423_v15 }
 0x1f8   : > { %3760 = vmatmul.bf16.gmra.mxu1 %v2443_v40  ;;  %3913 = vmatmul.bf16.gmra.mxu3 %v2582_v49  ;;  %v1707_v40 = vshll.u32 %v4599_v39, 16  ;;  %v1990_v29 = vsel %vm5927_vm5, %v1988_v3, %v1989_v10  ;;  %v1713_v55 = vshll.u32 %v7123_v20, 16  ;;  %v1717_v11 = vshrl.u32 %v7123_v20, 16  ;;  %v7669_v10 = vld [vmem:[#allocation19_spill] sm:$0xff] }
 0x1f9   : > { %v2621_v24 = vunpack.c.l.b16 %v1987_v62  ;;  %v2622_v47 = vunpack.c.l.b16 %v1990_v29  ;;  %v1706_v16 = vrot.slane %v1704_v51, 4  ;;  %v2425_v13 = vunpack.c.l.b16 %v1420_v45  ;;  %v5192_v62 = vld [vmem:[%s5693_s22 + $0x78] sm:$0xff] }
 0x1fa   : > { %v3509_v26 = vpop.f32.mrf.mxu2  ;;  %v1709_v36 = vrot.slane %v1707_v40, 5  ;;  %v2559_v39 = vunpack.c.l.b16 %v1692_v63  ;;  %v2560_v3 = vunpack.c.l.b16 %v1702_v42  ;;  %v1715_v61 = vrot.slane %v1713_v55, 5  ;;  %v5467_v51 = vld [vmem:[%s5693_s22 + $0xb8] sm:$0xf] }
 0x1fb   : > { %v3510_v17 = vadd.f32 %v3509_v26, %v3421_v8  ;;  %v3598_v5 = vpop.f32.mrf.mxu3  ;;  %v1719_v8 = vrot.slane %v1717_v11, 4  ;;  %v2646_v29 = vpack.c.b16 %v2622_v47, %v2621_v24  ;;  %v1426_v40 = vrot.slane %v5467_v51, 5 }
 0x1fc   : > { %v3684_v49 = vpop.f32.mrf.mxu0  ;;  %v1710_v45 = vor.u32 %v1709_v36, %v1706_v16  ;;  %v2444_v63 = vpack.c.b16 %v2426_v12, %v2425_v13  ;;  %v2583_v42 = vpack.c.b16 %v2560_v3, %v2559_v39  ;;  %v5468_v16 = vld [vmem:[%s5693_s22 + $0xbc] sm:$0x1]  ;;  %v1996_v39 = vrot.slane %v7102_v2, 5 }
 0x1fd   : > { %v3599_v57 = vadd.f32 %v3598_v5, %v3510_v17  ;;  %v7136_v43 = vadd.f32 %v3684_v49, %v3596_v18  ;;  %v3423_v18 = vadd.f32 %v6968_v38, %v7669_v10  ;;  %v7145_v17 = vld [vmem:[%s5693_s22 + $0x8c] sm:$0x1]  ;;  %v1993_v38 = vrot.slane %v7074_v56, 5  ;;  %v7156_v12 = vpop.f32.mrf.mxu1 }
 0x1fe   : > { %v1720_v10 = vor.u32 %v1719_v8, %v1715_v61  ;;  %v1428_v47 = vrot.slane %v1426_v40, 4  ;;  %v1429_v36 = vrot.slane %v5468_v16, 5  ;;  %v1711_v13 = vrot.slane %v1710_v45, 4 }
 0x1ff   : > { %7668 = vst [vmem:[#allocation16_spill] sm:$0xff] %v7136_v43  ;;  %v4563_v43 = vld [vmem:[%s5693_s22 + $0xb4] sm:$0xe]  ;;  %v3704_v1 = vadd.f32 %v7025_v53, %v6463_v14 }
 0x200   : > { %v4579_v24 = vrot.slane %v4563_v43, 9  ;;  %v1721_v3 = vrot.slane %v1720_v10, 4  ;;  %v1430_v51 = vsel %vm5927_vm5, %v1428_v47, %v1429_v36  ;;  %v1716_v45 = vsel %vm5727_vm2, %v1711_v13, %v1715_v61 }
 0x201   : > { %v2428_v47 = vunpack.c.l.b16 %v1430_v51  ;;  %v2561_v36 = vunpack.c.l.b16 %v1716_v45  ;;  %v4638_v45 = vld [vmem:[%s5693_s22 + $0x84] sm:$0xe] }
 0x202   : > { %v3511_v26 = vpop.f32.mrf.mxu2  ;;  %v1427_v43 = vsel %vm5927_vm5, %v4579_v24, %v1426_v40 }
 0x203   : > { %v3512_v5 = vadd.f32 %v3511_v26, %v3423_v18  ;;  %v3600_v49 = vpop.f32.mrf.mxu3  ;;  %v1723_v18 = vshll.u32 %v7145_v17, 16  ;;  %v4637_v26 = vld [vmem:[%s5693_s22 + $0x78] sm:$0xe]  ;;  %v2427_v61 = vunpack.c.l.b16 %v1427_v43  ;;  %v3702_v43 = vadd.f32 %v6996_v6, %v6444_v31 }
 0x204   : > { %v3687_v15 = vpop.f32.mrf.mxu0  ;;  %v4653_v56 = vrot.slane %v4637_v26, 9 }
 0x205   : > { %v3601_v55 = vadd.f32 %v3600_v49, %v3512_v5  ;;  %v7151_v11 = vadd.f32 %v3687_v15, %v3599_v57  ;;  %v1995_v57 = vrot.slane %v1993_v38, 4  ;;  %v1725_v8 = vrot.slane %v1723_v18, 5  ;;  %v4601_v5 = vld [vmem:[%s5693_s22 + $0x90] sm:$0xf] }
 0x206   : > { %v1994_v2 = vsel %vm5927_vm5, %v4653_v56, %v1993_v38  ;;  %v1731_v10 = vshll.u32 %v4601_v5, 16 }
 0x207   : > { %7670 = vst [vmem:[#allocation18_spill] sm:$0xff] %v7151_v11  ;;  %3829 = vmatmul.bf16.gmra.mxu2 %v5192_v62  ;;  %4002 = vmatmul.bf16.gmra.mxu0 %v2646_v29  ;;  %v7161_v62 = vld [vmem:[%s5693_s22 + $0x94] sm:$0xf]  ;;  %v1726_v40 = vsel %vm5727_vm2, %v1721_v3, %v1725_v8  ;;  %v2623_v38 = vunpack.c.l.b16 %v1994_v2  ;;  %v7181_v3 = vpop.f32.mrf.mxu1 }
 0x208   : > { %3765 = vmatmul.bf16.gmra.mxu1 %v2444_v63  ;;  %3918 = vmatmul.bf16.gmra.mxu3 %v2583_v42  ;;  %v1997_v63 = vsel %vm5927_vm5, %v1995_v57, %v1996_v39  ;;  %v1728_v42 = vshrl.u32 %v4601_v5, 16  ;;  %v1737_v26 = vshll.u32 %v7161_v62, 16  ;;  %v1741_v24 = vshrl.u32 %v7161_v62, 16  ;;  %v7184_v5 = vld [vmem:[%s5693_s22 + $0x98] sm:$0x1] }
 0x209   : > { %v2624_v16 = vunpack.c.l.b16 %v1997_v63  ;;  %v2562_v13 = vunpack.c.l.b16 %v1726_v40  ;;  %v4564_v63 = vld [vmem:[%s5693_s22 + $0xc0] sm:$0xe]  ;;  %v2445_v40 = vpack.c.b16 %v2428_v47, %v2427_v61  ;;  %v1747_v31 = vshll.u32 %v7184_v5, 16  ;;  %v5470_v47 = vld [vmem:[%s5693_s22 + $0xc8] sm:$0x1] }
 0x20a   : > { %v3790_v49 = vpop.f32.mrf.mxu2  ;;  %v1730_v56 = vrot.slane %v1728_v42, 4  ;;  %v7179_v57 = vrot.slane %v1737_v26, 5  ;;  %v1743_v39 = vrot.slane %v1741_v24, 4  ;;  %v2000_v42 = vrot.slane %v7123_v20, 5 }
 0x20b   : > { %v3879_v29 = vpop.f32.mrf.mxu3  ;;  %v2647_v2 = vpack.c.b16 %v2624_v16, %v2623_v38  ;;  %v2584_v26 = vpack.c.b16 %v2562_v13, %v2561_v36  ;;  %v3791_v6 = vadd.f32 %v3790_v49, %v3702_v43  ;;  %v4580_v38 = vrot.slane %v4564_v63, 9  ;;  %v4603_v36 = vld [vmem:[%s5693_s22 + $0x9c] sm:$0xf] }
 0x20c   : > { %v3689_v15 = vpop.f32.mrf.mxu0  ;;  %v1744_v28 = vor.u32 %v1743_v39, %v7179_v57  ;;  %v4654_v16 = vrot.slane %v4638_v45, 9  ;;  %v2002_v20 = vrot.slane %v2000_v42, 4  ;;  %v1436_v14 = vrot.slane %v5470_v47, 5 }
 0x20d   : > { %v7173_v18 = vadd.f32 %v3689_v15, %v3601_v55  ;;  %v1733_v55 = vrot.slane %v1731_v10, 5  ;;  %v5193_v15 = vld [vmem:[%s5693_s22 + $0x84] sm:$0xff] }
 0x20e   : > { %v1745_v13 = vrot.slane %v1744_v28, 4  ;;  %v2001_v39 = vsel %vm5927_vm5, %v4654_v16, %v2000_v42 }
 0x20f   : > { %7671 = vst [vmem:[#allocation19_spill] sm:$0xff] %v7173_v18  ;;  %v5469_v18 = vld [vmem:[%s5693_s22 + $0xc4] sm:$0xf]  ;;  %v1734_v11 = vor.u32 %v1733_v55, %v1730_v56  ;;  %v1749_v56 = vrot.slane %v1747_v31, 5  ;;  %v3880_v55 = vadd.f32 %v3879_v29, %v3791_v6  ;;  %v7209_v63 = vpop.f32.mrf.mxu1 }
 0x210   : > { %v1433_v24 = vrot.slane %v5469_v18, 5  ;;  %v2003_v18 = vrot.slane %v7145_v17, 5 }
 0x211   : > { %v1735_v53 = vrot.slane %v1734_v11, 4  ;;  %v1755_v11 = vshll.u32 %v4603_v36, 16 }
 0x212   : > { %v3792_v8 = vpop.f32.mrf.mxu2  ;;  %v1435_v61 = vrot.slane %v1433_v24, 4 }
 0x213   : > { %v3881_v51 = vpop.f32.mrf.mxu3  ;;  %v3793_v59 = vadd.f32 %v3792_v8, %v3704_v1  ;;  %v1434_v1 = vsel %vm5927_vm5, %v4580_v38, %v1433_v24  ;;  %v7205_v8 = vld [vmem:[%s5693_s22 + $0xa0] sm:$0xf]  ;;  %v1740_v42 = vsel %vm5727_vm2, %v1735_v53, %v7179_v57  ;;  %v1757_v57 = vrot.slane %v1755_v11, 5 }
 0x214   : > { %v3968_v10 = vpop.f32.mrf.mxu0  ;;  %v1437_v45 = vsel %vm5927_vm5, %v1435_v61, %v1436_v14  ;;  %v2429_v24 = vunpack.c.l.b16 %v1434_v1  ;;  %v2563_v61 = vunpack.c.l.b16 %v1740_v42  ;;  %v5194_v1 = vld [vmem:[%s5693_s22 + $0x90] sm:$0xff]  ;;  %v3709_v42 = vadd.f32 %v7078_v4, %v6505_v27  ;;  %v4605_v4 = vld [vmem:[%s5693_s22 + $0xa8] sm:$0xf] }
 0x215   : > { %v3882_v17 = vadd.f32 %v3881_v51, %v3793_v59  ;;  %v3969_v28 = vadd.f32 %v3968_v10, %v3880_v55  ;;  %v1750_v59 = vsel %vm5727_vm2, %v1745_v13, %v1749_v56  ;;  %v1761_v51 = vshll.u32 %v7205_v8, 16  ;;  %v7233_v13 = vld [vmem:[%s5693_s22 + $0xa4] sm:$0x1] }
 0x216   : > { %v2625_v10 = vunpack.c.l.b16 %v2001_v39  ;;  %v2564_v47 = vunpack.c.l.b16 %v1750_v59  ;;  %v1771_v59 = vshll.u32 %v7233_v13, 16 }
 0x217   : > { %3834 = vmatmul.bf16.gmra.mxu2 %v5193_v15  ;;  %4007 = vmatmul.bf16.gmra.mxu0 %v2647_v2  ;;  %v2004_v15 = vsel %vm5927_vm5, %v2002_v20, %v2003_v18  ;;  %v1752_v2 = vshrl.u32 %v4603_v36, 16  ;;  %v7224_v20 = vmul.f32 %v3969_v28, %v3969_v28  ;;  %v2430_v18 = vunpack.c.l.b16 %v1437_v45 }
 0x218   : > { %3770 = vmatmul.bf16.gmra.mxu1 %v2445_v40  ;;  %3923 = vmatmul.bf16.gmra.mxu3 %v2584_v26  ;;  %v1765_v26 = vshrl.u32 %v7205_v8, 16  ;;  %v2626_v31 = vunpack.c.l.b16 %v2004_v15  ;;  %v1763_v14 = vrot.slane %v1761_v51, 5  ;;  %v3707_v15 = vadd.f32 %v7052_v9, %v6485_v22  ;;  %v7245_v51 = vpop.f32.mrf.mxu1 }
 0x219   : > { %v1754_v16 = vrot.slane %v1752_v2, 4  ;;  %v2446_v11 = vpack.c.b16 %v2430_v18, %v2429_v24  ;;  %v2007_v45 = vrot.slane %v7161_v62, 5  ;;  %v2010_v62 = vrot.slane %v7184_v5, 5  ;;  %v7250_v18 = vld [vmem:[%s5693_s22 + $0xac] sm:$0xf] }
 0x21a   : > { %v3795_v49 = vpop.f32.mrf.mxu2  ;;  %v1767_v53 = vrot.slane %v1765_v26, 4  ;;  %v2648_v39 = vpack.c.b16 %v2626_v31, %v2625_v10  ;;  %v1773_v27 = vrot.slane %v1771_v59, 5 }
 0x21b   : > { %v3884_v43 = vpop.f32.mrf.mxu3  ;;  %v3796_v26 = vadd.f32 %v3795_v49, %v3707_v15  ;;  %v2009_v24 = vrot.slane %v2007_v45, 4 }
 0x21c   : > { %v3970_v29 = vpop.f32.mrf.mxu0 }
 0x21d   : > { %v3971_v40 = vadd.f32 %v3970_v29, %v3882_v17  ;;  %v1758_v17 = vor.u32 %v1757_v57, %v1754_v16  ;;  %v4639_v29 = vld [vmem:[%s5693_s22 + $0x90] sm:$0xe]  ;;  %v3885_v16 = vadd.f32 %v3884_v43, %v3796_v26  ;;  %v2011_v5 = vsel %vm5927_vm5, %v2009_v24, %v2010_v62  ;;  %v7273_v62 = vld [vmem:[%s5693_s22 + $0xb0] sm:$0x1] }
 0x21e   : > { %v4655_v9 = vrot.slane %v4639_v29, 9 }
 0x21f   : > { %v7220_v6 = vmul.f32 %v3971_v40, %v3971_v40  ;;  %v7222_v38 = vpack.c.bf16 %v3971_v40, %v3969_v28  ;;  %v2585_v28 = vpack.c.b16 %v2564_v47, %v2563_v61  ;;  %v1768_v40 = vor.u32 %v1767_v53, %v1763_v14 }
 0x220   : > { %v1759_v22 = vrot.slane %v1758_v17, 4  ;;  %v2008_v53 = vsel %vm5927_vm5, %v4655_v9, %v2007_v45  ;;  %v1779_v17 = vshll.u32 %v4605_v4, 16  ;;  %v2628_v45 = vunpack.c.l.b16 %v2011_v5 }
 0x221   : > { %5279 = vst [vmem:[%s7228_s28] sm:$0xff] %v7222_v38   ;;  %v1769_v31 = vrot.slane %v1768_v40, 4  ;;  %v2627_v29 = vunpack.c.l.b16 %v2008_v53  ;;  %v3714_v5 = vadd.f32 %v7140_v23, %v6547_v25 }
 0x222   : > { %v3797_v36 = vpop.f32.mrf.mxu2  ;;  %v1764_v49 = vsel %vm5727_vm2, %v1759_v22, %v1763_v14  ;;  %v1789_v14 = vshrl.u32 %v7250_v18, 16 }
 0x223   : > { %v3886_v55 = vpop.f32.mrf.mxu3  ;;  %v3798_v10 = vadd.f32 %v3797_v36, %v3709_v42  ;;  %v1774_v15 = vsel %vm5727_vm2, %v1769_v31, %v1773_v27  ;;  %v7266_v42 = vpop.f32.mrf.mxu1 }
 0x224   : > { %v3973_v2 = vpop.f32.mrf.mxu0  ;;  %v2566_v59 = vunpack.c.l.b16 %v1774_v15  ;;  %v1791_v9 = vrot.slane %v1789_v14, 4  ;;  %v4607_v14 = vld [vmem:[%s5693_s22 + $0xb4] sm:$0xf] }
 0x225   : > { %v3887_v61 = vadd.f32 %v3886_v55, %v3798_v10  ;;  %v3974_v36 = vadd.f32 %v3973_v2, %v3885_v16  ;;  %v1785_v55 = vshll.u32 %v7250_v18, 16  ;;  %v1781_v10 = vrot.slane %v1779_v17, 5 }
 0x226   : > { %v2649_v16 = vpack.c.b16 %v2628_v45, %v2627_v29  ;;  %v1795_v17 = vshll.u32 %v7273_v62, 16  ;;  %v2017_v29 = vrot.slane %v7233_v13, 5 }
 0x227   : > { %3839 = vmatmul.bf16.gmra.mxu2 %v5194_v1  ;;  %4012 = vmatmul.bf16.gmra.mxu0 %v2648_v39  ;;  %v1776_v39 = vshrl.u32 %v4605_v4, 16  ;;  %v7268_v40 = vmul.f32 %v3974_v36, %v3974_v36  ;;  %v1787_v22 = vrot.slane %v1785_v55, 5  ;;  %v5195_v4 = vld [vmem:[%s5693_s22 + $0x9c] sm:$0xff] }
 0x228   : > { %3775 = vmatmul.bf16.gmra.mxu1 %v2446_v11  ;;  %3928 = vmatmul.bf16.gmra.mxu3 %v2585_v28  ;;  %v2565_v11 = vunpack.c.l.b16 %v1764_v49  ;;  %v1797_v45 = vrot.slane %v1795_v17, 5 }
 0x229   : > { %v1778_v26 = vrot.slane %v1776_v39, 4  ;;  %v1792_v39 = vor.u32 %v1791_v9, %v1787_v22 }
 0x22a   : > { %v3800_v57 = vpop.f32.mrf.mxu2  ;;  %v2586_v53 = vpack.c.b16 %v2566_v59, %v2565_v11 }
 0x22b   : > { %v3889_v47 = vpop.f32.mrf.mxu3  ;;  %v7287_v59 = vpop.f32.mrf.mxu1 }
 0x22c   : > { %v3975_v1 = vpop.f32.mrf.mxu0 }
 0x22d   : > { %v3976_v43 = vadd.f32 %v3975_v1, %v3887_v61  ;;  %v3712_v61 = vadd.f32 %v7108_v46, %v6527_v58  ;;  %v2014_v1 = vrot.slane %v7205_v8, 5  ;;  %v1793_v8 = vrot.slane %v1792_v39, 4 }
 0x22f   : > { %v7262_v28 = vmul.f32 %v3976_v43, %v3976_v43  ;;  %v7264_v2 = vpack.c.bf16 %v3976_v43, %v3974_v36  ;;  %v1782_v36 = vor.u32 %v1781_v10, %v1778_v26  ;;  %v4640_v43 = vld [vmem:[%s5693_s22 + $0x9c] sm:$0xe]  ;;  %v3801_v15 = vadd.f32 %v3800_v57, %v3712_v61  ;;  %v7290_v26 = vld [vmem:[%s5693_s22 + $0xb8] sm:$0xf] }
 0x230   : > { %v4656_v46 = vrot.slane %v4640_v43, 9  ;;  %v2016_v11 = vrot.slane %v2014_v1, 4  ;;  %v1800_v10 = vshrl.u32 %v4607_v14, 16  ;;  %v1803_v57 = vshll.u32 %v4607_v14, 16 }
 0x231   : > { %5355 = vst [vmem:[%s7228_s28 + $0x8] sm:$0xff] %v7264_v2   ;;  %v1783_v58 = vrot.slane %v1782_v36, 4  ;;  %v3890_v25 = vadd.f32 %v3889_v47, %v3801_v15  ;;  %v1798_v36 = vsel %vm5727_vm2, %v1793_v8, %v1797_v45  ;;  %v7368_v45 = vld [vmem:[%s5693_s22 + $0xd0] sm:$0xf] }
 0x232   : > { %v3802_v24 = vpop.f32.mrf.mxu2  ;;  %v2015_v13 = vsel %vm5927_vm5, %v4656_v46, %v2014_v1  ;;  %v1805_v39 = vrot.slane %v1803_v57, 5  ;;  %v2568_v14 = vunpack.c.l.b16 %v1798_v36 }
 0x233   : > { %v3891_v27 = vpop.f32.mrf.mxu3  ;;  %v3803_v55 = vadd.f32 %v3802_v24, %v3714_v5  ;;  %v1788_v61 = vsel %vm5727_vm2, %v1783_v58, %v1787_v22  ;;  %v1802_v5 = vrot.slane %v1800_v10, 4  ;;  %v2629_v1 = vunpack.c.l.b16 %v2015_v13  ;;  %v5196_v10 = vld [vmem:[%s5693_s22 + $0xa8] sm:$0xff] }
 0x234   : > { %v3978_v49 = vpop.f32.mrf.mxu0 }
 0x235   : > { %v3892_v9 = vadd.f32 %v3891_v27, %v3803_v55  ;;  %v1809_v27 = vshll.u32 %v7290_v26, 16  ;;  %v2567_v55 = vunpack.c.l.b16 %v1788_v61  ;;  %v1806_v8 = vor.u32 %v1805_v39, %v1802_v5  ;;  %v7320_v61 = vpop.f32.mrf.mxu1 }
 0x236   : > { %v3732_v30 = vadd.f32 %v7320_v61, %v6762_v41 }
 0x237   : > { %3844 = vmatmul.bf16.gmra.mxu2 %v5195_v4  ;;  %4017 = vmatmul.bf16.gmra.mxu0 %v2649_v16  ;;  %v3979_v4 = vadd.f32 %v3978_v49, %v3890_v25  ;;  %v1813_v49 = vshrl.u32 %v7290_v26, 16  ;;  %v1811_v58 = vrot.slane %v1809_v27, 5  ;;  %v1807_v5 = vrot.slane %v1806_v8, 4 }
 0x238   : > { %3933 = vmatmul.bf16.gmra.mxu3 %v2586_v53  ;;  %v2018_v53 = vsel %vm5927_vm5, %v2016_v11, %v2017_v29  ;;  %v7311_v29 = vld [vmem:[%s5693_s22 + $0xbc] sm:$0x1] }
 0x239   : > { %v2630_v43 = vunpack.c.l.b16 %v2018_v53  ;;  %v7306_v15 = vmul.f32 %v3979_v4, %v3979_v4  ;;  %v1815_v46 = vrot.slane %v1813_v49, 4  ;;  %v2587_v53 = vpack.c.b16 %v2568_v14, %v2567_v55  ;;  %v7328_v14 = vld [vmem:[%s5693_s22 + $0xc4] sm:$0xf] }
 0x23a   : > { %v3805_v23 = vpop.f32.mrf.mxu2  ;;  %v1819_v27 = vshll.u32 %v7311_v29, 16 }
 0x23b   : > { %v3894_v24 = vpop.f32.mrf.mxu3  ;;  %v2650_v57 = vpack.c.b16 %v2630_v43, %v2629_v1  ;;  %v1816_v36 = vor.u32 %v1815_v46, %v1811_v58 }
 0x23c   : > { %v3980_v16 = vpop.f32.mrf.mxu0  ;;  %v1821_v55 = vrot.slane %v1819_v27, 5 }
 0x23d   : > { %v3981_v47 = vadd.f32 %v3980_v16, %v3892_v9  ;;  %v4641_v9 = vld [vmem:[%s5693_s22 + $0xa8] sm:$0xe]  ;;  %v3717_v16 = vadd.f32 %v7156_v12, %v6569_v50  ;;  %v2024_v50 = vrot.slane %v7273_v62, 5  ;;  %v4609_v12 = vld [vmem:[%s5693_s22 + $0xc0] sm:$0xf]  ;;  %v1817_v43 = vrot.slane %v1816_v36, 4 }
 0x23e   : > { %v4657_v39 = vrot.slane %v4641_v9, 9  ;;  %v1824_v62 = vshrl.u32 %v4609_v12, 16 }
 0x23f   : > { %v7302_v22 = vmul.f32 %v3981_v47, %v3981_v47  ;;  %v7304_v17 = vpack.c.bf16 %v3981_v47, %v3979_v4  ;;  %v2021_v4 = vrot.slane %v7250_v18, 5  ;;  %v3719_v47 = vadd.f32 %v7181_v3, %v6601_v35 }
 0x240   : > { %v3806_v49 = vadd.f32 %v3805_v23, %v3717_v16  ;;  %v1812_v3 = vsel %vm5727_vm2, %v1807_v5, %v1811_v58  ;;  %v1833_v16 = vshll.u32 %v7328_v14, 16  ;;  %v1822_v58 = vsel %vm5727_vm2, %v1817_v43, %v1821_v55 }
 0x241   : > { %5356 = vst [vmem:[%s7228_s28 + $0x10] sm:$0xff] %v7304_v17   ;;  %v2023_v18 = vrot.slane %v2021_v4, 4  ;;  %v2022_v23 = vsel %vm5927_vm5, %v4657_v39, %v2021_v4  ;;  %v7340_v4 = vpop.f32.mrf.mxu1  ;;  %v2570_v39 = vunpack.c.l.b16 %v1822_v58  ;;  %v3722_v55 = vadd.f32 %v7209_v63, %v6635_v44 }
 0x242   : > { %v3807_v11 = vpop.f32.mrf.mxu2  ;;  %v3895_v56 = vadd.f32 %v3894_v24, %v3806_v49  ;;  %v1837_v24 = vshrl.u32 %v7328_v14, 16 }
 0x243   : > { %v3896_v25 = vpop.f32.mrf.mxu3  ;;  %v3808_v1 = vadd.f32 %v3807_v11, %v3719_v47  ;;  %v2025_v8 = vsel %vm5927_vm5, %v2023_v18, %v2024_v50  ;;  %v2631_v47 = vunpack.c.l.b16 %v2022_v23  ;;  %v7351_v50 = vld [vmem:[%s5693_s22 + $0xc8] sm:$0x1]  ;;  %v5197_v23 = vld [vmem:[%s5693_s22 + $0xb4] sm:$0xff] }
 0x244   : > { %v3983_v13 = vpop.f32.mrf.mxu0  ;;  %v2632_v36 = vunpack.c.l.b16 %v2025_v8  ;;  %v1839_v18 = vrot.slane %v1837_v24, 4  ;;  %v2028_v24 = vrot.slane %v7290_v26, 5  ;;  %v4611_v26 = vld [vmem:[%s5693_s22 + $0xcc] sm:$0xf] }
 0x245   : > { %v3897_v46 = vadd.f32 %v3896_v25, %v3808_v1  ;;  %v2569_v25 = vunpack.c.l.b16 %v1812_v3  ;;  %v1835_v1 = vrot.slane %v1833_v16, 5  ;;  %v4642_v16 = vld [vmem:[%s5693_s22 + $0xb4] sm:$0xe] }
 0x246   : > { %v4658_v63 = vrot.slane %v4642_v16, 9 }
 0x247   : > { %3849 = vmatmul.bf16.gmra.mxu2 %v5196_v10  ;;  %4022 = vmatmul.bf16.gmra.mxu0 %v2650_v57  ;;  %v1827_v10 = vshll.u32 %v4609_v12, 16  ;;  %v3984_v57 = vadd.f32 %v3983_v13, %v3895_v56  ;;  %v1826_v13 = vrot.slane %v1824_v62, 4 }
 0x248   : > { %3938 = vmatmul.bf16.gmra.mxu3 %v2587_v53 }
 0x249   : > { %v1829_v49 = vrot.slane %v1827_v10, 5  ;;  %v7346_v5 = vmul.f32 %v3984_v57, %v3984_v57  ;;  %v2588_v10 = vpack.c.b16 %v2570_v39, %v2569_v25 }
 0x24a   : > { %v3810_v35 = vpop.f32.mrf.mxu2 }
 0x24b   : > { %v3899_v11 = vpop.f32.mrf.mxu3  ;;  %v1830_v8 = vor.u32 %v1829_v49, %v1826_v13  ;;  %v3811_v58 = vadd.f32 %v3810_v35, %v3722_v55  ;;  %v2030_v13 = vrot.slane %v2028_v24, 4  ;;  %v2031_v49 = vrot.slane %v7311_v29, 5 }
 0x24c   : > { %v3985_v9 = vpop.f32.mrf.mxu0 }
 0x24d   : > { %v3986_v53 = vadd.f32 %v3985_v9, %v3897_v46  ;;  %v2651_v46 = vpack.c.b16 %v2632_v36, %v2631_v47  ;;  %v1843_v9 = vshll.u32 %v7351_v50, 16  ;;  %v1831_v44 = vrot.slane %v1830_v8, 4  ;;  %v7363_v47 = vpop.f32.mrf.mxu1 }
 0x24e   : > { %v3900_v39 = vadd.f32 %v3899_v11, %v3811_v58  ;;  %v2032_v29 = vsel %vm5927_vm5, %v2030_v13, %v2031_v49  ;;  %v1848_v11 = vshrl.u32 %v4611_v26, 16 }
 0x24f   : > { %v7342_v27 = vmul.f32 %v3986_v53, %v3986_v53  ;;  %v7344_v56 = vpack.c.bf16 %v3986_v53, %v3984_v57  ;;  %v1840_v57 = vor.u32 %v1839_v18, %v1835_v1  ;;  %v3724_v53 = vadd.f32 %v7245_v51, %v6671_v37 }
 0x250   : > { %v1845_v36 = vrot.slane %v1843_v9, 5  ;;  %v2634_v16 = vunpack.c.l.b16 %v2032_v29  ;;  %v1850_v58 = vrot.slane %v1848_v11, 4  ;;  %v4643_v29 = vld [vmem:[%s5693_s22 + $0xc0] sm:$0xe]  ;;  %v2035_v11 = vrot.slane %v7328_v14, 5 }
 0x251   : > { %5357 = vst [vmem:[%s7228_s28 + $0x18] sm:$0xff] %v7344_v56   ;;  %v1841_v25 = vrot.slane %v1840_v57, 4 }
 0x252   : > { %v3812_v12 = vpop.f32.mrf.mxu2 }
 0x253   : > { %v3901_v3 = vpop.f32.mrf.mxu3  ;;  %v3813_v31 = vadd.f32 %v3812_v12, %v3724_v53  ;;  %v2029_v12 = vsel %vm5927_vm5, %v4658_v63, %v2028_v24 }
 0x254   : > { %v3988_v62 = vpop.f32.mrf.mxu0 }
 0x255   : > { %v3902_v37 = vadd.f32 %v3901_v3, %v3813_v31  ;;  %v3989_v51 = vadd.f32 %v3988_v62, %v3900_v39  ;;  %v1857_v31 = vshll.u32 %v7368_v45, 16  ;;  %v1861_v3 = vshrl.u32 %v7368_v45, 16  ;;  %v7390_v13 = vpop.f32.mrf.mxu1  ;;  %v7393_v39 = vld [vmem:[%s5693_s22 + $0xd4] sm:$0x1] }
 0x256   : > { %v2633_v62 = vunpack.c.l.b16 %v2029_v12  ;;  %v2045_v41 = vrot.slane %v7393_v39, 5  ;;  %v3739_v33 = vadd.f32 %v7390_v13, %v6824_v32 }
 0x257   : > { %3854 = vmatmul.bf16.gmra.mxu2 %v5197_v23  ;;  %4027 = vmatmul.bf16.gmra.mxu0 %v2651_v46  ;;  %v1836_v23 = vsel %vm5727_vm2, %v1831_v44, %v1835_v1  ;;  %v1846_v46 = vsel %vm5727_vm2, %v1841_v25, %v1845_v36  ;;  %v7380_v57 = vmul.f32 %v3989_v51, %v3989_v51  ;;  %v1859_v63 = vrot.slane %v1857_v31, 5 }
 0x258   : > { %3943 = vmatmul.bf16.gmra.mxu3 %v2588_v10  ;;  %v1851_v10 = vshll.u32 %v4611_v26, 16  ;;  %v2571_v24 = vunpack.c.l.b16 %v1836_v23  ;;  %v2572_v53 = vunpack.c.l.b16 %v1846_v46  ;;  %v1863_v25 = vrot.slane %v1861_v3, 4 }
 0x259   : > { %v3727_v26 = vadd.f32 %v7266_v42, %v6711_v54  ;;  %v2652_v12 = vpack.c.b16 %v2634_v16, %v2633_v62  ;;  %v1867_v3 = vshll.u32 %v7393_v39, 16  ;;  %v4659_v54 = vrot.slane %v4643_v29, 9 }
 0x25a   : > { %v3815_v18 = vpop.f32.mrf.mxu2  ;;  %v1853_v44 = vrot.slane %v1851_v10, 5  ;;  %v2589_v46 = vpack.c.b16 %v2572_v53, %v2571_v24  ;;  %v1864_v31 = vor.u32 %v1863_v25, %v1859_v63  ;;  %v2037_v42 = vrot.slane %v2035_v11, 4 }
 0x25b   : > { %v3904_v35 = vpop.f32.mrf.mxu3  ;;  %v2038_v62 = vrot.slane %v7351_v50, 5  ;;  %v1869_v24 = vrot.slane %v1867_v3, 5  ;;  %v4644_v3 = vld [vmem:[%s5693_s22 + $0xcc] sm:$0xe] }
 0x25c   : > { %v3990_v55 = vpop.f32.mrf.mxu0  ;;  %v1854_v10 = vor.u32 %v1853_v44, %v1850_v58  ;;  %v2036_v58 = vsel %vm5927_vm5, %v4659_v54, %v2035_v11  ;;  %v5199_v11 = vld [vmem:[%s5693_s22 + $0xcc] sm:$0xff]  ;;  %v2042_v54 = vrot.slane %v7368_v45, 5 }
 0x25d   : > { %v3991_v8 = vadd.f32 %v3990_v55, %v3902_v37  ;;  %v3729_v55 = vadd.f32 %v7287_v59, %v6740_v52  ;;  %v1865_v59 = vrot.slane %v1864_v31, 4  ;;  %v7406_v44 = vpop.f32.mrf.mxu1 }
 0x25e   : > { %v1855_v52 = vrot.slane %v1854_v10, 4  ;;  %v3742_v32 = vadd.f32 %v7406_v44, %v6846_v19 }
 0x25f   : > { %v7382_v9 = vmul.f32 %v3991_v8, %v3991_v8  ;;  %v7384_v1 = vpack.c.bf16 %v3991_v8, %v3989_v51  ;;  %v5198_v51 = vld [vmem:[%s5693_s22 + $0xc0] sm:$0xff]  ;;  %v3816_v8 = vadd.f32 %v3815_v18, %v3727_v26  ;;  %v2635_v26 = vunpack.c.l.b16 %v2036_v58  ;;  %s5272_s22 = sshll.u32 %s5644_s19, 7 }
 0x260   : > { %s4333_s30 = scalar_lea.hbm %s7628_s3, %s5272_s22  ;;  %s4316_s13 = scalar_lea.hbm %s7627_s2, %s5272_s22 }
 0x261   : > { %5358 = vst [vmem:[%s7228_s28 + $0x20] sm:$0xff] %v7384_v1   ;;  %v3905_v16 = vadd.f32 %v3904_v35, %v3816_v8  ;;  %v1860_v35 = vsel %vm5727_vm2, %v1855_v52, %v1859_v63  ;;  %s4336_s7 = sshll.u32 %s4333_s30, 4  ;;  %s4337_s7 = int_to_ptr.hbm [resolvable:$true] %s4336_s7 }
 0x262   : > { %v3817_v49 = vpop.f32.mrf.mxu2  ;;  %s5485_s27 = sshra.s32 %s4337_s7, 4  ;;  %s5486_s27 = int_to_ptr.hbm [resolvable:$true] %s5485_s27 }
 0x263   : > { %v3906_v37 = vpop.f32.mrf.mxu3  ;;  %v3818_v43 = vadd.f32 %v3817_v49, %v3729_v55  ;;  %v2039_v49 = vsel %vm5927_vm5, %v2037_v42, %v2038_v62  ;;  %v3734_v42 = vadd.f32 %v7340_v4, %v6781_v0  ;;  %s5487_s20 = scalar_lea.hbm %s5486_s27, 128  ;;  %p5492_p0 = scmp.lt.s32.totalorder %s5486_s27, %s7628_s3 }
 0x264   : > { %v3993_v23 = vpop.f32.mrf.mxu0  ;;  %v2636_v55 = vunpack.c.l.b16 %v2039_v49  ;;  %p5488_p11 = scmp.ne.s32.totalorder %s5486_s27, %s5487_s20  ;;  %p5493_p1 = scmp.lt.s32.totalorder %s5491_s12, %s5487_s20 }
 0x265   : > { %v3907_v36 = vadd.f32 %v3906_v37, %v3818_v43  ;;  %v3994_v14 = vadd.f32 %v3993_v23, %v3905_v16  ;;  %v1870_v43 = vsel %vm5727_vm2, %v1865_v59, %v1869_v24  ;;  %v2573_v23 = vunpack.c.l.b16 %v1860_v35  ;;  %v3743_v16 = vpop.f32.mrf.mxu1 }
 0x266   : > { %v2653_v8 = vpack.c.b16 %v2636_v55, %v2635_v26  ;;  %v4660_v59 = vrot.slane %v4644_v3, 9  ;;  %v2044_v24 = vrot.slane %v2042_v54, 4  ;;  %p5489_p12 = pnand %p5488_p11, %p5663_p5  ;;  %p5494_p2 = por %p5493_p1, %p5492_p0 }
 0x267   : > { %3859 = vmatmul.bf16.gmra.mxu2 %v5198_v51  ;;  %4032 = vmatmul.bf16.gmra.mxu0 %v2652_v12  ;;  %v7414_v37 = vmul.f32 %v3994_v14, %v3994_v14 }
 0x268   : > { %3948 = vmatmul.bf16.gmra.mxu3 %v2589_v46  ;;  %v2574_v46 = vunpack.c.l.b16 %v1870_v43  ;;  %v2043_v45 = vsel %vm5927_vm5, %v4660_v59, %v2042_v54  ;;  %v2046_v4 = vsel %vm5927_vm5, %v2044_v24, %v2045_v41  ;;  %p5490_p13 = pneg %p5489_p12 }
 0x269   : > { %v2638_v55 = vunpack.c.l.b16 %v2046_v4 }
 0x26a   : > { %v3820_v53 = vpop.f32.mrf.mxu2  ;;  %v2590_v31 = vpack.c.b16 %v2574_v46, %v2573_v23  ;;  %v3737_v46 = vadd.f32 %v7363_v47, %v6800_v48  ;;  %p5495_p3 = pnand %p5494_p2, %p5490_p13 }
 0x26b   : > { %v3909_v18 = vpop.f32.mrf.mxu3  ;;  %v3821_v62 = vadd.f32 %v3820_v53, %v3732_v30 }
 0x26c   : > { %v3995_v25 = vpop.f32.mrf.mxu0 }
 0x26d   : > { %v3996_v50 = vadd.f32 %v3995_v25, %v3907_v36  ;;  %v3910_v61 = vadd.f32 %v3909_v18, %v3821_v62  ;;  %v3746_v39 = vpop.f32.mrf.mxu1 }
 0x26f   : > { %v7416_v51 = vmul.f32 %v3996_v50, %v3996_v50  ;;  %v7418_v12 = vpack.c.bf16 %v3996_v50, %v3994_v14  ;;  %v2637_v50 = vunpack.c.l.b16 %v2043_v45 }
 0x271   : > { %5359 = vst [vmem:[%s7228_s28 + $0x28] sm:$0xff] %v7418_v12   ;;  %v4091_v36 = vpack.c.bf16 %v7416_v51, %v7414_v37  ;;  %v2654_v30 = vpack.c.b16 %v2638_v55, %v2637_v50  ;;  %v7673_v55 = vpack.c.bf16 %v7342_v27, %v7346_v5 }
 0x272   : > { %v3822_v63 = vpop.f32.mrf.mxu2 }
 0x273   : > { %v3911_v29 = vpop.f32.mrf.mxu3  ;;  %v3823_v52 = vadd.f32 %v3822_v63, %v3734_v42 }
 0x274   : > { %v3998_v10 = vpop.f32.mrf.mxu0 }
 0x275   : > { %v3912_v58 = vadd.f32 %v3911_v29, %v3823_v52  ;;  %v3999_v25 = vadd.f32 %v3998_v10, %v3910_v61 }
 0x277   : > { %3864 = vmatmul.bf16.gmra.mxu2 %v5199_v11  ;;  %4037 = vmatmul.bf16.gmra.mxu0 %v2653_v8  ;;  %v4060_v35 = vmul.f32 %v3999_v25, %v3999_v25 }
 0x278   : > { %3953 = vmatmul.bf16.gmra.mxu3 %v2590_v31  ;;  %v3748_v31 = vpop.f32.mrf.mxu1 }
 0x27a   : > { %v3825_v14 = vpop.f32.mrf.mxu2 }
 0x27b   : > { %v3914_v49 = vpop.f32.mrf.mxu3  ;;  %v3826_v11 = vadd.f32 %v3825_v14, %v3737_v46 }
 0x27c   : > { %v4000_v0 = vpop.f32.mrf.mxu0 }
 0x27d   : > { %v4001_v53 = vadd.f32 %v4000_v0, %v3912_v58  ;;  %v3915_v10 = vadd.f32 %v3914_v49, %v3826_v11 }
 0x27f   : > { %v4061_v43 = vmul.f32 %v4001_v53, %v4001_v53  ;;  %v4092_v26 = vpack.c.bf16 %v4001_v53, %v3999_v25  ;;  %v3744_v25 = vadd.f32 %v3743_v16, %v6872_v21 }
 0x280   : > { %v3751_v14 = vpop.f32.mrf.mxu1 }
 0x281   : > { %5360 = vst [vmem:[%s7228_s28 + $0x30] sm:$0xff] %v4092_v26   ;;  %v4093_v18 = vpack.c.bf16 %v4061_v43, %v4060_v35  ;;  %v3752_v11 = vadd.f32 %v3751_v14, %v6934_v60 }
 0x282   : > { %v3827_v23 = vpop.f32.mrf.mxu2 }
 0x283   : > { %v3916_v63 = vpop.f32.mrf.mxu3  ;;  %v3828_v8 = vadd.f32 %v3827_v23, %v3739_v33  ;;  %v3749_v23 = vadd.f32 %v3748_v31, %v6912_v34  ;;  %v7675_v34 = vpack.c.bf16 %v7262_v28, %v7268_v40 }
 0x284   : > { %v4003_v29 = vpop.f32.mrf.mxu0 }
 0x285   : > { %v3917_v54 = vadd.f32 %v3916_v63, %v3828_v8  ;;  %v4004_v42 = vadd.f32 %v4003_v29, %v3915_v10  ;;  %v7677_v10 = vld [vmem:[#allocation17_spill] sm:$0xff] }
 0x287   : > { %4042 = vmatmul.bf16.gmra.mxu0 %v2654_v30  ;;  %v4062_v24 = vmul.f32 %v4004_v42, %v4004_v42 }
 0x288   : > { %v3753_v21 = vpop.f32.mrf.mxu1 }
 0x289   : > { %v3754_v31 = vadd.f32 %v3753_v21, %v7677_v10 }
 0x28a   : > { %v3830_v3 = vpop.f32.mrf.mxu2 }
 0x28b   : > { %v3919_v62 = vpop.f32.mrf.mxu3  ;;  %v3831_v49 = vadd.f32 %v3830_v3, %v3742_v32 }
 0x28c   : > { %v4005_v52 = vpop.f32.mrf.mxu0 }
 0x28d   : > { %v4006_v59 = vadd.f32 %v4005_v52, %v3917_v54  ;;  %v3920_v0 = vadd.f32 %v3919_v62, %v3831_v49  ;;  %v7679_v49 = vld [vmem:[#allocation10_spill] sm:$0xff] }
 0x28f   : > { %v4063_v48 = vmul.f32 %v4006_v59, %v4006_v59  ;;  %v4094_v47 = vpack.c.bf16 %v4006_v59, %v4004_v42 }
 0x290   : > { %v3756_v46 = vpop.f32.mrf.mxu1 }
 0x291   : > { %v4095_v41 = vpack.c.bf16 %v4063_v48, %v4062_v24  ;;  %5361 = vst [vmem:[%s7228_s28 + $0x38] sm:$0xff] %v4094_v47   ;;  %4112 = vmatpush.bf16.msra.mxu1 %v4094_v47 }
 0x292   : > { %v3832_v61 = vpop.f32.mrf.mxu2 }
 0x293   : > { %v3921_v13 = vpop.f32.mrf.mxu3  ;;  %4138 = vmatpush.bf16.msrb.mxu3 %v4095_v41  ;;  %v3833_v45 = vadd.f32 %v3832_v61, %v3744_v25 }
 0x294   : > { %v4008_v58 = vpop.f32.mrf.mxu0 }
 0x295   : > { %4113 = vmatpush.bf16.msra.mxu1 %v4092_v26  ;;  %v3922_v53 = vadd.f32 %v3921_v13, %v3833_v45  ;;  %v4009_v50 = vadd.f32 %v4008_v58, %v3920_v0  ;;  %v7678_v13 = vld [vmem:[#allocation9_spill] sm:$0xff] }
 0x296   : > { %v3757_v14 = vadd.f32 %v3756_v46, %v7678_v13 }
 0x297   : > { %4139 = vmatpush.bf16.msrb.mxu3 %v4093_v18  ;;  %v7450_v16 = vmul.f32 %v4009_v50, %v4009_v50 }
 0x298   : > { %v3758_v40 = vpop.f32.mrf.mxu1 }
 0x299   : > { %4114 = vmatpush.bf16.msra.mxu1 %v7418_v12  ;;  %v7672_v12 = vpack.c.bf16 %v7382_v9, %v7380_v57  ;;  %v3759_v45 = vadd.f32 %v3758_v40, %v7679_v49 }
 0x29a   : > { %v3835_v4 = vpop.f32.mrf.mxu2 }
 0x29b   : > { %v3924_v35 = vpop.f32.mrf.mxu3  ;;  %4140 = vmatpush.bf16.msrb.mxu3 %v4091_v36 }
 0x29c   : > { %v4010_v19 = vpop.f32.mrf.mxu0 }
 0x29d   : > { %v4011_v44 = vadd.f32 %v4010_v19, %v3922_v53  ;;  %4115 = vmatpush.bf16.msra.mxu1 %v7384_v1  ;;  %v3747_v1 = vadd.f32 %v3746_v39, %v6889_v7 }
 0x29f   : > { %v7452_v43 = vmul.f32 %v4011_v44, %v4011_v44  ;;  %v7454_v26 = vpack.c.bf16 %v4011_v44, %v4009_v50  ;;  %4141 = vmatpush.bf16.msrb.mxu3 %v7672_v12  ;;  %v3836_v57 = vadd.f32 %v3835_v4, %v3747_v1 }
 0x2a0   : > { %v3761_v59 = vpop.f32.mrf.mxu1 }
 0x2a1   : > { %5362 = vst [vmem:[%s7228_s28 + $0x40] sm:$0xff] %v7454_v26   ;;  %4116 = vmatpush.bf16.msra.mxu1 %v7344_v56  ;;  %v4097_v37 = vpack.c.bf16 %v7452_v43, %v7450_v16  ;;  %v7674_v56 = vpack.c.bf16 %v7302_v22, %v7306_v15  ;;  %v3925_v63 = vadd.f32 %v3924_v35, %v3836_v57 }
 0x2a2   : > { %v3837_v51 = vpop.f32.mrf.mxu2 }
 0x2a3   : > { %v3926_v36 = vpop.f32.mrf.mxu3  ;;  %4142 = vmatpush.bf16.msrb.mxu3 %v7673_v55  ;;  %v3838_v9 = vadd.f32 %v3837_v51, %v3749_v23 }
 0x2a4   : > { %v4013_v18 = vpop.f32.mrf.mxu0 }
 0x2a5   : > { %4117 = vmatpush.bf16.msra.mxu1 %v7304_v17  ;;  %v3927_v39 = vadd.f32 %v3926_v36, %v3838_v9  ;;  %v4014_v27 = vadd.f32 %v4013_v18, %v3925_v63  ;;  %v7680_v9 = vld [vmem:[#allocation11_spill] sm:$0xff] }
 0x2a7   : > { %4143 = vmatpush.bf16.msrb.mxu3 %v7674_v56  ;;  %v7478_v29 = vmul.f32 %v4014_v27, %v4014_v27  ;;  %v3762_v56 = vadd.f32 %v3761_v59, %v7680_v9  ;;  %v7683_v59 = vld [vmem:[#allocation14_spill] sm:$0xff] }
 0x2a8   : > { %v3763_v4 = vpop.f32.mrf.mxu1 }
 0x2a9   : > { %4118 = vmatpush.bf16.msra.mxu1 %v7264_v2  ;;  %v7676_v2 = vpack.c.bf16 %v7220_v6, %v7224_v20 }
 0x2aa   : > { %v3840_v7 = vpop.f32.mrf.mxu2 }
 0x2ab   : > { %v3929_v5 = vpop.f32.mrf.mxu3  ;;  %4144 = vmatpush.bf16.msrb.mxu3 %v7675_v34  ;;  %v3841_v3 = vadd.f32 %v3840_v7, %v3752_v11  ;;  %v7681_v7 = vld [vmem:[#allocation12_spill] sm:$0xff] }
 0x2ac   : > { %v4015_v30 = vpop.f32.mrf.mxu0 }
 0x2ad   : > { %v4016_v17 = vadd.f32 %v4015_v30, %v3927_v39  ;;  %4119 = vmatpush.bf16.msra.mxu1 %v7222_v38  ;;  %v3930_v42 = vadd.f32 %v3929_v5, %v3841_v3  ;;  %v3764_v39 = vadd.f32 %v3763_v4, %v7681_v7 }
 0x2af   : > { %v7480_v22 = vmul.f32 %v4016_v17, %v4016_v17  ;;  %v7482_v15 = vpack.c.bf16 %v4016_v17, %v4014_v27  ;;  %4145 = vmatpush.bf16.msrb.mxu3 %v7676_v2 }
 0x2b0   : > { %v3766_v18 = vpop.f32.mrf.mxu1 }
 0x2b1   : > { %5363 = vst [vmem:[%s7228_s28 + $0x48] sm:$0xff] %v7482_v15   ;;  %v4099_v28 = vpack.c.bf16 %v7480_v22, %v7478_v29 }
 0x2b2   : > { %v3842_v33 = vpop.f32.mrf.mxu2 }
 0x2b3   : > { %v3931_v38 = vpop.f32.mrf.mxu3  ;;  %v3843_v54 = vadd.f32 %v3842_v33, %v3754_v31 }
 0x2b4   : > { %v4018_v8 = vpop.f32.mrf.mxu0 }
 0x2b5   : > { %v3932_v6 = vadd.f32 %v3931_v38, %v3843_v54  ;;  %v4019_v20 = vadd.f32 %v4018_v8, %v3930_v42  ;;  %v7682_v42 = vld [vmem:[#allocation13_spill] sm:$0xff] }
 0x2b7   : > { %v7493_v47 = vmul.f32 %v4019_v20, %v4019_v20 }
 0x2b8   : > { %v3768_v30 = vpop.f32.mrf.mxu1 }
 0x2ba   : > { %v3845_v62 = vpop.f32.mrf.mxu2 }
 0x2bb   : > { %v3934_v52 = vpop.f32.mrf.mxu3  ;;  %v3846_v0 = vadd.f32 %v3845_v62, %v3757_v14  ;;  %v3767_v62 = vadd.f32 %v3766_v18, %v7682_v42  ;;  %v7685_v18 = vld [vmem:[#allocation16_spill] sm:$0xff]  ;;  %v7686_v42 = vld [vmem:[#allocation18_spill] sm:$0xff] }
 0x2bc   : > { %v4020_v24 = vpop.f32.mrf.mxu0 }
 0x2bd   : > { %v4021_v48 = vadd.f32 %v4020_v24, %v3932_v6  ;;  %v3935_v50 = vadd.f32 %v3934_v52, %v3846_v0  ;;  %v3769_v24 = vadd.f32 %v3768_v30, %v7683_v59 }
 0x2bf   : > { %v7495_v41 = vmul.f32 %v4021_v48, %v4021_v48  ;;  %v7497_v60 = vpack.c.bf16 %v4021_v48, %v4019_v20 }
 0x2c0   : > { %v3771_v20 = vpop.f32.mrf.mxu1 }
 0x2c1   : > { %5364 = vst [vmem:[%s7228_s28 + $0x50] sm:$0xff] %v7497_v60   ;;  %v4101_v61 = vpack.c.bf16 %v7495_v41, %v7493_v47 }
 0x2c2   : > { %v3847_v32 = vpop.f32.mrf.mxu2 }
 0x2c3   : > { %v3936_v58 = vpop.f32.mrf.mxu3  ;;  %v3848_v53 = vadd.f32 %v3847_v32, %v3759_v45 }
 0x2c4   : > { %v4023_v25 = vpop.f32.mrf.mxu0 }
 0x2c5   : > { %v3937_v19 = vadd.f32 %v3936_v58, %v3848_v53  ;;  %v4024_v44 = vadd.f32 %v4023_v25, %v3935_v50 }
 0x2c7   : > { %v7505_v1 = vmul.f32 %v4024_v44, %v4024_v44 }
 0x2c8   : > { %v3773_v4 = vpop.f32.mrf.mxu1 }
 0x2ca   : > { %v3850_v35 = vpop.f32.mrf.mxu2 }
 0x2cb   : > { %v3939_v21 = vpop.f32.mrf.mxu3  ;;  %v3851_v27 = vadd.f32 %v3850_v35, %v3762_v56 }
 0x2cc   : > { %v4025_v12 = vpop.f32.mrf.mxu0 }
 0x2cd   : > { %v4026_v51 = vadd.f32 %v4025_v12, %v3937_v19  ;;  %v3940_v34 = vadd.f32 %v3939_v21, %v3851_v27  ;;  %v7684_v21 = vld [vmem:[#allocation15_spill] sm:$0xff] }
 0x2ce   : > { %v3772_v12 = vadd.f32 %v3771_v20, %v7684_v21 }
 0x2cf   : > { %v7507_v36 = vmul.f32 %v4026_v51, %v4026_v51  ;;  %v7509_v55 = vpack.c.bf16 %v4026_v51, %v4024_v44 }
 0x2d1   : > { %5365 = vst [vmem:[%s7228_s28 + $0x58] sm:$0xff] %v7509_v55   ;;  %v4103_v23 = vpack.c.bf16 %v7507_v36, %v7505_v1 }
 0x2d2   : > { %v3852_v57 = vpop.f32.mrf.mxu2 }
 0x2d3   : > { %v3941_v46 = vpop.f32.mrf.mxu3  ;;  %v3853_v5 = vadd.f32 %v3852_v57, %v3764_v39  ;;  %v3774_v57 = vadd.f32 %v3773_v4, %v7685_v18 }
 0x2d4   : > { %v4028_v63 = vpop.f32.mrf.mxu0 }
 0x2d5   : > { %v3942_v2 = vadd.f32 %v3941_v46, %v3853_v5  ;;  %v4029_v40 = vadd.f32 %v4028_v63, %v3940_v34  ;;  %v3776_v63 = vpop.f32.mrf.mxu1 }
 0x2d7   : > { %v7517_v8 = vmul.f32 %v4029_v40, %v4029_v40 }
 0x2da   : > { %v3855_v17 = vpop.f32.mrf.mxu2 }
 0x2db   : > { %v3944_v33 = vpop.f32.mrf.mxu3  ;;  %v3856_v48 = vadd.f32 %v3855_v17, %v3767_v62  ;;  %v3777_v62 = vadd.f32 %v3776_v63, %v7686_v42 }
 0x2dc   : > { %v4030_v11 = vpop.f32.mrf.mxu0 }
 0x2dd   : > { %v4031_v38 = vadd.f32 %v4030_v11, %v3942_v2  ;;  %v3945_v13 = vadd.f32 %v3944_v33, %v3856_v48  ;;  %v5595_v33 = vmov 1065369472  }
 0x2de   : > { %4120 = vmatmul.bf16.vlgmr.msra.gmra.mxu1 %v5595_v33  ;;  %4146 = vmatmul.bf16.vlgmr.msrb.gmra.mxu3 %v5595_v33 }
 0x2df   : > { %v7519_v10 = vmul.f32 %v4031_v38, %v4031_v38  ;;  %v7521_v31 = vpack.c.bf16 %v4031_v38, %v4029_v40 }
 0x2e1   : > { %5366 = vst [vmem:[%s7228_s28 + $0x60] sm:$0xff] %v7521_v31   ;;  %v4105_v3 = vpack.c.bf16 %v7519_v10, %v7517_v8 }
 0x2e2   : > { %v3857_v54 = vpop.f32.mrf.mxu2 }
 0x2e3   : > { %v3946_v6 = vpop.f32.mrf.mxu3  ;;  %v3858_v32 = vadd.f32 %v3857_v54, %v3769_v24  ;;  %v3778_v54 = vpop.f32.mrf.mxu1 }
 0x2e4   : > { %v4033_v52 = vpop.f32.mrf.mxu0 }
 0x2e5   : > { %v3947_v58 = vadd.f32 %v3946_v6, %v3858_v32  ;;  %v4034_v25 = vadd.f32 %v4033_v52, %v3945_v13  ;;  %v7687_v52 = vld [vmem:[#allocation19_spill] sm:$0xff] }
 0x2e6   : > { %v3779_v59 = vadd.f32 %v3778_v54, %v7687_v52 }
 0x2e7   : > { %v4074_v53 = vmul.f32 %v4034_v25, %v4034_v25 }
 0x2ea   : > { %v3860_v14 = vpop.f32.mrf.mxu2 }
 0x2eb   : > { %v3949_v49 = vpop.f32.mrf.mxu3  ;;  %v3861_v9 = vadd.f32 %v3860_v14, %v3772_v12 }
 0x2ec   : > { %v4035_v45 = vpop.f32.mrf.mxu0 }
 0x2ed   : > { %v4036_v0 = vadd.f32 %v4035_v45, %v3947_v58  ;;  %v3950_v7 = vadd.f32 %v3949_v49, %v3861_v9 }
 0x2ef   : > { %v4075_v50 = vmul.f32 %v4036_v0, %v4036_v0  ;;  %v4106_v35 = vpack.c.bf16 %v4036_v0, %v4034_v25 }
 0x2f1   : > { %5367 = vst [vmem:[%s7228_s28 + $0x68] sm:$0xff] %v4106_v35   ;;  %v4107_v19 = vpack.c.bf16 %v4075_v50, %v4074_v53 }
 0x2f2   : > { %v3862_v44 = vpop.f32.mrf.mxu2 }
 0x2f3   : > { %v3951_v56 = vpop.f32.mrf.mxu3  ;;  %v3863_v46 = vadd.f32 %v3862_v44, %v3774_v57 }
 0x2f4   : > { %v4038_v51 = vpop.f32.mrf.mxu0 }
 0x2f5   : > { %v3952_v27 = vadd.f32 %v3951_v56, %v3863_v46  ;;  %v4039_v5 = vadd.f32 %v4038_v51, %v3950_v7 }
 0x2f7   : > { %v4076_v17 = vmul.f32 %v4039_v5, %v4039_v5 }
 0x2fa   : > { %v3865_v39 = vpop.f32.mrf.mxu2 }
 0x2fb   : > { %v3954_v11 = vpop.f32.mrf.mxu3  ;;  %v3866_v24 = vadd.f32 %v3865_v39, %v3777_v62 }
 0x2fc   : > { %v4040_v34 = vpop.f32.mrf.mxu0 }
 0x2fd   : > { %v4041_v30 = vadd.f32 %v4040_v34, %v3952_v27  ;;  %v3955_v32 = vadd.f32 %v3954_v11, %v3866_v24 }
 0x2ff   : > { %v4077_v2 = vmul.f32 %v4041_v30, %v4041_v30  ;;  %v4108_v40 = vpack.c.bf16 %v4041_v30, %v4039_v5 }
 0x301   : > { %5368 = vst [vmem:[%s7228_s28 + $0x70] sm:$0xff] %v4108_v40   ;;  %v4109_v38 = vpack.c.bf16 %v4077_v2, %v4076_v17 }
 0x302   : > { %v3867_v6 = vpop.f32.mrf.mxu2 }
 0x303   : > { %v3868_v48 = vadd.f32 %v3867_v6, %v3779_v59  ;;  %v3956_v13 = vpop.f32.mrf.mxu3 }
 0x304   : > { %v4043_v20 = vpop.f32.mrf.mxu0 }
 0x305   : > { %v3957_v14 = vadd.f32 %v3956_v13, %v3868_v48  ;;  %v4044_v58 = vadd.f32 %v4043_v20, %v3955_v32 }
 0x307   : > { %v4078_v45 = vmul.f32 %v4044_v58, %v4044_v58 }
 0x30c   : > { %v4045_v25 = vpop.f32.mrf.mxu0 }
 0x30d   : > { %v4046_v49 = vadd.f32 %v4045_v25, %v3957_v14 }
 0x30f   : > { %v4079_v0 = vmul.f32 %v4046_v49, %v4046_v49  ;;  %v4110_v4 = vpack.c.bf16 %v4046_v49, %v4044_v58 }
 0x311   : > { %v4111_v53 = vpack.c.bf16 %v4079_v0, %v4078_v45  ;;  %5369 = vst [vmem:[%s7228_s28 + $0x78] sm:$0xff] %v4110_v4   ;;  %4125 = vmatpush.bf16.msrb.mxu2 %v4110_v4 }
 0x313   : > { %4151 = vmatpush.bf16.msrb.mxu1 %v4111_v53 }
 0x315   : > { %4126 = vmatpush.bf16.msrb.mxu2 %v4108_v40 }
 0x317   : > { %4152 = vmatpush.bf16.msrb.mxu1 %v4109_v38 }
 0x319   : > { %4127 = vmatpush.bf16.msrb.mxu2 %v4106_v35 }
 0x31b   : > { %4153 = vmatpush.bf16.msrb.mxu1 %v4107_v19 }
 0x31d   : > { %4128 = vmatpush.bf16.msrb.mxu2 %v7521_v31 }
 0x31f   : > { %4154 = vmatpush.bf16.msrb.mxu1 %v4105_v3 }
 0x321   : > { %4129 = vmatpush.bf16.msrb.mxu2 %v7509_v55 }
 0x323   : > { %4155 = vmatpush.bf16.msrb.mxu1 %v4103_v23 }
 0x325   : > { %4130 = vmatpush.bf16.msrb.mxu2 %v7497_v60 }
 0x327   : > { %4156 = vmatpush.bf16.msrb.mxu1 %v4101_v61 }
 0x329   : > { %4131 = vmatpush.bf16.msrb.mxu2 %v7482_v15 }
 0x32b   : > { %4157 = vmatpush.bf16.msrb.mxu1 %v4099_v28 }
 0x32d   : > { %4132 = vmatpush.bf16.msrb.mxu2 %v7454_v26 }
 0x32f   : > { %4158 = vmatpush.bf16.msrb.mxu1 %v4097_v37 }
 0x330   : > { %4133 = vmatmul.bf16.vlgmr.msrb.gmra.mxu2 %v5595_v33 }
 0x332   : > { %4159 = vmatmul.bf16.vlgmr.msrb.gmra.mxu1 %v5595_v33 }
 0x333   : > { %5498 = shalt.err (!%p5495_p3)
}
 0x334   : > { %s5596_s28 = smov 64   ;;  %s5597_s22 = smov 4  }
 0x335   : > { %5388 = dma.vmem_to_hbm [thread:$0]  (%p5663_p5), %s4335_s6, 2048, %s4337_s7, %s7566_s23, %s5596_s28, %s5596_s28, %s5597_s22  }
 0x336   : > { %s4319_s5 = sshll.u32 %s4316_s13, 4  ;;  %s4295_s10 = scalar_lea.sflag [#allocation3], %s5892_s8  ;;  %s4320_s5 = int_to_ptr.hbm [resolvable:$true] %s4319_s5 }
 0x337   : > { %s5513_s11 = sshra.s32 %s4320_s5, 4  ;;  %s5519_s9 = scalar_lea.hbm %s7627_s2, 256  ;;  %s5514_s11 = int_to_ptr.hbm [resolvable:$true] %s5513_s11 }
 0x338   : > { %s5515_s0 = scalar_lea.hbm %s5514_s11, 128  ;;  %p5520_p9 = scmp.lt.s32.totalorder %s5514_s11, %s7627_s2 }
 0x339   : > { %p5516_p4 = scmp.ne.s32.totalorder %s5514_s11, %s5515_s0  ;;  %p5521_p10 = scmp.lt.s32.totalorder %s5519_s9, %s5515_s0 }
 0x33b   : > { %p5517_p7 = pnand %p5516_p4, %p5663_p5  ;;  %p5522_p11 = por %p5521_p10, %p5520_p9 }
 0x33d   : > { %p5518_p8 = pneg %p5517_p7 }
 0x33f   : > { %p5523_p12 = pnand %p5522_p11, %p5518_p8 }
 0x341   : > { %5526 = shalt.err (!%p5523_p12)
}
 0x342   : > { %5387 = dma.vmem_to_hbm [thread:$0]  (%p5663_p5), %s4318_s14, 2048, %s4320_s5, %s4295_s10, %s5596_s28, %s5596_s28, %s5597_s22  }
 0x343   : > { %s5274_s6 = sshll.u32 %s5644_s19, 4  ;;  %s4483_s7 = sshll.u32 %s5892_s8, 4 }
 0x344   : > { %s4350_s20 = scalar_lea.hbm %s7629_s4, %s5274_s6  ;;  %s208_s11 = scalar_lea.vmem [#allocation6], %s4483_s7 }
 0x345   : > { %s4352_s0 = sshll.u32 %s208_s11, 4  ;;  %s4354_s27 = sshll.u32 %s4350_s20, 4  ;;  %s4353_s0 = int_to_ptr.vmem [resolvable:$true] %s4352_s0  ;;  %s4355_s27 = int_to_ptr.hbm [resolvable:$true] %s4354_s27 }
 0x346   : > { %s5541_s14 = sshra.s32 %s4355_s27, 4  ;;  %s5547_s22 = scalar_lea.hbm %s7629_s4, 32  ;;  %s5542_s14 = int_to_ptr.hbm [resolvable:$true] %s5541_s14 }
 0x347   : > { %s5543_s19 = scalar_lea.hbm %s5542_s14, 16  ;;  %p5548_p2 = scmp.lt.s32.totalorder %s5542_s14, %s7629_s4 }
 0x348   : > { %p5544_p13 = scmp.ne.s32.totalorder %s5542_s14, %s5543_s19  ;;  %p5549_p3 = scmp.lt.s32.totalorder %s5547_s22, %s5543_s19 }
 0x34a   : > { %p5545_p0 = pnand %p5544_p13, %p5663_p5  ;;  %p5550_p4 = por %p5549_p3, %p5548_p2 }
 0x34c   : > { %p5546_p1 = pneg %p5545_p0 }
 0x34e   : > { %p5551_p7 = pnand %p5550_p4, %p5546_p1 }
 0x35b   : > { %v4121_v16 = vpop.f32.mrf.mxu1 }
 0x361   : > { %v4147_v26 = vpop.f32.mrf.mxu3 }
 0x363   : > { %v4123_v43 = vpop.f32.mrf.mxu1 }
 0x369   : > { %v4149_v37 = vpop.f32.mrf.mxu3 }
 0x3af   : > { %v4160_v29 = vpop.f32.mrf.mxu1 }
 0x3b0   : > { %v4161_v22 = vadd.f32 %v4160_v29, %v4147_v26 }
 0x3b2   : > { %4165 = vst [vmem:[%s208_s11 + $0x8] sm:$0xff] %v4161_v22 }
 0x3b3   : > { %v4134_v15 = vpop.f32.mrf.mxu2 }
 0x3b4   : > { %v4135_v28 = vadd.f32 %v4134_v15, %v4121_v16 }
 0x3b6   : > { %4164 = vst [vmem:[%s208_s11] sm:$0xff] %v4135_v28 }
 0x3b7   : > { %v4162_v47 = vpop.f32.mrf.mxu1 }
 0x3b8   : > { %5554 = shalt.err (!%p5551_p7)
}
 0x3b9   : > { %5389 = dma.vmem_to_hbm [thread:$0]  (%p5663_p5), %s4353_s0, 256, %s4355_s27, %s7566_s23  }
 0x3bb   : > { %v4136_v41 = vpop.f32.mrf.mxu2 }
 0x3bc PF: > { %p5403_p8 = scmp.ge.s32.totalorder %s5593_s18, 2  ;;  %s4366_s9 = sand.u32 1, %s5581_s15  }
 0x3bd   : > { %s4367_s29 = scalar_lea.sflag [#allocation3], %s4366_s9 }
 0x3be   : > { %p5394_p9 = pnand %p5403_p8, %p5667_p6 }
 0x3c0   : > { %p5395_p10 = pneg %p5394_p9 }
 0x3c2   : > { %5572 = dma.done.wait (%p5395_p10), %s4367_s29, 2048  }
 0x3c3   : > { %5574 = vsyncadd (%p5395_p10), %s4367_s29, 4294965248  ;;  %s7688_s12 = sadd.s32 4294967294, %s5593_s18  }
 0x3c4   : > { %s4376_s6 = sand.u32 1, %s7688_s12  }
 0x3c5   : > { %s4377_s7 = scalar_lea.sflag [#allocation5], %s4376_s6 }
 0x3c6   : > { %5576 = dma.done.wait (%p5395_p10), %s4377_s7, 2304  }
 0x3c7   : > { %5578 = vsyncadd (%p5395_p10), %s4377_s7, 4294964992  ;;  %p18_p5 = scmp.ge.s32.totalorder %s5648_s21, 4   ;;  %s7689_s15 = smov %s5585_s16 }
 0x3c8   : > { %s7690_s16 = smov %s5589_s17  ;;  %s7691_s17 = smov %s5661_s24 }
 0x3c9   : > { %s7692_s18 = smov %s5648_s21  ;;  %20 = sbr.rel (!%p18_p5) target bundleno = 7 (0x7), region = 97 }
 0x3ce   :  { %4393 = vsyncpa [#allocation3], 1 }
 0x3cf   :  { %4395 = vsyncpa [#allocation3 + $0x1], 1 }
 0x3d0   :  { %4396 = vsyncpa [#allocation5], 1 }
 0x3d1   :  { %4398 = vsyncpa [#allocation5 + $0x1], 1 }

</bundles_post_ra>
